<compile_context>
chip_gen: v5e
topology: v5e:2x2
jax: 0.10.0
libtpu: 0.0.40
codegen_flags: <defaults>
</compile_context>

<pallas_src>
import functools

import jax
import jax.numpy as jnp
from jax.experimental import pallas as pl
from jax.experimental.pallas import tpu as pltpu


_VMEM_SPEC = pl.BlockSpec(memory_space=pltpu.MemorySpace.VMEM)


# ----------------------------------------------------------------------------
# Fused whole-model kernel
# ----------------------------------------------------------------------------
def make_fused_kernel(num_layers, seq_len, batch, hidden_size, in_features,
                      n_inter):
    T, B, H, F = seq_len, batch, hidden_size, in_features

    def kernel(*refs):
        x_ref = refs[0]                                    # (B, T, F) batch-first
        lstm_refs = refs[1:1 + 3 * num_layers]             # per layer: wih, whh, b
        w1_ref, b1_ref, w2_ref, b2_ref = refs[1 + 3 * num_layers:
                                              5 + 3 * num_layers]
        logits_ref, hn_ref, cn_ref = refs[5 + 3 * num_layers:
                                          8 + 3 * num_layers]
        scratch = refs[8 + 3 * num_layers:]
        slab0 = scratch[0]                                 # (T*B, 2F) f32
        inter = list(scratch[1:1 + n_inter])               # (T*B, 4H) f32 each
        feats_ref = scratch[1 + n_inter]                   # (T, 2H)  f32

        # ---- layer-0 input slab: row block t = [x(t) | x(T-1-t)] ------------
        # Built once, off the serial chain; consumes batch-first x directly.
        x_r = x_ref[...]                                   # (B, T, F)
        for t in range(T):
            xt = x_r[:, t, :]                              # (B, F)
            slab0[t * B:(t + 1) * B, 0:F] = xt
            slab0[(T - 1 - t) * B:(T - t) * B, F:2 * F] = xt

        slab_in = slab0
        for layer in range(num_layers):
            wih = lstm_refs[3 * layer][...]                # (2*fin, 8H) bf16
            whh = lstm_refs[3 * layer + 1][...]            # (2H, 8H)    bf16
            b = lstm_refs[3 * layer + 2][...]              # (1, 8H)     f32
            is_last = layer == num_layers - 1

            # Hoisted input projection for the whole sequence, both directions:
            # one bf16 MXU matmul + bias, off the serial chain.  Row block s of
            # `proj` is already the fused per-step gate input — no select/flip.
            proj = jnp.dot(slab_in[...].astype(jnp.bfloat16), wih,
                           preferred_element_type=jnp.float32) + b  # (T*B, 8H)

            slab_out = None if is_last else inter[layer % 2]

            h_cat = jnp.zeros((B, 2 * H), jnp.float32)     # [h_f | h_b]
            c_cat = jnp.zeros((B, 2 * H), jnp.float32)     # [c_f | c_b]

            # T is small & static -> unrolled Python loop (LLO sees the schedule).
            for s in range(T):
                gx = proj[s * B:(s + 1) * B, :]            # (B, 8H), no recurrence dep
                gates = jnp.dot(h_cat.astype(jnp.bfloat16), whh,
                                preferred_element_type=jnp.float32) + gx
                # i/f/o columns were pre-scaled by 0.5 at packing time, so one
                # tanh pass over all 8H gate columns (2 vregs) yields tanh(x/2)
                # for the sigmoid gates and tanh(x) for g; the sigmoid fixup
                # 0.5*t+0.5 is VALU (slack).  3 EUP pushes/step total.
                th = jnp.tanh(gates)
                i_g = th[:, 0:2 * H] * 0.5 + 0.5
                f_g = th[:, 2 * H:4 * H] * 0.5 + 0.5
                g_g = th[:, 4 * H:6 * H]
                o_g = th[:, 6 * H:8 * H] * 0.5 + 0.5
                c_cat = f_g * c_cat + i_g * g_g
                h_cat = o_g * jnp.tanh(c_cat)              # 3rd EUP push / step

                if not is_last:
                    # Next layer's slab: row block r = [y(r) | y(T-1-r)] with
                    # y(t) = [h_f(t) | h_b(t)].  Forward out (time s) and
                    # backward out (time T-1-s) each land in two blocks.
                    hf = h_cat[:, :H]
                    hb = h_cat[:, H:]
                    r0, r1 = s * B, (s + 1) * B
                    q0, q1 = (T - 1 - s) * B, (T - s) * B
                    slab_out[r0:r1, 0:H] = hf
                    slab_out[q0:q1, 2 * H:3 * H] = hf
                    slab_out[q0:q1, H:2 * H] = hb
                    slab_out[r0:r1, 3 * H:4 * H] = hb
                else:
                    # Classifier features assembled in-loop: out[-1,:, :H] and
                    # out[0,:, :H] (fwd channels of batch rows B-1 and 0).  The
                    # last layer's backward per-step outputs are never stored.
                    feats_ref[s:s + 1, 0:H] = h_cat[B - 1:B, 0:H]
                    feats_ref[s:s + 1, H:2 * H] = h_cat[0:1, 0:H]

            # final states, PyTorch ordering: index = layer*2 + direction
            hn_ref[2 * layer] = h_cat[:, :H]
            hn_ref[2 * layer + 1] = h_cat[:, H:]
            cn_ref[2 * layer] = c_cat[:, :H]
            cn_ref[2 * layer + 1] = c_cat[:, H:]

            slab_in = slab_out

        # ---- classifier head -------------------------------------------------
        feats = feats_ref[...].astype(jnp.bfloat16)        # (T, 2H)
        h1 = jnp.dot(feats, w1_ref[...],
                     preferred_element_type=jnp.float32) + b1_ref[...]
        h1 = jnp.maximum(h1, 0.0)
        # TODO(synk): nn.Dropout is identity in eval mode; training-mode dropout
        # (pltpu.prng_random_bits mask) is intentionally not applied here.
        logits_ref[...] = jnp.dot(h1.astype(jnp.bfloat16), w2_ref[...],
                                  preferred_element_type=jnp.float32) + b2_ref[...]

    return kernel


# ----------------------------------------------------------------------------
# Full forward (matches studentModel.forward semantics) — single pallas_call
# ----------------------------------------------------------------------------
def student_model_forward(params, x, hidden_size, num_layers, num_classes):
    """x: (B, T, input_size) float32 — batch_first, like the PyTorch module."""
    B, T, F = x.shape
    H = hidden_size

    args = [x]
    for layer in range(num_layers):
        p = params["lstm"][layer]
        args += [p["wih"], p["whh"], p["b"]]
    c = params["cls"]
    args += [c["w1_t"], c["b1"], c["w2_t"], c["b2"]]

    n_inter = min(max(num_layers - 1, 0), 2)               # ping-pong slabs
    scratch_shapes = [pltpu.VMEM((T * B, 2 * F), jnp.float32)]
    scratch_shapes += [pltpu.VMEM((T * B, 4 * H), jnp.float32)
                       for _ in range(n_inter)]
    scratch_shapes += [pltpu.VMEM((T, 2 * H), jnp.float32)]

    kernel = make_fused_kernel(num_layers, T, B, H, F, n_inter)
    out_shape = (
        jax.ShapeDtypeStruct((T, num_classes), jnp.float32),
        jax.ShapeDtypeStruct((2 * num_layers, B, H), jnp.float32),
        jax.ShapeDtypeStruct((2 * num_layers, B, H), jnp.float32),
    )
    logits, h_n, c_n = pl.pallas_call(
        kernel,
        out_shape=out_shape,
        in_specs=[_VMEM_SPEC] * len(args),
        out_specs=(_VMEM_SPEC,) * 3,
        scratch_shapes=scratch_shapes,
        # Explicit limit: v5e's scoped-VMEM default is only 16 MiB; everything
        # here is far smaller, but set it so scaling T*B*H doesn't silently
        # fail on one generation.  (v7x: re-derive residency before scaling.)
        compiler_params=pltpu.CompilerParams(vmem_limit_bytes=32 * 1024 * 1024),
    )(*args)
    return logits, (h_n, c_n)


# ----------------------------------------------------------------------------
# Parameter construction (deterministic, PyTorch-default-like uniform init).
# Returns both the raw per-direction weights (for the pure-JAX reference) and
# the packed/fused bf16 weights consumed by the kernel.  Sigmoid-gate (i, f, o)
# columns are pre-scaled by 0.5 (exact in bf16) to enable the tanh identity.
# ----------------------------------------------------------------------------
def init_params(key, input_size, hidden_size, num_layers, num_classes,
                classification_hidden_size):
    H = hidden_size
    bound = 1.0 / (H ** 0.5)
    gate_scale = (0.5, 0.5, 1.0, 0.5)          # gate order i, f, g(tanh), o
    raw = {"lstm": [], "cls": {}}
    packed = {"lstm": [], "cls": {}}

    for layer in range(num_layers):
        fin = input_size if layer == 0 else 2 * H
        dirs = []
        # wih maps the doubled input slab [in(t) | in(T-1-t)] (2*fin wide) to
        # the 8H fused gate columns; rows 0:fin feed the forward-direction
        # columns, rows fin:2fin feed the backward-direction columns.
        wih_cat = jnp.zeros((2 * fin, 8 * H), jnp.float32)
        whh_cat = jnp.zeros((2 * H, 8 * H), jnp.float32)   # block-diag by direction
        b_cat = jnp.zeros((1, 8 * H), jnp.float32)
        for d in range(2):                                 # 0 = forward, 1 = backward
            key, k1, k2, k3, k4 = jax.random.split(key, 5)
            w_ih = jax.random.uniform(k1, (4 * H, fin), jnp.float32, -bound, bound)
            w_hh = jax.random.uniform(k2, (4 * H, H), jnp.float32, -bound, bound)
            b_ih = jax.random.uniform(k3, (4 * H,), jnp.float32, -bound, bound)
            b_hh = jax.random.uniform(k4, (4 * H,), jnp.float32, -bound, bound)
            dirs.append({"w_ih": w_ih, "w_hh": w_hh, "b_ih": b_ih, "b_hh": b_hh})
            b_sum = b_ih + b_hh
            for g in range(4):                             # gate order i, f, g, o
                blk = 2 * g + d                            # interleave fwd/bwd per gate
                col = slice(blk * H, (blk + 1) * H)
                sc = gate_scale[g]
                wih_cat = wih_cat.at[d * fin:(d + 1) * fin, col].set(
                    sc * w_ih[g * H:(g + 1) * H, :].T)
                whh_cat = whh_cat.at[d * H:(d + 1) * H, col].set(
                    sc * w_hh[g * H:(g + 1) * H, :].T)
                b_cat = b_cat.at[0, col].set(sc * b_sum[g * H:(g + 1) * H])
        raw["lstm"].append(dirs)
        packed["lstm"].append({"wih": wih_cat.astype(jnp.bfloat16),
                               "whh": whh_cat.astype(jnp.bfloat16),
                               "b": b_cat})

    key, k1, k2, k3, k4 = jax.random.split(key, 5)
    b1_bound = 1.0 / ((2 * H) ** 0.5)
    b2_bound = 1.0 / (classification_hidden_size ** 0.5)
    w1 = jax.random.uniform(k1, (classification_hidden_size, 2 * H), jnp.float32,
                            -b1_bound, b1_bound)
    b1 = jax.random.uniform(k2, (classification_hidden_size,), jnp.float32,
                            -b1_bound, b1_bound)
    w2 = jax.random.uniform(k3, (num_classes, classification_hidden_size),
                            jnp.float32, -b2_bound, b2_bound)
    b2 = jax.random.uniform(k4, (num_classes,), jnp.float32, -b2_bound, b2_bound)
    raw["cls"] = {"w1": w1, "b1": b1, "w2": w2, "b2": b2}
    packed["cls"] = {"w1_t": w1.T.astype(jnp.bfloat16), "b1": b1[None, :],
                     "w2_t": w2.T.astype(jnp.bfloat16), "b2": b2[None, :]}
    return {"raw": raw, "packed": packed}


# ----------------------------------------------------------------------------
# Pure-JAX reference (standard bi-LSTM math, unpacked f32 weights)
# ----------------------------------------------------------------------------
def reference_forward(raw, x, hidden_size, num_layers):
    H = hidden_size
    B, T, _ = x.shape
    layer_in = jnp.transpose(x, (1, 0, 2))     # (T, B, F)
    h_list, c_list = [], []
    for layer in range(num_layers):
        outs = []
        for d in range(2):
            p = raw["lstm"][layer][d]
            seq = layer_in if d == 0 else layer_in[::-1]
            h = jnp.zeros((B, H), jnp.float32)
            c = jnp.zeros((B, H), jnp.float32)
            hs = []
            for t in range(T):
                g = (seq[t] @ p["w_ih"].T + h @ p["w_hh"].T
                     + p["b_ih"] + p["b_hh"])
                i = jax.nn.sigmoid(g[:, 0:H])
                f = jax.nn.sigmoid(g[:, H:2 * H])
                gg = jnp.tanh(g[:, 2 * H:3 * H])
                o = jax.nn.sigmoid(g[:, 3 * H:4 * H])
                c = f * c + i * gg
                h = o * jnp.tanh(c)
                hs.append(h)
            out = jnp.stack(hs, axis=0)
            if d == 1:
                out = out[::-1]
            outs.append(out)
            h_list.append(h)
            c_list.append(c)
        layer_in = jnp.concatenate(outs, axis=-1)       # (T, B, 2H)
    h_n = jnp.stack(h_list, axis=0)
    c_n = jnp.stack(c_list, axis=0)
    out_bf = jnp.transpose(layer_in, (1, 0, 2))         # (B, T, 2H)
    feats = jnp.concatenate([out_bf[-1, :, :H], out_bf[0, :, :H]], axis=1)
    cls = raw["cls"]
    hcls = jnp.maximum(feats @ cls["w1"].T + cls["b1"], 0.0)
    logits = hcls @ cls["w2"].T + cls["b2"]
    return logits, h_n, c_n


# ----------------------------------------------------------------------------
if __name__ == "__main__":
    # Small, module-consistent shapes.
    batch = 2
    seq = 8
    input_size = 16
    hidden_size = 32
    num_layers = 2
    num_classes = 4
    classification_hidden_size = 32

    key = jax.random.PRNGKey(0)
    key, kx = jax.random.split(key)
    x = jax.random.normal(kx, (batch, seq, input_size), jnp.float32)

    params = init_params(key, input_size, hidden_size, num_layers,
                         num_classes, classification_hidden_size)

    fwd = jax.jit(functools.partial(student_model_forward,
                                    hidden_size=hidden_size,
                                    num_layers=num_layers,
                                    num_classes=num_classes))

    logits, (h_n, c_n) = fwd(params["packed"], x)
    jax.block_until_ready((logits, h_n, c_n))

    assert logits.shape == (seq, num_classes)
    assert h_n.shape == (num_layers * 2, batch, hidden_size)
    assert c_n.shape == (num_layers * 2, batch, hidden_size)
    assert bool(jnp.all(jnp.isfinite(logits)))

    # Verify the fused kernel against a plain-JAX bidirectional-LSTM reference.
    # Tolerance is loosened vs the pure-f32 version because the kernel now uses
    # bf16 MXU operands (f32 accumulation) per the performance review.
    ref_logits, ref_h, ref_c = reference_forward(params["raw"], x,
                                                 hidden_size, num_layers)
    assert bool(jnp.allclose(logits, ref_logits, atol=5e-2, rtol=5e-2))
    assert bool(jnp.allclose(h_n, ref_h, atol=5e-2, rtol=5e-2))
    assert bool(jnp.allclose(c_n, ref_c, atol=5e-2, rtol=5e-2))

    print("KERNEL_OK")
</pallas_src>

<mosaic_0001>
module attributes {stable_mosaic.version = 11 : i64} {
  func.func @kernel(%arg0: memref<2x8x16xf32, #tpu.memory_space<vmem>>, %arg1: memref<32x256xbf16, #tpu.memory_space<vmem>>, %arg2: memref<64x256xbf16, #tpu.memory_space<vmem>>, %arg3: memref<1x256xf32, #tpu.memory_space<vmem>>, %arg4: memref<128x256xbf16, #tpu.memory_space<vmem>>, %arg5: memref<64x256xbf16, #tpu.memory_space<vmem>>, %arg6: memref<1x256xf32, #tpu.memory_space<vmem>>, %arg7: memref<64x32xbf16, #tpu.memory_space<vmem>>, %arg8: memref<1x32xf32, #tpu.memory_space<vmem>>, %arg9: memref<32x4xbf16, #tpu.memory_space<vmem>>, %arg10: memref<1x4xf32, #tpu.memory_space<vmem>>, %arg11: memref<8x4xf32, #tpu.memory_space<vmem>>, %arg12: memref<4x2x32xf32, #tpu.memory_space<vmem>>, %arg13: memref<4x2x32xf32, #tpu.memory_space<vmem>>, %arg14: memref<16x32xf32, #tpu.memory_space<vmem>>, %arg15: memref<16x128xf32, #tpu.memory_space<vmem>>, %arg16: memref<8x64xf32, #tpu.memory_space<vmem>>) attributes {dimension_semantics = [], scalar_prefetch = 0 : i64, scratch_operands = 3 : i64, tpu.core_type = #tpu.core_type<tc>} {
    %c0 = arith.constant 0 : index
    %c0_0 = arith.constant 0 : index
    %c0_1 = arith.constant 0 : index
    %0 = vector.load %arg0[%c0, %c0_0, %c0_1] : memref<2x8x16xf32, #tpu.memory_space<vmem>>, vector<2x8x16xf32>
    %1 = vector.extract_strided_slice %0 {offsets = [0, 0, 0], sizes = [2, 1, 16], strides = [1, 1, 1]} : vector<2x8x16xf32> to vector<2x1x16xf32>
    %2 = vector.shape_cast %1 : vector<2x1x16xf32> to vector<2x16xf32>
    %c0_2 = arith.constant 0 : index
    %c0_3 = arith.constant 0 : index
    %3 = vector.load %arg14[%c0_2, %c0_3] : memref<16x32xf32, #tpu.memory_space<vmem>>, vector<2x16xf32>
    tpu.vector_store %arg14[%c0_2, %c0_3], %2 {strides = array<i32>} : memref<16x32xf32, #tpu.memory_space<vmem>>, vector<2x16xf32>,
    %c14 = arith.constant 14 : index
    %c16 = arith.constant 16 : index
    %4 = vector.load %arg14[%c14, %c16] : memref<16x32xf32, #tpu.memory_space<vmem>>, vector<2x16xf32>
    tpu.vector_store %arg14[%c14, %c16], %2 {strides = array<i32>} : memref<16x32xf32, #tpu.memory_space<vmem>>, vector<2x16xf32>,
    %5 = vector.extract_strided_slice %0 {offsets = [0, 1, 0], sizes = [2, 1, 16], strides = [1, 1, 1]} : vector<2x8x16xf32> to vector<2x1x16xf32>
    %6 = vector.shape_cast %5 : vector<2x1x16xf32> to vector<2x16xf32>
    %c2 = arith.constant 2 : index
    %c0_4 = arith.constant 0 : index
    %7 = vector.load %arg14[%c2, %c0_4] : memref<16x32xf32, #tpu.memory_space<vmem>>, vector<2x16xf32>
    tpu.vector_store %arg14[%c2, %c0_4], %6 {strides = array<i32>} : memref<16x32xf32, #tpu.memory_space<vmem>>, vector<2x16xf32>,
    %c12 = arith.constant 12 : index
    %c16_5 = arith.constant 16 : index
    %8 = vector.load %arg14[%c12, %c16_5] : memref<16x32xf32, #tpu.memory_space<vmem>>, vector<2x16xf32>
    tpu.vector_store %arg14[%c12, %c16_5], %6 {strides = array<i32>} : memref<16x32xf32, #tpu.memory_space<vmem>>, vector<2x16xf32>,
    %9 = vector.extract_strided_slice %0 {offsets = [0, 2, 0], sizes = [2, 1, 16], strides = [1, 1, 1]} : vector<2x8x16xf32> to vector<2x1x16xf32>
    %10 = vector.shape_cast %9 : vector<2x1x16xf32> to vector<2x16xf32>
    %c4 = arith.constant 4 : index
    %c0_6 = arith.constant 0 : index
    %11 = vector.load %arg14[%c4, %c0_6] : memref<16x32xf32, #tpu.memory_space<vmem>>, vector<2x16xf32>
    tpu.vector_store %arg14[%c4, %c0_6], %10 {strides = array<i32>} : memref<16x32xf32, #tpu.memory_space<vmem>>, vector<2x16xf32>,
    %c10 = arith.constant 10 : index
    %c16_7 = arith.constant 16 : index
    %12 = vector.load %arg14[%c10, %c16_7] : memref<16x32xf32, #tpu.memory_space<vmem>>, vector<2x16xf32>
    tpu.vector_store %arg14[%c10, %c16_7], %10 {strides = array<i32>} : memref<16x32xf32, #tpu.memory_space<vmem>>, vector<2x16xf32>,
    %13 = vector.extract_strided_slice %0 {offsets = [0, 3, 0], sizes = [2, 1, 16], strides = [1, 1, 1]} : vector<2x8x16xf32> to vector<2x1x16xf32>
    %14 = vector.shape_cast %13 : vector<2x1x16xf32> to vector<2x16xf32>
    %c6 = arith.constant 6 : index
    %c0_8 = arith.constant 0 : index
    %15 = vector.load %arg14[%c6, %c0_8] : memref<16x32xf32, #tpu.memory_space<vmem>>, vector<2x16xf32>
    tpu.vector_store %arg14[%c6, %c0_8], %14 {strides = array<i32>} : memref<16x32xf32, #tpu.memory_space<vmem>>, vector<2x16xf32>,
    %c8 = arith.constant 8 : index
    %c16_9 = arith.constant 16 : index
    %16 = vector.load %arg14[%c8, %c16_9] : memref<16x32xf32, #tpu.memory_space<vmem>>, vector<2x16xf32>
    tpu.vector_store %arg14[%c8, %c16_9], %14 {strides = array<i32>} : memref<16x32xf32, #tpu.memory_space<vmem>>, vector<2x16xf32>,
    %17 = vector.extract_strided_slice %0 {offsets = [0, 4, 0], sizes = [2, 1, 16], strides = [1, 1, 1]} : vector<2x8x16xf32> to vector<2x1x16xf32>
    %18 = vector.shape_cast %17 : vector<2x1x16xf32> to vector<2x16xf32>
    %c8_10 = arith.constant 8 : index
    %c0_11 = arith.constant 0 : index
    %19 = vector.load %arg14[%c8_10, %c0_11] : memref<16x32xf32, #tpu.memory_space<vmem>>, vector<2x16xf32>
    tpu.vector_store %arg14[%c8_10, %c0_11], %18 {strides = array<i32>} : memref<16x32xf32, #tpu.memory_space<vmem>>, vector<2x16xf32>,
    %c6_12 = arith.constant 6 : index
    %c16_13 = arith.constant 16 : index
    %20 = vector.load %arg14[%c6_12, %c16_13] : memref<16x32xf32, #tpu.memory_space<vmem>>, vector<2x16xf32>
    tpu.vector_store %arg14[%c6_12, %c16_13], %18 {strides = array<i32>} : memref<16x32xf32, #tpu.memory_space<vmem>>, vector<2x16xf32>,
    %21 = vector.extract_strided_slice %0 {offsets = [0, 5, 0], sizes = [2, 1, 16], strides = [1, 1, 1]} : vector<2x8x16xf32> to vector<2x1x16xf32>
    %22 = vector.shape_cast %21 : vector<2x1x16xf32> to vector<2x16xf32>
    %c10_14 = arith.constant 10 : index
    %c0_15 = arith.constant 0 : index
    %23 = vector.load %arg14[%c10_14, %c0_15] : memref<16x32xf32, #tpu.memory_space<vmem>>, vector<2x16xf32>
    tpu.vector_store %arg14[%c10_14, %c0_15], %22 {strides = array<i32>} : memref<16x32xf32, #tpu.memory_space<vmem>>, vector<2x16xf32>,
    %c4_16 = arith.constant 4 : index
    %c16_17 = arith.constant 16 : index
    %24 = vector.load %arg14[%c4_16, %c16_17] : memref<16x32xf32, #tpu.memory_space<vmem>>, vector<2x16xf32>
    tpu.vector_store %arg14[%c4_16, %c16_17], %22 {strides = array<i32>} : memref<16x32xf32, #tpu.memory_space<vmem>>, vector<2x16xf32>,
    %25 = vector.extract_strided_slice %0 {offsets = [0, 6, 0], sizes = [2, 1, 16], strides = [1, 1, 1]} : vector<2x8x16xf32> to vector<2x1x16xf32>
    %26 = vector.shape_cast %25 : vector<2x1x16xf32> to vector<2x16xf32>
    %c12_18 = arith.constant 12 : index
    %c0_19 = arith.constant 0 : index
    %27 = vector.load %arg14[%c12_18, %c0_19] : memref<16x32xf32, #tpu.memory_space<vmem>>, vector<2x16xf32>
    tpu.vector_store %arg14[%c12_18, %c0_19], %26 {strides = array<i32>} : memref<16x32xf32, #tpu.memory_space<vmem>>, vector<2x16xf32>,
    %c2_20 = arith.constant 2 : index
    %c16_21 = arith.constant 16 : index
    %28 = vector.load %arg14[%c2_20, %c16_21] : memref<16x32xf32, #tpu.memory_space<vmem>>, vector<2x16xf32>
    tpu.vector_store %arg14[%c2_20, %c16_21], %26 {strides = array<i32>} : memref<16x32xf32, #tpu.memory_space<vmem>>, vector<2x16xf32>,
    %29 = vector.extract_strided_slice %0 {offsets = [0, 7, 0], sizes = [2, 1, 16], strides = [1, 1, 1]} : vector<2x8x16xf32> to vector<2x1x16xf32>
    %30 = vector.shape_cast %29 : vector<2x1x16xf32> to vector<2x16xf32>
    %c14_22 = arith.constant 14 : index
    %c0_23 = arith.constant 0 : index
    %31 = vector.load %arg14[%c14_22, %c0_23] : memref<16x32xf32, #tpu.memory_space<vmem>>, vector<2x16xf32>
    tpu.vector_store %arg14[%c14_22, %c0_23], %30 {strides = array<i32>} : memref<16x32xf32, #tpu.memory_space<vmem>>, vector<2x16xf32>,
    %c0_24 = arith.constant 0 : index
    %c16_25 = arith.constant 16 : index
    %32 = vector.load %arg14[%c0_24, %c16_25] : memref<16x32xf32, #tpu.memory_space<vmem>>, vector<2x16xf32>
    tpu.vector_store %arg14[%c0_24, %c16_25], %30 {strides = array<i32>} : memref<16x32xf32, #tpu.memory_space<vmem>>, vector<2x16xf32>,
    %c0_26 = arith.constant 0 : index
    %c0_27 = arith.constant 0 : index
    %33 = vector.load %arg1[%c0_26, %c0_27] : memref<32x256xbf16, #tpu.memory_space<vmem>>, vector<32x256xbf16>
    %c0_28 = arith.constant 0 : index
    %c0_29 = arith.constant 0 : index
    %34 = vector.load %arg2[%c0_28, %c0_29] : memref<64x256xbf16, #tpu.memory_space<vmem>>, vector<64x256xbf16>
    %c0_30 = arith.constant 0 : index
    %c0_31 = arith.constant 0 : index
    %35 = vector.load %arg3[%c0_30, %c0_31] : memref<1x256xf32, #tpu.memory_space<vmem>>, vector<1x256xf32>
    %c0_32 = arith.constant 0 : index
    %c0_33 = arith.constant 0 : index
    %36 = vector.load %arg14[%c0_32, %c0_33] : memref<16x32xf32, #tpu.memory_space<vmem>>, vector<16x32xf32>
    %37 = arith.truncf %36 : vector<16x32xf32> to vector<16x32xbf16>
    %cst = arith.constant dense<0.000000e+00> : vector<16x256xf32>
    %38 = tpu.matmul %37, %33, %cst {dimension_numbers = #tpu.dot_dimension_numbers<[1], [0], [0], [1], [0, 0, 1, 1], [], []>} : vector<16x32xbf16>, vector<32x256xbf16>, vector<16x256xf32> -> vector<16x256xf32>
    %39 = vector.broadcast %35 : vector<1x256xf32> to vector<16x256xf32>
    %40 = arith.addf %38, %39 : vector<16x256xf32>
    %cst_34 = arith.constant 0.000000e+00 : f32
    %41 = vector.broadcast %cst_34 : f32 to vector<2x64xf32>
    %cst_35 = arith.constant 0.000000e+00 : f32
    %42 = vector.broadcast %cst_35 : f32 to vector<2x64xf32>
    %43 = vector.extract_strided_slice %40 {offsets = [0, 0], sizes = [2, 256], strides = [1, 1]} : vector<16x256xf32> to vector<2x256xf32>
    %44 = arith.truncf %41 : vector<2x64xf32> to vector<2x64xbf16>
    %cst_36 = arith.constant dense<0.000000e+00> : vector<2x256xf32>
    %45 = tpu.matmul %44, %34, %cst_36 {dimension_numbers = #tpu.dot_dimension_numbers<[1], [0], [0], [1], [0, 0, 1, 1], [], []>} : vector<2x64xbf16>, vector<64x256xbf16>, vector<2x256xf32> -> vector<2x256xf32>
    %46 = arith.addf %45, %43 : vector<2x256xf32>
    %47 = math.tanh %46 : vector<2x256xf32>
    %48 = vector.extract_strided_slice %47 {offsets = [0, 0], sizes = [2, 64], strides = [1, 1]} : vector<2x256xf32> to vector<2x64xf32>
    %cst_37 = arith.constant 5.000000e-01 : f32
    %49 = vector.broadcast %cst_37 : f32 to vector<2x64xf32>
    %50 = arith.mulf %48, %49 : vector<2x64xf32>
    %cst_38 = arith.constant 5.000000e-01 : f32
    %51 = vector.broadcast %cst_38 : f32 to vector<2x64xf32>
    %52 = arith.addf %50, %51 : vector<2x64xf32>
    %53 = vector.extract_strided_slice %47 {offsets = [0, 64], sizes = [2, 64], strides = [1, 1]} : vector<2x256xf32> to vector<2x64xf32>
    %cst_39 = arith.constant 5.000000e-01 : f32
    %54 = vector.broadcast %cst_39 : f32 to vector<2x64xf32>
    %55 = arith.mulf %53, %54 : vector<2x64xf32>
    %cst_40 = arith.constant 5.000000e-01 : f32
    %56 = vector.broadcast %cst_40 : f32 to vector<2x64xf32>
    %57 = arith.addf %55, %56 : vector<2x64xf32>
    %58 = vector.extract_strided_slice %47 {offsets = [0, 128], sizes = [2, 64], strides = [1, 1]} : vector<2x256xf32> to vector<2x64xf32>
    %59 = vector.extract_strided_slice %47 {offsets = [0, 192], sizes = [2, 64], strides = [1, 1]} : vector<2x256xf32> to vector<2x64xf32>
    %cst_41 = arith.constant 5.000000e-01 : f32
    %60 = vector.broadcast %cst_41 : f32 to vector<2x64xf32>
    %61 = arith.mulf %59, %60 : vector<2x64xf32>
    %cst_42 = arith.constant 5.000000e-01 : f32
    %62 = vector.broadcast %cst_42 : f32 to vector<2x64xf32>
    %63 = arith.addf %61, %62 : vector<2x64xf32>
    %64 = arith.mulf %57, %42 : vector<2x64xf32>
    %65 = arith.mulf %52, %58 : vector<2x64xf32>
    %66 = arith.addf %64, %65 : vector<2x64xf32>
    %67 = math.tanh %66 : vector<2x64xf32>
    %68 = arith.mulf %63, %67 : vector<2x64xf32>
    %69 = vector.extract_strided_slice %68 {offsets = [0, 0], sizes = [2, 32], strides = [1, 1]} : vector<2x64xf32> to vector<2x32xf32>
    %70 = vector.extract_strided_slice %68 {offsets = [0, 32], sizes = [2, 32], strides = [1, 1]} : vector<2x64xf32> to vector<2x32xf32>
    %c0_43 = arith.constant 0 : index
    %c0_44 = arith.constant 0 : index
    %71 = vector.load %arg15[%c0_43, %c0_44] : memref<16x128xf32, #tpu.memory_space<vmem>>, vector<2x32xf32>
    tpu.vector_store %arg15[%c0_43, %c0_44], %69 {strides = array<i32>} : memref<16x128xf32, #tpu.memory_space<vmem>>, vector<2x32xf32>,
    %c14_45 = arith.constant 14 : index
    %c64 = arith.constant 64 : index
    %72 = vector.load %arg15[%c14_45, %c64] : memref<16x128xf32, #tpu.memory_space<vmem>>, vector<2x32xf32>
    tpu.vector_store %arg15[%c14_45, %c64], %69 {strides = array<i32>} : memref<16x128xf32, #tpu.memory_space<vmem>>, vector<2x32xf32>,
    %c14_46 = arith.constant 14 : index
    %c32 = arith.constant 32 : index
    %73 = vector.load %arg15[%c14_46, %c32] : memref<16x128xf32, #tpu.memory_space<vmem>>, vector<2x32xf32>
    tpu.vector_store %arg15[%c14_46, %c32], %70 {strides = array<i32>} : memref<16x128xf32, #tpu.memory_space<vmem>>, vector<2x32xf32>,
    %c0_47 = arith.constant 0 : index
    %c96 = arith.constant 96 : index
    %74 = vector.load %arg15[%c0_47, %c96] : memref<16x128xf32, #tpu.memory_space<vmem>>, vector<2x32xf32>
    tpu.vector_store %arg15[%c0_47, %c96], %70 {strides = array<i32>} : memref<16x128xf32, #tpu.memory_space<vmem>>, vector<2x32xf32>,
    %75 = vector.extract_strided_slice %40 {offsets = [2, 0], sizes = [2, 256], strides = [1, 1]} : vector<16x256xf32> to vector<2x256xf32>
    %76 = arith.truncf %68 : vector<2x64xf32> to vector<2x64xbf16>
    %cst_48 = arith.constant dense<0.000000e+00> : vector<2x256xf32>
    %77 = tpu.matmul %76, %34, %cst_48 {dimension_numbers = #tpu.dot_dimension_numbers<[1], [0], [0], [1], [0, 0, 1, 1], [], []>} : vector<2x64xbf16>, vector<64x256xbf16>, vector<2x256xf32> -> vector<2x256xf32>
    %78 = arith.addf %77, %75 : vector<2x256xf32>
    %79 = math.tanh %78 : vector<2x256xf32>
    %80 = vector.extract_strided_slice %79 {offsets = [0, 0], sizes = [2, 64], strides = [1, 1]} : vector<2x256xf32> to vector<2x64xf32>
    %cst_49 = arith.constant 5.000000e-01 : f32
    %81 = vector.broadcast %cst_49 : f32 to vector<2x64xf32>
    %82 = arith.mulf %80, %81 : vector<2x64xf32>
    %cst_50 = arith.constant 5.000000e-01 : f32
    %83 = vector.broadcast %cst_50 : f32 to vector<2x64xf32>
    %84 = arith.addf %82, %83 : vector<2x64xf32>
    %85 = vector.extract_strided_slice %79 {offsets = [0, 64], sizes = [2, 64], strides = [1, 1]} : vector<2x256xf32> to vector<2x64xf32>
    %cst_51 = arith.constant 5.000000e-01 : f32
    %86 = vector.broadcast %cst_51 : f32 to vector<2x64xf32>
    %87 = arith.mulf %85, %86 : vector<2x64xf32>
    %cst_52 = arith.constant 5.000000e-01 : f32
    %88 = vector.broadcast %cst_52 : f32 to vector<2x64xf32>
    %89 = arith.addf %87, %88 : vector<2x64xf32>
    %90 = vector.extract_strided_slice %79 {offsets = [0, 128], sizes = [2, 64], strides = [1, 1]} : vector<2x256xf32> to vector<2x64xf32>
    %91 = vector.extract_strided_slice %79 {offsets = [0, 192], sizes = [2, 64], strides = [1, 1]} : vector<2x256xf32> to vector<2x64xf32>
    %cst_53 = arith.constant 5.000000e-01 : f32
    %92 = vector.broadcast %cst_53 : f32 to vector<2x64xf32>
    %93 = arith.mulf %91, %92 : vector<2x64xf32>
    %cst_54 = arith.constant 5.000000e-01 : f32
    %94 = vector.broadcast %cst_54 : f32 to vector<2x64xf32>
    %95 = arith.addf %93, %94 : vector<2x64xf32>
    %96 = arith.mulf %89, %66 : vector<2x64xf32>
    %97 = arith.mulf %84, %90 : vector<2x64xf32>
    %98 = arith.addf %96, %97 : vector<2x64xf32>
    %99 = math.tanh %98 : vector<2x64xf32>
    %100 = arith.mulf %95, %99 : vector<2x64xf32>
    %101 = vector.extract_strided_slice %100 {offsets = [0, 0], sizes = [2, 32], strides = [1, 1]} : vector<2x64xf32> to vector<2x32xf32>
    %102 = vector.extract_strided_slice %100 {offsets = [0, 32], sizes = [2, 32], strides = [1, 1]} : vector<2x64xf32> to vector<2x32xf32>
    %c2_55 = arith.constant 2 : index
    %c0_56 = arith.constant 0 : index
    %103 = vector.load %arg15[%c2_55, %c0_56] : memref<16x128xf32, #tpu.memory_space<vmem>>, vector<2x32xf32>
    tpu.vector_store %arg15[%c2_55, %c0_56], %101 {strides = array<i32>} : memref<16x128xf32, #tpu.memory_space<vmem>>, vector<2x32xf32>,
    %c12_57 = arith.constant 12 : index
    %c64_58 = arith.constant 64 : index
    %104 = vector.load %arg15[%c12_57, %c64_58] : memref<16x128xf32, #tpu.memory_space<vmem>>, vector<2x32xf32>
    tpu.vector_store %arg15[%c12_57, %c64_58], %101 {strides = array<i32>} : memref<16x128xf32, #tpu.memory_space<vmem>>, vector<2x32xf32>,
    %c12_59 = arith.constant 12 : index
    %c32_60 = arith.constant 32 : index
    %105 = vector.load %arg15[%c12_59, %c32_60] : memref<16x128xf32, #tpu.memory_space<vmem>>, vector<2x32xf32>
    tpu.vector_store %arg15[%c12_59, %c32_60], %102 {strides = array<i32>} : memref<16x128xf32, #tpu.memory_space<vmem>>, vector<2x32xf32>,
    %c2_61 = arith.constant 2 : index
    %c96_62 = arith.constant 96 : index
    %106 = vector.load %arg15[%c2_61, %c96_62] : memref<16x128xf32, #tpu.memory_space<vmem>>, vector<2x32xf32>
    tpu.vector_store %arg15[%c2_61, %c96_62], %102 {strides = array<i32>} : memref<16x128xf32, #tpu.memory_space<vmem>>, vector<2x32xf32>,
    %107 = vector.extract_strided_slice %40 {offsets = [4, 0], sizes = [2, 256], strides = [1, 1]} : vector<16x256xf32> to vector<2x256xf32>
    %108 = arith.truncf %100 : vector<2x64xf32> to vector<2x64xbf16>
    %cst_63 = arith.constant dense<0.000000e+00> : vector<2x256xf32>
    %109 = tpu.matmul %108, %34, %cst_63 {dimension_numbers = #tpu.dot_dimension_numbers<[1], [0], [0], [1], [0, 0, 1, 1], [], []>} : vector<2x64xbf16>, vector<64x256xbf16>, vector<2x256xf32> -> vector<2x256xf32>
    %110 = arith.addf %109, %107 : vector<2x256xf32>
    %111 = math.tanh %110 : vector<2x256xf32>
    %112 = vector.extract_strided_slice %111 {offsets = [0, 0], sizes = [2, 64], strides = [1, 1]} : vector<2x256xf32> to vector<2x64xf32>
    %cst_64 = arith.constant 5.000000e-01 : f32
    %113 = vector.broadcast %cst_64 : f32 to vector<2x64xf32>
    %114 = arith.mulf %112, %113 : vector<2x64xf32>
    %cst_65 = arith.constant 5.000000e-01 : f32
    %115 = vector.broadcast %cst_65 : f32 to vector<2x64xf32>
    %116 = arith.addf %114, %115 : vector<2x64xf32>
    %117 = vector.extract_strided_slice %111 {offsets = [0, 64], sizes = [2, 64], strides = [1, 1]} : vector<2x256xf32> to vector<2x64xf32>
    %cst_66 = arith.constant 5.000000e-01 : f32
    %118 = vector.broadcast %cst_66 : f32 to vector<2x64xf32>
    %119 = arith.mulf %117, %118 : vector<2x64xf32>
    %cst_67 = arith.constant 5.000000e-01 : f32
    %120 = vector.broadcast %cst_67 : f32 to vector<2x64xf32>
    %121 = arith.addf %119, %120 : vector<2x64xf32>
    %122 = vector.extract_strided_slice %111 {offsets = [0, 128], sizes = [2, 64], strides = [1, 1]} : vector<2x256xf32> to vector<2x64xf32>
    %123 = vector.extract_strided_slice %111 {offsets = [0, 192], sizes = [2, 64], strides = [1, 1]} : vector<2x256xf32> to vector<2x64xf32>
    %cst_68 = arith.constant 5.000000e-01 : f32
    %124 = vector.broadcast %cst_68 : f32 to vector<2x64xf32>
    %125 = arith.mulf %123, %124 : vector<2x64xf32>
    %cst_69 = arith.constant 5.000000e-01 : f32
    %126 = vector.broadcast %cst_69 : f32 to vector<2x64xf32>
    %127 = arith.addf %125, %126 : vector<2x64xf32>
    %128 = arith.mulf %121, %98 : vector<2x64xf32>
    %129 = arith.mulf %116, %122 : vector<2x64xf32>
    %130 = arith.addf %128, %129 : vector<2x64xf32>
    %131 = math.tanh %130 : vector<2x64xf32>
    %132 = arith.mulf %127, %131 : vector<2x64xf32>
    %133 = vector.extract_strided_slice %132 {offsets = [0, 0], sizes = [2, 32], strides = [1, 1]} : vector<2x64xf32> to vector<2x32xf32>
    %134 = vector.extract_strided_slice %132 {offsets = [0, 32], sizes = [2, 32], strides = [1, 1]} : vector<2x64xf32> to vector<2x32xf32>
    %c4_70 = arith.constant 4 : index
    %c0_71 = arith.constant 0 : index
    %135 = vector.load %arg15[%c4_70, %c0_71] : memref<16x128xf32, #tpu.memory_space<vmem>>, vector<2x32xf32>
    tpu.vector_store %arg15[%c4_70, %c0_71], %133 {strides = array<i32>} : memref<16x128xf32, #tpu.memory_space<vmem>>, vector<2x32xf32>,
    %c10_72 = arith.constant 10 : index
    %c64_73 = arith.constant 64 : index
    %136 = vector.load %arg15[%c10_72, %c64_73] : memref<16x128xf32, #tpu.memory_space<vmem>>, vector<2x32xf32>
    tpu.vector_store %arg15[%c10_72, %c64_73], %133 {strides = array<i32>} : memref<16x128xf32, #tpu.memory_space<vmem>>, vector<2x32xf32>,
    %c10_74 = arith.constant 10 : index
    %c32_75 = arith.constant 32 : index
    %137 = vector.load %arg15[%c10_74, %c32_75] : memref<16x128xf32, #tpu.memory_space<vmem>>, vector<2x32xf32>
    tpu.vector_store %arg15[%c10_74, %c32_75], %134 {strides = array<i32>} : memref<16x128xf32, #tpu.memory_space<vmem>>, vector<2x32xf32>,
    %c4_76 = arith.constant 4 : index
    %c96_77 = arith.constant 96 : index
    %138 = vector.load %arg15[%c4_76, %c96_77] : memref<16x128xf32, #tpu.memory_space<vmem>>, vector<2x32xf32>
    tpu.vector_store %arg15[%c4_76, %c96_77], %134 {strides = array<i32>} : memref<16x128xf32, #tpu.memory_space<vmem>>, vector<2x32xf32>,
    %139 = vector.extract_strided_slice %40 {offsets = [6, 0], sizes = [2, 256], strides = [1, 1]} : vector<16x256xf32> to vector<2x256xf32>
    %140 = arith.truncf %132 : vector<2x64xf32> to vector<2x64xbf16>
    %cst_78 = arith.constant dense<0.000000e+00> : vector<2x256xf32>
    %141 = tpu.matmul %140, %34, %cst_78 {dimension_numbers = #tpu.dot_dimension_numbers<[1], [0], [0], [1], [0, 0, 1, 1], [], []>} : vector<2x64xbf16>, vector<64x256xbf16>, vector<2x256xf32> -> vector<2x256xf32>
    %142 = arith.addf %141, %139 : vector<2x256xf32>
    %143 = math.tanh %142 : vector<2x256xf32>
    %144 = vector.extract_strided_slice %143 {offsets = [0, 0], sizes = [2, 64], strides = [1, 1]} : vector<2x256xf32> to vector<2x64xf32>
    %cst_79 = arith.constant 5.000000e-01 : f32
    %145 = vector.broadcast %cst_79 : f32 to vector<2x64xf32>
    %146 = arith.mulf %144, %145 : vector<2x64xf32>
    %cst_80 = arith.constant 5.000000e-01 : f32
    %147 = vector.broadcast %cst_80 : f32 to vector<2x64xf32>
    %148 = arith.addf %146, %147 : vector<2x64xf32>
    %149 = vector.extract_strided_slice %143 {offsets = [0, 64], sizes = [2, 64], strides = [1, 1]} : vector<2x256xf32> to vector<2x64xf32>
    %cst_81 = arith.constant 5.000000e-01 : f32
    %150 = vector.broadcast %cst_81 : f32 to vector<2x64xf32>
    %151 = arith.mulf %149, %150 : vector<2x64xf32>
    %cst_82 = arith.constant 5.000000e-01 : f32
    %152 = vector.broadcast %cst_82 : f32 to vector<2x64xf32>
    %153 = arith.addf %151, %152 : vector<2x64xf32>
    %154 = vector.extract_strided_slice %143 {offsets = [0, 128], sizes = [2, 64], strides = [1, 1]} : vector<2x256xf32> to vector<2x64xf32>
    %155 = vector.extract_strided_slice %143 {offsets = [0, 192], sizes = [2, 64], strides = [1, 1]} : vector<2x256xf32> to vector<2x64xf32>
    %cst_83 = arith.constant 5.000000e-01 : f32
    %156 = vector.broadcast %cst_83 : f32 to vector<2x64xf32>
    %157 = arith.mulf %155, %156 : vector<2x64xf32>
    %cst_84 = arith.constant 5.000000e-01 : f32
    %158 = vector.broadcast %cst_84 : f32 to vector<2x64xf32>
    %159 = arith.addf %157, %158 : vector<2x64xf32>
    %160 = arith.mulf %153, %130 : vector<2x64xf32>
    %161 = arith.mulf %148, %154 : vector<2x64xf32>
    %162 = arith.addf %160, %161 : vector<2x64xf32>
    %163 = math.tanh %162 : vector<2x64xf32>
    %164 = arith.mulf %159, %163 : vector<2x64xf32>
    %165 = vector.extract_strided_slice %164 {offsets = [0, 0], sizes = [2, 32], strides = [1, 1]} : vector<2x64xf32> to vector<2x32xf32>
    %166 = vector.extract_strided_slice %164 {offsets = [0, 32], sizes = [2, 32], strides = [1, 1]} : vector<2x64xf32> to vector<2x32xf32>
    %c6_85 = arith.constant 6 : index
    %c0_86 = arith.constant 0 : index
    %167 = vector.load %arg15[%c6_85, %c0_86] : memref<16x128xf32, #tpu.memory_space<vmem>>, vector<2x32xf32>
    tpu.vector_store %arg15[%c6_85, %c0_86], %165 {strides = array<i32>} : memref<16x128xf32, #tpu.memory_space<vmem>>, vector<2x32xf32>,
    %c8_87 = arith.constant 8 : index
    %c64_88 = arith.constant 64 : index
    %168 = vector.load %arg15[%c8_87, %c64_88] : memref<16x128xf32, #tpu.memory_space<vmem>>, vector<2x32xf32>
    tpu.vector_store %arg15[%c8_87, %c64_88], %165 {strides = array<i32>} : memref<16x128xf32, #tpu.memory_space<vmem>>, vector<2x32xf32>,
    %c8_89 = arith.constant 8 : index
    %c32_90 = arith.constant 32 : index
    %169 = vector.load %arg15[%c8_89, %c32_90] : memref<16x128xf32, #tpu.memory_space<vmem>>, vector<2x32xf32>
    tpu.vector_store %arg15[%c8_89, %c32_90], %166 {strides = array<i32>} : memref<16x128xf32, #tpu.memory_space<vmem>>, vector<2x32xf32>,
    %c6_91 = arith.constant 6 : index
    %c96_92 = arith.constant 96 : index
    %170 = vector.load %arg15[%c6_91, %c96_92] : memref<16x128xf32, #tpu.memory_space<vmem>>, vector<2x32xf32>
    tpu.vector_store %arg15[%c6_91, %c96_92], %166 {strides = array<i32>} : memref<16x128xf32, #tpu.memory_space<vmem>>, vector<2x32xf32>,
    %171 = vector.extract_strided_slice %40 {offsets = [8, 0], sizes = [2, 256], strides = [1, 1]} : vector<16x256xf32> to vector<2x256xf32>
    %172 = arith.truncf %164 : vector<2x64xf32> to vector<2x64xbf16>
    %cst_93 = arith.constant dense<0.000000e+00> : vector<2x256xf32>
    %173 = tpu.matmul %172, %34, %cst_93 {dimension_numbers = #tpu.dot_dimension_numbers<[1], [0], [0], [1], [0, 0, 1, 1], [], []>} : vector<2x64xbf16>, vector<64x256xbf16>, vector<2x256xf32> -> vector<2x256xf32>
    %174 = arith.addf %173, %171 : vector<2x256xf32>
    %175 = math.tanh %174 : vector<2x256xf32>
    %176 = vector.extract_strided_slice %175 {offsets = [0, 0], sizes = [2, 64], strides = [1, 1]} : vector<2x256xf32> to vector<2x64xf32>
    %cst_94 = arith.constant 5.000000e-01 : f32
    %177 = vector.broadcast %cst_94 : f32 to vector<2x64xf32>
    %178 = arith.mulf %176, %177 : vector<2x64xf32>
    %cst_95 = arith.constant 5.000000e-01 : f32
    %179 = vector.broadcast %cst_95 : f32 to vector<2x64xf32>
    %180 = arith.addf %178, %179 : vector<2x64xf32>
    %181 = vector.extract_strided_slice %175 {offsets = [0, 64], sizes = [2, 64], strides = [1, 1]} : vector<2x256xf32> to vector<2x64xf32>
    %cst_96 = arith.constant 5.000000e-01 : f32
    %182 = vector.broadcast %cst_96 : f32 to vector<2x64xf32>
    %183 = arith.mulf %181, %182 : vector<2x64xf32>
    %cst_97 = arith.constant 5.000000e-01 : f32
    %184 = vector.broadcast %cst_97 : f32 to vector<2x64xf32>
    %185 = arith.addf %183, %184 : vector<2x64xf32>
    %186 = vector.extract_strided_slice %175 {offsets = [0, 128], sizes = [2, 64], strides = [1, 1]} : vector<2x256xf32> to vector<2x64xf32>
    %187 = vector.extract_strided_slice %175 {offsets = [0, 192], sizes = [2, 64], strides = [1, 1]} : vector<2x256xf32> to vector<2x64xf32>
    %cst_98 = arith.constant 5.000000e-01 : f32
    %188 = vector.broadcast %cst_98 : f32 to vector<2x64xf32>
    %189 = arith.mulf %187, %188 : vector<2x64xf32>
    %cst_99 = arith.constant 5.000000e-01 : f32
    %190 = vector.broadcast %cst_99 : f32 to vector<2x64xf32>
    %191 = arith.addf %189, %190 : vector<2x64xf32>
    %192 = arith.mulf %185, %162 : vector<2x64xf32>
    %193 = arith.mulf %180, %186 : vector<2x64xf32>
    %194 = arith.addf %192, %193 : vector<2x64xf32>
    %195 = math.tanh %194 : vector<2x64xf32>
    %196 = arith.mulf %191, %195 : vector<2x64xf32>
    %197 = vector.extract_strided_slice %196 {offsets = [0, 0], sizes = [2, 32], strides = [1, 1]} : vector<2x64xf32> to vector<2x32xf32>
    %198 = vector.extract_strided_slice %196 {offsets = [0, 32], sizes = [2, 32], strides = [1, 1]} : vector<2x64xf32> to vector<2x32xf32>
    %c8_100 = arith.constant 8 : index
    %c0_101 = arith.constant 0 : index
    %199 = vector.load %arg15[%c8_100, %c0_101] : memref<16x128xf32, #tpu.memory_space<vmem>>, vector<2x32xf32>
    tpu.vector_store %arg15[%c8_100, %c0_101], %197 {strides = array<i32>} : memref<16x128xf32, #tpu.memory_space<vmem>>, vector<2x32xf32>,
    %c6_102 = arith.constant 6 : index
    %c64_103 = arith.constant 64 : index
    %200 = vector.load %arg15[%c6_102, %c64_103] : memref<16x128xf32, #tpu.memory_space<vmem>>, vector<2x32xf32>
    tpu.vector_store %arg15[%c6_102, %c64_103], %197 {strides = array<i32>} : memref<16x128xf32, #tpu.memory_space<vmem>>, vector<2x32xf32>,
    %c6_104 = arith.constant 6 : index
    %c32_105 = arith.constant 32 : index
    %201 = vector.load %arg15[%c6_104, %c32_105] : memref<16x128xf32, #tpu.memory_space<vmem>>, vector<2x32xf32>
    tpu.vector_store %arg15[%c6_104, %c32_105], %198 {strides = array<i32>} : memref<16x128xf32, #tpu.memory_space<vmem>>, vector<2x32xf32>,
    %c8_106 = arith.constant 8 : index
    %c96_107 = arith.constant 96 : index
    %202 = vector.load %arg15[%c8_106, %c96_107] : memref<16x128xf32, #tpu.memory_space<vmem>>, vector<2x32xf32>
    tpu.vector_store %arg15[%c8_106, %c96_107], %198 {strides = array<i32>} : memref<16x128xf32, #tpu.memory_space<vmem>>, vector<2x32xf32>,
    %203 = vector.extract_strided_slice %40 {offsets = [10, 0], sizes = [2, 256], strides = [1, 1]} : vector<16x256xf32> to vector<2x256xf32>
    %204 = arith.truncf %196 : vector<2x64xf32> to vector<2x64xbf16>
    %cst_108 = arith.constant dense<0.000000e+00> : vector<2x256xf32>
    %205 = tpu.matmul %204, %34, %cst_108 {dimension_numbers = #tpu.dot_dimension_numbers<[1], [0], [0], [1], [0, 0, 1, 1], [], []>} : vector<2x64xbf16>, vector<64x256xbf16>, vector<2x256xf32> -> vector<2x256xf32>
    %206 = arith.addf %205, %203 : vector<2x256xf32>
    %207 = math.tanh %206 : vector<2x256xf32>
    %208 = vector.extract_strided_slice %207 {offsets = [0, 0], sizes = [2, 64], strides = [1, 1]} : vector<2x256xf32> to vector<2x64xf32>
    %cst_109 = arith.constant 5.000000e-01 : f32
    %209 = vector.broadcast %cst_109 : f32 to vector<2x64xf32>
    %210 = arith.mulf %208, %209 : vector<2x64xf32>
    %cst_110 = arith.constant 5.000000e-01 : f32
    %211 = vector.broadcast %cst_110 : f32 to vector<2x64xf32>
    %212 = arith.addf %210, %211 : vector<2x64xf32>
    %213 = vector.extract_strided_slice %207 {offsets = [0, 64], sizes = [2, 64], strides = [1, 1]} : vector<2x256xf32> to vector<2x64xf32>
    %cst_111 = arith.constant 5.000000e-01 : f32
    %214 = vector.broadcast %cst_111 : f32 to vector<2x64xf32>
    %215 = arith.mulf %213, %214 : vector<2x64xf32>
    %cst_112 = arith.constant 5.000000e-01 : f32
    %216 = vector.broadcast %cst_112 : f32 to vector<2x64xf32>
    %217 = arith.addf %215, %216 : vector<2x64xf32>
    %218 = vector.extract_strided_slice %207 {offsets = [0, 128], sizes = [2, 64], strides = [1, 1]} : vector<2x256xf32> to vector<2x64xf32>
    %219 = vector.extract_strided_slice %207 {offsets = [0, 192], sizes = [2, 64], strides = [1, 1]} : vector<2x256xf32> to vector<2x64xf32>
    %cst_113 = arith.constant 5.000000e-01 : f32
    %220 = vector.broadcast %cst_113 : f32 to vector<2x64xf32>
    %221 = arith.mulf %219, %220 : vector<2x64xf32>
    %cst_114 = arith.constant 5.000000e-01 : f32
    %222 = vector.broadcast %cst_114 : f32 to vector<2x64xf32>
    %223 = arith.addf %221, %222 : vector<2x64xf32>
    %224 = arith.mulf %217, %194 : vector<2x64xf32>
    %225 = arith.mulf %212, %218 : vector<2x64xf32>
    %226 = arith.addf %224, %225 : vector<2x64xf32>
    %227 = math.tanh %226 : vector<2x64xf32>
    %228 = arith.mulf %223, %227 : vector<2x64xf32>
    %229 = vector.extract_strided_slice %228 {offsets = [0, 0], sizes = [2, 32], strides = [1, 1]} : vector<2x64xf32> to vector<2x32xf32>
    %230 = vector.extract_strided_slice %228 {offsets = [0, 32], sizes = [2, 32], strides = [1, 1]} : vector<2x64xf32> to vector<2x32xf32>
    %c10_115 = arith.constant 10 : index
    %c0_116 = arith.constant 0 : index
    %231 = vector.load %arg15[%c10_115, %c0_116] : memref<16x128xf32, #tpu.memory_space<vmem>>, vector<2x32xf32>
    tpu.vector_store %arg15[%c10_115, %c0_116], %229 {strides = array<i32>} : memref<16x128xf32, #tpu.memory_space<vmem>>, vector<2x32xf32>,
    %c4_117 = arith.constant 4 : index
    %c64_118 = arith.constant 64 : index
    %232 = vector.load %arg15[%c4_117, %c64_118] : memref<16x128xf32, #tpu.memory_space<vmem>>, vector<2x32xf32>
    tpu.vector_store %arg15[%c4_117, %c64_118], %229 {strides = array<i32>} : memref<16x128xf32, #tpu.memory_space<vmem>>, vector<2x32xf32>,
    %c4_119 = arith.constant 4 : index
    %c32_120 = arith.constant 32 : index
    %233 = vector.load %arg15[%c4_119, %c32_120] : memref<16x128xf32, #tpu.memory_space<vmem>>, vector<2x32xf32>
    tpu.vector_store %arg15[%c4_119, %c32_120], %230 {strides = array<i32>} : memref<16x128xf32, #tpu.memory_space<vmem>>, vector<2x32xf32>,
    %c10_121 = arith.constant 10 : index
    %c96_122 = arith.constant 96 : index
    %234 = vector.load %arg15[%c10_121, %c96_122] : memref<16x128xf32, #tpu.memory_space<vmem>>, vector<2x32xf32>
    tpu.vector_store %arg15[%c10_121, %c96_122], %230 {strides = array<i32>} : memref<16x128xf32, #tpu.memory_space<vmem>>, vector<2x32xf32>,
    %235 = vector.extract_strided_slice %40 {offsets = [12, 0], sizes = [2, 256], strides = [1, 1]} : vector<16x256xf32> to vector<2x256xf32>
    %236 = arith.truncf %228 : vector<2x64xf32> to vector<2x64xbf16>
    %cst_123 = arith.constant dense<0.000000e+00> : vector<2x256xf32>
    %237 = tpu.matmul %236, %34, %cst_123 {dimension_numbers = #tpu.dot_dimension_numbers<[1], [0], [0], [1], [0, 0, 1, 1], [], []>} : vector<2x64xbf16>, vector<64x256xbf16>, vector<2x256xf32> -> vector<2x256xf32>
    %238 = arith.addf %237, %235 : vector<2x256xf32>
    %239 = math.tanh %238 : vector<2x256xf32>
    %240 = vector.extract_strided_slice %239 {offsets = [0, 0], sizes = [2, 64], strides = [1, 1]} : vector<2x256xf32> to vector<2x64xf32>
    %cst_124 = arith.constant 5.000000e-01 : f32
    %241 = vector.broadcast %cst_124 : f32 to vector<2x64xf32>
    %242 = arith.mulf %240, %241 : vector<2x64xf32>
    %cst_125 = arith.constant 5.000000e-01 : f32
    %243 = vector.broadcast %cst_125 : f32 to vector<2x64xf32>
    %244 = arith.addf %242, %243 : vector<2x64xf32>
    %245 = vector.extract_strided_slice %239 {offsets = [0, 64], sizes = [2, 64], strides = [1, 1]} : vector<2x256xf32> to vector<2x64xf32>
    %cst_126 = arith.constant 5.000000e-01 : f32
    %246 = vector.broadcast %cst_126 : f32 to vector<2x64xf32>
    %247 = arith.mulf %245, %246 : vector<2x64xf32>
    %cst_127 = arith.constant 5.000000e-01 : f32
    %248 = vector.broadcast %cst_127 : f32 to vector<2x64xf32>
    %249 = arith.addf %247, %248 : vector<2x64xf32>
    %250 = vector.extract_strided_slice %239 {offsets = [0, 128], sizes = [2, 64], strides = [1, 1]} : vector<2x256xf32> to vector<2x64xf32>
    %251 = vector.extract_strided_slice %239 {offsets = [0, 192], sizes = [2, 64], strides = [1, 1]} : vector<2x256xf32> to vector<2x64xf32>
    %cst_128 = arith.constant 5.000000e-01 : f32
    %252 = vector.broadcast %cst_128 : f32 to vector<2x64xf32>
    %253 = arith.mulf %251, %252 : vector<2x64xf32>
    %cst_129 = arith.constant 5.000000e-01 : f32
    %254 = vector.broadcast %cst_129 : f32 to vector<2x64xf32>
    %255 = arith.addf %253, %254 : vector<2x64xf32>
    %256 = arith.mulf %249, %226 : vector<2x64xf32>
    %257 = arith.mulf %244, %250 : vector<2x64xf32>
    %258 = arith.addf %256, %257 : vector<2x64xf32>
    %259 = math.tanh %258 : vector<2x64xf32>
    %260 = arith.mulf %255, %259 : vector<2x64xf32>
    %261 = vector.extract_strided_slice %260 {offsets = [0, 0], sizes = [2, 32], strides = [1, 1]} : vector<2x64xf32> to vector<2x32xf32>
    %262 = vector.extract_strided_slice %260 {offsets = [0, 32], sizes = [2, 32], strides = [1, 1]} : vector<2x64xf32> to vector<2x32xf32>
    %c12_130 = arith.constant 12 : index
    %c0_131 = arith.constant 0 : index
    %263 = vector.load %arg15[%c12_130, %c0_131] : memref<16x128xf32, #tpu.memory_space<vmem>>, vector<2x32xf32>
    tpu.vector_store %arg15[%c12_130, %c0_131], %261 {strides = array<i32>} : memref<16x128xf32, #tpu.memory_space<vmem>>, vector<2x32xf32>,
    %c2_132 = arith.constant 2 : index
    %c64_133 = arith.constant 64 : index
    %264 = vector.load %arg15[%c2_132, %c64_133] : memref<16x128xf32, #tpu.memory_space<vmem>>, vector<2x32xf32>
    tpu.vector_store %arg15[%c2_132, %c64_133], %261 {strides = array<i32>} : memref<16x128xf32, #tpu.memory_space<vmem>>, vector<2x32xf32>,
    %c2_134 = arith.constant 2 : index
    %c32_135 = arith.constant 32 : index
    %265 = vector.load %arg15[%c2_134, %c32_135] : memref<16x128xf32, #tpu.memory_space<vmem>>, vector<2x32xf32>
    tpu.vector_store %arg15[%c2_134, %c32_135], %262 {strides = array<i32>} : memref<16x128xf32, #tpu.memory_space<vmem>>, vector<2x32xf32>,
    %c12_136 = arith.constant 12 : index
    %c96_137 = arith.constant 96 : index
    %266 = vector.load %arg15[%c12_136, %c96_137] : memref<16x128xf32, #tpu.memory_space<vmem>>, vector<2x32xf32>
    tpu.vector_store %arg15[%c12_136, %c96_137], %262 {strides = array<i32>} : memref<16x128xf32, #tpu.memory_space<vmem>>, vector<2x32xf32>,
    %267 = vector.extract_strided_slice %40 {offsets = [14, 0], sizes = [2, 256], strides = [1, 1]} : vector<16x256xf32> to vector<2x256xf32>
    %268 = arith.truncf %260 : vector<2x64xf32> to vector<2x64xbf16>
    %cst_138 = arith.constant dense<0.000000e+00> : vector<2x256xf32>
    %269 = tpu.matmul %268, %34, %cst_138 {dimension_numbers = #tpu.dot_dimension_numbers<[1], [0], [0], [1], [0, 0, 1, 1], [], []>} : vector<2x64xbf16>, vector<64x256xbf16>, vector<2x256xf32> -> vector<2x256xf32>
    %270 = arith.addf %269, %267 : vector<2x256xf32>
    %271 = math.tanh %270 : vector<2x256xf32>
    %272 = vector.extract_strided_slice %271 {offsets = [0, 0], sizes = [2, 64], strides = [1, 1]} : vector<2x256xf32> to vector<2x64xf32>
    %cst_139 = arith.constant 5.000000e-01 : f32
    %273 = vector.broadcast %cst_139 : f32 to vector<2x64xf32>
    %274 = arith.mulf %272, %273 : vector<2x64xf32>
    %cst_140 = arith.constant 5.000000e-01 : f32
    %275 = vector.broadcast %cst_140 : f32 to vector<2x64xf32>
    %276 = arith.addf %274, %275 : vector<2x64xf32>
    %277 = vector.extract_strided_slice %271 {offsets = [0, 64], sizes = [2, 64], strides = [1, 1]} : vector<2x256xf32> to vector<2x64xf32>
    %cst_141 = arith.constant 5.000000e-01 : f32
    %278 = vector.broadcast %cst_141 : f32 to vector<2x64xf32>
    %279 = arith.mulf %277, %278 : vector<2x64xf32>
    %cst_142 = arith.constant 5.000000e-01 : f32
    %280 = vector.broadcast %cst_142 : f32 to vector<2x64xf32>
    %281 = arith.addf %279, %280 : vector<2x64xf32>
    %282 = vector.extract_strided_slice %271 {offsets = [0, 128], sizes = [2, 64], strides = [1, 1]} : vector<2x256xf32> to vector<2x64xf32>
    %283 = vector.extract_strided_slice %271 {offsets = [0, 192], sizes = [2, 64], strides = [1, 1]} : vector<2x256xf32> to vector<2x64xf32>
    %cst_143 = arith.constant 5.000000e-01 : f32
    %284 = vector.broadcast %cst_143 : f32 to vector<2x64xf32>
    %285 = arith.mulf %283, %284 : vector<2x64xf32>
    %cst_144 = arith.constant 5.000000e-01 : f32
    %286 = vector.broadcast %cst_144 : f32 to vector<2x64xf32>
    %287 = arith.addf %285, %286 : vector<2x64xf32>
    %288 = arith.mulf %281, %258 : vector<2x64xf32>
    %289 = arith.mulf %276, %282 : vector<2x64xf32>
    %290 = arith.addf %288, %289 : vector<2x64xf32>
    %291 = math.tanh %290 : vector<2x64xf32>
    %292 = arith.mulf %287, %291 : vector<2x64xf32>
    %293 = vector.extract_strided_slice %292 {offsets = [0, 0], sizes = [2, 32], strides = [1, 1]} : vector<2x64xf32> to vector<2x32xf32>
    %294 = vector.extract_strided_slice %292 {offsets = [0, 32], sizes = [2, 32], strides = [1, 1]} : vector<2x64xf32> to vector<2x32xf32>
    %c14_145 = arith.constant 14 : index
    %c0_146 = arith.constant 0 : index
    %295 = vector.load %arg15[%c14_145, %c0_146] : memref<16x128xf32, #tpu.memory_space<vmem>>, vector<2x32xf32>
    tpu.vector_store %arg15[%c14_145, %c0_146], %293 {strides = array<i32>} : memref<16x128xf32, #tpu.memory_space<vmem>>, vector<2x32xf32>,
    %c0_147 = arith.constant 0 : index
    %c64_148 = arith.constant 64 : index
    %296 = vector.load %arg15[%c0_147, %c64_148] : memref<16x128xf32, #tpu.memory_space<vmem>>, vector<2x32xf32>
    tpu.vector_store %arg15[%c0_147, %c64_148], %293 {strides = array<i32>} : memref<16x128xf32, #tpu.memory_space<vmem>>, vector<2x32xf32>,
    %c0_149 = arith.constant 0 : index
    %c32_150 = arith.constant 32 : index
    %297 = vector.load %arg15[%c0_149, %c32_150] : memref<16x128xf32, #tpu.memory_space<vmem>>, vector<2x32xf32>
    tpu.vector_store %arg15[%c0_149, %c32_150], %294 {strides = array<i32>} : memref<16x128xf32, #tpu.memory_space<vmem>>, vector<2x32xf32>,
    %c14_151 = arith.constant 14 : index
    %c96_152 = arith.constant 96 : index
    %298 = vector.load %arg15[%c14_151, %c96_152] : memref<16x128xf32, #tpu.memory_space<vmem>>, vector<2x32xf32>
    tpu.vector_store %arg15[%c14_151, %c96_152], %294 {strides = array<i32>} : memref<16x128xf32, #tpu.memory_space<vmem>>, vector<2x32xf32>,
    %299 = vector.extract_strided_slice %292 {offsets = [0, 0], sizes = [2, 32], strides = [1, 1]} : vector<2x64xf32> to vector<2x32xf32>
    %c0_153 = arith.constant 0 : index
    %c0_154 = arith.constant 0 : index
    %c0_155 = arith.constant 0 : index
    %300 = vector.load %arg12[%c0_153, %c0_154, %c0_155] : memref<4x2x32xf32, #tpu.memory_space<vmem>>, vector<1x2x32xf32>
    %301 = vector.shape_cast %300 : vector<1x2x32xf32> to vector<2x32xf32>
    %302 = vector.shape_cast %299 : vector<2x32xf32> to vector<1x2x32xf32>
    tpu.vector_store %arg12[%c0_153, %c0_154, %c0_155], %302 {strides = array<i32>} : memref<4x2x32xf32, #tpu.memory_space<vmem>>, vector<1x2x32xf32>,
    %303 = vector.extract_strided_slice %292 {offsets = [0, 32], sizes = [2, 32], strides = [1, 1]} : vector<2x64xf32> to vector<2x32xf32>
    %c1 = arith.constant 1 : index
    %c0_156 = arith.constant 0 : index
    %c0_157 = arith.constant 0 : index
    %304 = vector.load %arg12[%c1, %c0_156, %c0_157] : memref<4x2x32xf32, #tpu.memory_space<vmem>>, vector<1x2x32xf32>
    %305 = vector.shape_cast %304 : vector<1x2x32xf32> to vector<2x32xf32>
    %306 = vector.shape_cast %303 : vector<2x32xf32> to vector<1x2x32xf32>
    tpu.vector_store %arg12[%c1, %c0_156, %c0_157], %306 {strides = array<i32>} : memref<4x2x32xf32, #tpu.memory_space<vmem>>, vector<1x2x32xf32>,
    %307 = vector.extract_strided_slice %290 {offsets = [0, 0], sizes = [2, 32], strides = [1, 1]} : vector<2x64xf32> to vector<2x32xf32>
    %c0_158 = arith.constant 0 : index
    %c0_159 = arith.constant 0 : index
    %c0_160 = arith.constant 0 : index
    %308 = vector.load %arg13[%c0_158, %c0_159, %c0_160] : memref<4x2x32xf32, #tpu.memory_space<vmem>>, vector<1x2x32xf32>
    %309 = vector.shape_cast %308 : vector<1x2x32xf32> to vector<2x32xf32>
    %310 = vector.shape_cast %307 : vector<2x32xf32> to vector<1x2x32xf32>
    tpu.vector_store %arg13[%c0_158, %c0_159, %c0_160], %310 {strides = array<i32>} : memref<4x2x32xf32, #tpu.memory_space<vmem>>, vector<1x2x32xf32>,
    %311 = vector.extract_strided_slice %290 {offsets = [0, 32], sizes = [2, 32], strides = [1, 1]} : vector<2x64xf32> to vector<2x32xf32>
    %c1_161 = arith.constant 1 : index
    %c0_162 = arith.constant 0 : index
    %c0_163 = arith.constant 0 : index
    %312 = vector.load %arg13[%c1_161, %c0_162, %c0_163] : memref<4x2x32xf32, #tpu.memory_space<vmem>>, vector<1x2x32xf32>
    %313 = vector.shape_cast %312 : vector<1x2x32xf32> to vector<2x32xf32>
    %314 = vector.shape_cast %311 : vector<2x32xf32> to vector<1x2x32xf32>
    tpu.vector_store %arg13[%c1_161, %c0_162, %c0_163], %314 {strides = array<i32>} : memref<4x2x32xf32, #tpu.memory_space<vmem>>, vector<1x2x32xf32>,
    %c0_164 = arith.constant 0 : index
    %c0_165 = arith.constant 0 : index
    %315 = vector.load %arg4[%c0_164, %c0_165] : memref<128x256xbf16, #tpu.memory_space<vmem>>, vector<128x256xbf16>
    %c0_166 = arith.constant 0 : index
    %c0_167 = arith.constant 0 : index
    %316 = vector.load %arg5[%c0_166, %c0_167] : memref<64x256xbf16, #tpu.memory_space<vmem>>, vector<64x256xbf16>
    %c0_168 = arith.constant 0 : index
    %c0_169 = arith.constant 0 : index
    %317 = vector.load %arg6[%c0_168, %c0_169] : memref<1x256xf32, #tpu.memory_space<vmem>>, vector<1x256xf32>
    %c0_170 = arith.constant 0 : index
    %c0_171 = arith.constant 0 : index
    %318 = vector.load %arg15[%c0_170, %c0_171] : memref<16x128xf32, #tpu.memory_space<vmem>>, vector<16x128xf32>
    %319 = arith.truncf %318 : vector<16x128xf32> to vector<16x128xbf16>
    %cst_172 = arith.constant dense<0.000000e+00> : vector<16x256xf32>
    %320 = tpu.matmul %319, %315, %cst_172 {dimension_numbers = #tpu.dot_dimension_numbers<[1], [0], [0], [1], [0, 0, 1, 1], [], []>} : vector<16x128xbf16>, vector<128x256xbf16>, vector<16x256xf32> -> vector<16x256xf32>
    %321 = vector.broadcast %317 : vector<1x256xf32> to vector<16x256xf32>
    %322 = arith.addf %320, %321 : vector<16x256xf32>
    %cst_173 = arith.constant 0.000000e+00 : f32
    %323 = vector.broadcast %cst_173 : f32 to vector<2x64xf32>
    %cst_174 = arith.constant 0.000000e+00 : f32
    %324 = vector.broadcast %cst_174 : f32 to vector<2x64xf32>
    %325 = vector.extract_strided_slice %322 {offsets = [0, 0], sizes = [2, 256], strides = [1, 1]} : vector<16x256xf32> to vector<2x256xf32>
    %326 = arith.truncf %323 : vector<2x64xf32> to vector<2x64xbf16>
    %cst_175 = arith.constant dense<0.000000e+00> : vector<2x256xf32>
    %327 = tpu.matmul %326, %316, %cst_175 {dimension_numbers = #tpu.dot_dimension_numbers<[1], [0], [0], [1], [0, 0, 1, 1], [], []>} : vector<2x64xbf16>, vector<64x256xbf16>, vector<2x256xf32> -> vector<2x256xf32>
    %328 = arith.addf %327, %325 : vector<2x256xf32>
    %329 = math.tanh %328 : vector<2x256xf32>
    %330 = vector.extract_strided_slice %329 {offsets = [0, 0], sizes = [2, 64], strides = [1, 1]} : vector<2x256xf32> to vector<2x64xf32>
    %cst_176 = arith.constant 5.000000e-01 : f32
    %331 = vector.broadcast %cst_176 : f32 to vector<2x64xf32>
    %332 = arith.mulf %330, %331 : vector<2x64xf32>
    %cst_177 = arith.constant 5.000000e-01 : f32
    %333 = vector.broadcast %cst_177 : f32 to vector<2x64xf32>
    %334 = arith.addf %332, %333 : vector<2x64xf32>
    %335 = vector.extract_strided_slice %329 {offsets = [0, 64], sizes = [2, 64], strides = [1, 1]} : vector<2x256xf32> to vector<2x64xf32>
    %cst_178 = arith.constant 5.000000e-01 : f32
    %336 = vector.broadcast %cst_178 : f32 to vector<2x64xf32>
    %337 = arith.mulf %335, %336 : vector<2x64xf32>
    %cst_179 = arith.constant 5.000000e-01 : f32
    %338 = vector.broadcast %cst_179 : f32 to vector<2x64xf32>
    %339 = arith.addf %337, %338 : vector<2x64xf32>
    %340 = vector.extract_strided_slice %329 {offsets = [0, 128], sizes = [2, 64], strides = [1, 1]} : vector<2x256xf32> to vector<2x64xf32>
    %341 = vector.extract_strided_slice %329 {offsets = [0, 192], sizes = [2, 64], strides = [1, 1]} : vector<2x256xf32> to vector<2x64xf32>
    %cst_180 = arith.constant 5.000000e-01 : f32
    %342 = vector.broadcast %cst_180 : f32 to vector<2x64xf32>
    %343 = arith.mulf %341, %342 : vector<2x64xf32>
    %cst_181 = arith.constant 5.000000e-01 : f32
    %344 = vector.broadcast %cst_181 : f32 to vector<2x64xf32>
    %345 = arith.addf %343, %344 : vector<2x64xf32>
    %346 = arith.mulf %339, %324 : vector<2x64xf32>
    %347 = arith.mulf %334, %340 : vector<2x64xf32>
    %348 = arith.addf %346, %347 : vector<2x64xf32>
    %349 = math.tanh %348 : vector<2x64xf32>
    %350 = arith.mulf %345, %349 : vector<2x64xf32>
    %351 = vector.extract_strided_slice %350 {offsets = [1, 0], sizes = [1, 32], strides = [1, 1]} : vector<2x64xf32> to vector<1x32xf32>
    %c0_182 = arith.constant 0 : index
    %c0_183 = arith.constant 0 : index
    %352 = vector.load %arg16[%c0_182, %c0_183] : memref<8x64xf32, #tpu.memory_space<vmem>>, vector<1x32xf32>
    tpu.vector_store %arg16[%c0_182, %c0_183], %351 {strides = array<i32>} : memref<8x64xf32, #tpu.memory_space<vmem>>, vector<1x32xf32>,
    %353 = vector.extract_strided_slice %350 {offsets = [0, 0], sizes = [1, 32], strides = [1, 1]} : vector<2x64xf32> to vector<1x32xf32>
    %c0_184 = arith.constant 0 : index
    %c32_185 = arith.constant 32 : index
    %354 = vector.load %arg16[%c0_184, %c32_185] : memref<8x64xf32, #tpu.memory_space<vmem>>, vector<1x32xf32>
    tpu.vector_store %arg16[%c0_184, %c32_185], %353 {strides = array<i32>} : memref<8x64xf32, #tpu.memory_space<vmem>>, vector<1x32xf32>,
    %355 = vector.extract_strided_slice %322 {offsets = [2, 0], sizes = [2, 256], strides = [1, 1]} : vector<16x256xf32> to vector<2x256xf32>
    %356 = arith.truncf %350 : vector<2x64xf32> to vector<2x64xbf16>
    %cst_186 = arith.constant dense<0.000000e+00> : vector<2x256xf32>
    %357 = tpu.matmul %356, %316, %cst_186 {dimension_numbers = #tpu.dot_dimension_numbers<[1], [0], [0], [1], [0, 0, 1, 1], [], []>} : vector<2x64xbf16>, vector<64x256xbf16>, vector<2x256xf32> -> vector<2x256xf32>
    %358 = arith.addf %357, %355 : vector<2x256xf32>
    %359 = math.tanh %358 : vector<2x256xf32>
    %360 = vector.extract_strided_slice %359 {offsets = [0, 0], sizes = [2, 64], strides = [1, 1]} : vector<2x256xf32> to vector<2x64xf32>
    %cst_187 = arith.constant 5.000000e-01 : f32
    %361 = vector.broadcast %cst_187 : f32 to vector<2x64xf32>
    %362 = arith.mulf %360, %361 : vector<2x64xf32>
    %cst_188 = arith.constant 5.000000e-01 : f32
    %363 = vector.broadcast %cst_188 : f32 to vector<2x64xf32>
    %364 = arith.addf %362, %363 : vector<2x64xf32>
    %365 = vector.extract_strided_slice %359 {offsets = [0, 64], sizes = [2, 64], strides = [1, 1]} : vector<2x256xf32> to vector<2x64xf32>
    %cst_189 = arith.constant 5.000000e-01 : f32
    %366 = vector.broadcast %cst_189 : f32 to vector<2x64xf32>
    %367 = arith.mulf %365, %366 : vector<2x64xf32>
    %cst_190 = arith.constant 5.000000e-01 : f32
    %368 = vector.broadcast %cst_190 : f32 to vector<2x64xf32>
    %369 = arith.addf %367, %368 : vector<2x64xf32>
    %370 = vector.extract_strided_slice %359 {offsets = [0, 128], sizes = [2, 64], strides = [1, 1]} : vector<2x256xf32> to vector<2x64xf32>
    %371 = vector.extract_strided_slice %359 {offsets = [0, 192], sizes = [2, 64], strides = [1, 1]} : vector<2x256xf32> to vector<2x64xf32>
    %cst_191 = arith.constant 5.000000e-01 : f32
    %372 = vector.broadcast %cst_191 : f32 to vector<2x64xf32>
    %373 = arith.mulf %371, %372 : vector<2x64xf32>
    %cst_192 = arith.constant 5.000000e-01 : f32
    %374 = vector.broadcast %cst_192 : f32 to vector<2x64xf32>
    %375 = arith.addf %373, %374 : vector<2x64xf32>
    %376 = arith.mulf %369, %348 : vector<2x64xf32>
    %377 = arith.mulf %364, %370 : vector<2x64xf32>
    %378 = arith.addf %376, %377 : vector<2x64xf32>
    %379 = math.tanh %378 : vector<2x64xf32>
    %380 = arith.mulf %375, %379 : vector<2x64xf32>
    %381 = vector.extract_strided_slice %380 {offsets = [1, 0], sizes = [1, 32], strides = [1, 1]} : vector<2x64xf32> to vector<1x32xf32>
    %c1_193 = arith.constant 1 : index
    %c0_194 = arith.constant 0 : index
    %382 = vector.load %arg16[%c1_193, %c0_194] : memref<8x64xf32, #tpu.memory_space<vmem>>, vector<1x32xf32>
    tpu.vector_store %arg16[%c1_193, %c0_194], %381 {strides = array<i32>} : memref<8x64xf32, #tpu.memory_space<vmem>>, vector<1x32xf32>,
    %383 = vector.extract_strided_slice %380 {offsets = [0, 0], sizes = [1, 32], strides = [1, 1]} : vector<2x64xf32> to vector<1x32xf32>
    %c1_195 = arith.constant 1 : index
    %c32_196 = arith.constant 32 : index
    %384 = vector.load %arg16[%c1_195, %c32_196] : memref<8x64xf32, #tpu.memory_space<vmem>>, vector<1x32xf32>
    tpu.vector_store %arg16[%c1_195, %c32_196], %383 {strides = array<i32>} : memref<8x64xf32, #tpu.memory_space<vmem>>, vector<1x32xf32>,
    %385 = vector.extract_strided_slice %322 {offsets = [4, 0], sizes = [2, 256], strides = [1, 1]} : vector<16x256xf32> to vector<2x256xf32>
    %386 = arith.truncf %380 : vector<2x64xf32> to vector<2x64xbf16>
    %cst_197 = arith.constant dense<0.000000e+00> : vector<2x256xf32>
    %387 = tpu.matmul %386, %316, %cst_197 {dimension_numbers = #tpu.dot_dimension_numbers<[1], [0], [0], [1], [0, 0, 1, 1], [], []>} : vector<2x64xbf16>, vector<64x256xbf16>, vector<2x256xf32> -> vector<2x256xf32>
    %388 = arith.addf %387, %385 : vector<2x256xf32>
    %389 = math.tanh %388 : vector<2x256xf32>
    %390 = vector.extract_strided_slice %389 {offsets = [0, 0], sizes = [2, 64], strides = [1, 1]} : vector<2x256xf32> to vector<2x64xf32>
    %cst_198 = arith.constant 5.000000e-01 : f32
    %391 = vector.broadcast %cst_198 : f32 to vector<2x64xf32>
    %392 = arith.mulf %390, %391 : vector<2x64xf32>
    %cst_199 = arith.constant 5.000000e-01 : f32
    %393 = vector.broadcast %cst_199 : f32 to vector<2x64xf32>
    %394 = arith.addf %392, %393 : vector<2x64xf32>
    %395 = vector.extract_strided_slice %389 {offsets = [0, 64], sizes = [2, 64], strides = [1, 1]} : vector<2x256xf32> to vector<2x64xf32>
    %cst_200 = arith.constant 5.000000e-01 : f32
    %396 = vector.broadcast %cst_200 : f32 to vector<2x64xf32>
    %397 = arith.mulf %395, %396 : vector<2x64xf32>
    %cst_201 = arith.constant 5.000000e-01 : f32
    %398 = vector.broadcast %cst_201 : f32 to vector<2x64xf32>
    %399 = arith.addf %397, %398 : vector<2x64xf32>
    %400 = vector.extract_strided_slice %389 {offsets = [0, 128], sizes = [2, 64], strides = [1, 1]} : vector<2x256xf32> to vector<2x64xf32>
    %401 = vector.extract_strided_slice %389 {offsets = [0, 192], sizes = [2, 64], strides = [1, 1]} : vector<2x256xf32> to vector<2x64xf32>
    %cst_202 = arith.constant 5.000000e-01 : f32
    %402 = vector.broadcast %cst_202 : f32 to vector<2x64xf32>
    %403 = arith.mulf %401, %402 : vector<2x64xf32>
    %cst_203 = arith.constant 5.000000e-01 : f32
    %404 = vector.broadcast %cst_203 : f32 to vector<2x64xf32>
    %405 = arith.addf %403, %404 : vector<2x64xf32>
    %406 = arith.mulf %399, %378 : vector<2x64xf32>
    %407 = arith.mulf %394, %400 : vector<2x64xf32>
    %408 = arith.addf %406, %407 : vector<2x64xf32>
    %409 = math.tanh %408 : vector<2x64xf32>
    %410 = arith.mulf %405, %409 : vector<2x64xf32>
    %411 = vector.extract_strided_slice %410 {offsets = [1, 0], sizes = [1, 32], strides = [1, 1]} : vector<2x64xf32> to vector<1x32xf32>
    %c2_204 = arith.constant 2 : index
    %c0_205 = arith.constant 0 : index
    %412 = vector.load %arg16[%c2_204, %c0_205] : memref<8x64xf32, #tpu.memory_space<vmem>>, vector<1x32xf32>
    tpu.vector_store %arg16[%c2_204, %c0_205], %411 {strides = array<i32>} : memref<8x64xf32, #tpu.memory_space<vmem>>, vector<1x32xf32>,
    %413 = vector.extract_strided_slice %410 {offsets = [0, 0], sizes = [1, 32], strides = [1, 1]} : vector<2x64xf32> to vector<1x32xf32>
    %c2_206 = arith.constant 2 : index
    %c32_207 = arith.constant 32 : index
    %414 = vector.load %arg16[%c2_206, %c32_207] : memref<8x64xf32, #tpu.memory_space<vmem>>, vector<1x32xf32>
    tpu.vector_store %arg16[%c2_206, %c32_207], %413 {strides = array<i32>} : memref<8x64xf32, #tpu.memory_space<vmem>>, vector<1x32xf32>,
    %415 = vector.extract_strided_slice %322 {offsets = [6, 0], sizes = [2, 256], strides = [1, 1]} : vector<16x256xf32> to vector<2x256xf32>
    %416 = arith.truncf %410 : vector<2x64xf32> to vector<2x64xbf16>
    %cst_208 = arith.constant dense<0.000000e+00> : vector<2x256xf32>
    %417 = tpu.matmul %416, %316, %cst_208 {dimension_numbers = #tpu.dot_dimension_numbers<[1], [0], [0], [1], [0, 0, 1, 1], [], []>} : vector<2x64xbf16>, vector<64x256xbf16>, vector<2x256xf32> -> vector<2x256xf32>
    %418 = arith.addf %417, %415 : vector<2x256xf32>
    %419 = math.tanh %418 : vector<2x256xf32>
    %420 = vector.extract_strided_slice %419 {offsets = [0, 0], sizes = [2, 64], strides = [1, 1]} : vector<2x256xf32> to vector<2x64xf32>
    %cst_209 = arith.constant 5.000000e-01 : f32
    %421 = vector.broadcast %cst_209 : f32 to vector<2x64xf32>
    %422 = arith.mulf %420, %421 : vector<2x64xf32>
    %cst_210 = arith.constant 5.000000e-01 : f32
    %423 = vector.broadcast %cst_210 : f32 to vector<2x64xf32>
    %424 = arith.addf %422, %423 : vector<2x64xf32>
    %425 = vector.extract_strided_slice %419 {offsets = [0, 64], sizes = [2, 64], strides = [1, 1]} : vector<2x256xf32> to vector<2x64xf32>
    %cst_211 = arith.constant 5.000000e-01 : f32
    %426 = vector.broadcast %cst_211 : f32 to vector<2x64xf32>
    %427 = arith.mulf %425, %426 : vector<2x64xf32>
    %cst_212 = arith.constant 5.000000e-01 : f32
    %428 = vector.broadcast %cst_212 : f32 to vector<2x64xf32>
    %429 = arith.addf %427, %428 : vector<2x64xf32>
    %430 = vector.extract_strided_slice %419 {offsets = [0, 128], sizes = [2, 64], strides = [1, 1]} : vector<2x256xf32> to vector<2x64xf32>
    %431 = vector.extract_strided_slice %419 {offsets = [0, 192], sizes = [2, 64], strides = [1, 1]} : vector<2x256xf32> to vector<2x64xf32>
    %cst_213 = arith.constant 5.000000e-01 : f32
    %432 = vector.broadcast %cst_213 : f32 to vector<2x64xf32>
    %433 = arith.mulf %431, %432 : vector<2x64xf32>
    %cst_214 = arith.constant 5.000000e-01 : f32
    %434 = vector.broadcast %cst_214 : f32 to vector<2x64xf32>
    %435 = arith.addf %433, %434 : vector<2x64xf32>
    %436 = arith.mulf %429, %408 : vector<2x64xf32>
    %437 = arith.mulf %424, %430 : vector<2x64xf32>
    %438 = arith.addf %436, %437 : vector<2x64xf32>
    %439 = math.tanh %438 : vector<2x64xf32>
    %440 = arith.mulf %435, %439 : vector<2x64xf32>
    %441 = vector.extract_strided_slice %440 {offsets = [1, 0], sizes = [1, 32], strides = [1, 1]} : vector<2x64xf32> to vector<1x32xf32>
    %c3 = arith.constant 3 : index
    %c0_215 = arith.constant 0 : index
    %442 = vector.load %arg16[%c3, %c0_215] : memref<8x64xf32, #tpu.memory_space<vmem>>, vector<1x32xf32>
    tpu.vector_store %arg16[%c3, %c0_215], %441 {strides = array<i32>} : memref<8x64xf32, #tpu.memory_space<vmem>>, vector<1x32xf32>,
    %443 = vector.extract_strided_slice %440 {offsets = [0, 0], sizes = [1, 32], strides = [1, 1]} : vector<2x64xf32> to vector<1x32xf32>
    %c3_216 = arith.constant 3 : index
    %c32_217 = arith.constant 32 : index
    %444 = vector.load %arg16[%c3_216, %c32_217] : memref<8x64xf32, #tpu.memory_space<vmem>>, vector<1x32xf32>
    tpu.vector_store %arg16[%c3_216, %c32_217], %443 {strides = array<i32>} : memref<8x64xf32, #tpu.memory_space<vmem>>, vector<1x32xf32>,
    %445 = vector.extract_strided_slice %322 {offsets = [8, 0], sizes = [2, 256], strides = [1, 1]} : vector<16x256xf32> to vector<2x256xf32>
    %446 = arith.truncf %440 : vector<2x64xf32> to vector<2x64xbf16>
    %cst_218 = arith.constant dense<0.000000e+00> : vector<2x256xf32>
    %447 = tpu.matmul %446, %316, %cst_218 {dimension_numbers = #tpu.dot_dimension_numbers<[1], [0], [0], [1], [0, 0, 1, 1], [], []>} : vector<2x64xbf16>, vector<64x256xbf16>, vector<2x256xf32> -> vector<2x256xf32>
    %448 = arith.addf %447, %445 : vector<2x256xf32>
    %449 = math.tanh %448 : vector<2x256xf32>
    %450 = vector.extract_strided_slice %449 {offsets = [0, 0], sizes = [2, 64], strides = [1, 1]} : vector<2x256xf32> to vector<2x64xf32>
    %cst_219 = arith.constant 5.000000e-01 : f32
    %451 = vector.broadcast %cst_219 : f32 to vector<2x64xf32>
    %452 = arith.mulf %450, %451 : vector<2x64xf32>
    %cst_220 = arith.constant 5.000000e-01 : f32
    %453 = vector.broadcast %cst_220 : f32 to vector<2x64xf32>
    %454 = arith.addf %452, %453 : vector<2x64xf32>
    %455 = vector.extract_strided_slice %449 {offsets = [0, 64], sizes = [2, 64], strides = [1, 1]} : vector<2x256xf32> to vector<2x64xf32>
    %cst_221 = arith.constant 5.000000e-01 : f32
    %456 = vector.broadcast %cst_221 : f32 to vector<2x64xf32>
    %457 = arith.mulf %455, %456 : vector<2x64xf32>
    %cst_222 = arith.constant 5.000000e-01 : f32
    %458 = vector.broadcast %cst_222 : f32 to vector<2x64xf32>
    %459 = arith.addf %457, %458 : vector<2x64xf32>
    %460 = vector.extract_strided_slice %449 {offsets = [0, 128], sizes = [2, 64], strides = [1, 1]} : vector<2x256xf32> to vector<2x64xf32>
    %461 = vector.extract_strided_slice %449 {offsets = [0, 192], sizes = [2, 64], strides = [1, 1]} : vector<2x256xf32> to vector<2x64xf32>
    %cst_223 = arith.constant 5.000000e-01 : f32
    %462 = vector.broadcast %cst_223 : f32 to vector<2x64xf32>
    %463 = arith.mulf %461, %462 : vector<2x64xf32>
    %cst_224 = arith.constant 5.000000e-01 : f32
    %464 = vector.broadcast %cst_224 : f32 to vector<2x64xf32>
    %465 = arith.addf %463, %464 : vector<2x64xf32>
    %466 = arith.mulf %459, %438 : vector<2x64xf32>
    %467 = arith.mulf %454, %460 : vector<2x64xf32>
    %468 = arith.addf %466, %467 : vector<2x64xf32>
    %469 = math.tanh %468 : vector<2x64xf32>
    %470 = arith.mulf %465, %469 : vector<2x64xf32>
    %471 = vector.extract_strided_slice %470 {offsets = [1, 0], sizes = [1, 32], strides = [1, 1]} : vector<2x64xf32> to vector<1x32xf32>
    %c4_225 = arith.constant 4 : index
    %c0_226 = arith.constant 0 : index
    %472 = vector.load %arg16[%c4_225, %c0_226] : memref<8x64xf32, #tpu.memory_space<vmem>>, vector<1x32xf32>
    tpu.vector_store %arg16[%c4_225, %c0_226], %471 {strides = array<i32>} : memref<8x64xf32, #tpu.memory_space<vmem>>, vector<1x32xf32>,
    %473 = vector.extract_strided_slice %470 {offsets = [0, 0], sizes = [1, 32], strides = [1, 1]} : vector<2x64xf32> to vector<1x32xf32>
    %c4_227 = arith.constant 4 : index
    %c32_228 = arith.constant 32 : index
    %474 = vector.load %arg16[%c4_227, %c32_228] : memref<8x64xf32, #tpu.memory_space<vmem>>, vector<1x32xf32>
    tpu.vector_store %arg16[%c4_227, %c32_228], %473 {strides = array<i32>} : memref<8x64xf32, #tpu.memory_space<vmem>>, vector<1x32xf32>,
    %475 = vector.extract_strided_slice %322 {offsets = [10, 0], sizes = [2, 256], strides = [1, 1]} : vector<16x256xf32> to vector<2x256xf32>
    %476 = arith.truncf %470 : vector<2x64xf32> to vector<2x64xbf16>
    %cst_229 = arith.constant dense<0.000000e+00> : vector<2x256xf32>
    %477 = tpu.matmul %476, %316, %cst_229 {dimension_numbers = #tpu.dot_dimension_numbers<[1], [0], [0], [1], [0, 0, 1, 1], [], []>} : vector<2x64xbf16>, vector<64x256xbf16>, vector<2x256xf32> -> vector<2x256xf32>
    %478 = arith.addf %477, %475 : vector<2x256xf32>
    %479 = math.tanh %478 : vector<2x256xf32>
    %480 = vector.extract_strided_slice %479 {offsets = [0, 0], sizes = [2, 64], strides = [1, 1]} : vector<2x256xf32> to vector<2x64xf32>
    %cst_230 = arith.constant 5.000000e-01 : f32
    %481 = vector.broadcast %cst_230 : f32 to vector<2x64xf32>
    %482 = arith.mulf %480, %481 : vector<2x64xf32>
    %cst_231 = arith.constant 5.000000e-01 : f32
    %483 = vector.broadcast %cst_231 : f32 to vector<2x64xf32>
    %484 = arith.addf %482, %483 : vector<2x64xf32>
    %485 = vector.extract_strided_slice %479 {offsets = [0, 64], sizes = [2, 64], strides = [1, 1]} : vector<2x256xf32> to vector<2x64xf32>
    %cst_232 = arith.constant 5.000000e-01 : f32
    %486 = vector.broadcast %cst_232 : f32 to vector<2x64xf32>
    %487 = arith.mulf %485, %486 : vector<2x64xf32>
    %cst_233 = arith.constant 5.000000e-01 : f32
    %488 = vector.broadcast %cst_233 : f32 to vector<2x64xf32>
    %489 = arith.addf %487, %488 : vector<2x64xf32>
    %490 = vector.extract_strided_slice %479 {offsets = [0, 128], sizes = [2, 64], strides = [1, 1]} : vector<2x256xf32> to vector<2x64xf32>
    %491 = vector.extract_strided_slice %479 {offsets = [0, 192], sizes = [2, 64], strides = [1, 1]} : vector<2x256xf32> to vector<2x64xf32>
    %cst_234 = arith.constant 5.000000e-01 : f32
    %492 = vector.broadcast %cst_234 : f32 to vector<2x64xf32>
    %493 = arith.mulf %491, %492 : vector<2x64xf32>
    %cst_235 = arith.constant 5.000000e-01 : f32
    %494 = vector.broadcast %cst_235 : f32 to vector<2x64xf32>
    %495 = arith.addf %493, %494 : vector<2x64xf32>
    %496 = arith.mulf %489, %468 : vector<2x64xf32>
    %497 = arith.mulf %484, %490 : vector<2x64xf32>
    %498 = arith.addf %496, %497 : vector<2x64xf32>
    %499 = math.tanh %498 : vector<2x64xf32>
    %500 = arith.mulf %495, %499 : vector<2x64xf32>
    %501 = vector.extract_strided_slice %500 {offsets = [1, 0], sizes = [1, 32], strides = [1, 1]} : vector<2x64xf32> to vector<1x32xf32>
    %c5 = arith.constant 5 : index
    %c0_236 = arith.constant 0 : index
    %502 = vector.load %arg16[%c5, %c0_236] : memref<8x64xf32, #tpu.memory_space<vmem>>, vector<1x32xf32>
    tpu.vector_store %arg16[%c5, %c0_236], %501 {strides = array<i32>} : memref<8x64xf32, #tpu.memory_space<vmem>>, vector<1x32xf32>,
    %503 = vector.extract_strided_slice %500 {offsets = [0, 0], sizes = [1, 32], strides = [1, 1]} : vector<2x64xf32> to vector<1x32xf32>
    %c5_237 = arith.constant 5 : index
    %c32_238 = arith.constant 32 : index
    %504 = vector.load %arg16[%c5_237, %c32_238] : memref<8x64xf32, #tpu.memory_space<vmem>>, vector<1x32xf32>
    tpu.vector_store %arg16[%c5_237, %c32_238], %503 {strides = array<i32>} : memref<8x64xf32, #tpu.memory_space<vmem>>, vector<1x32xf32>,
    %505 = vector.extract_strided_slice %322 {offsets = [12, 0], sizes = [2, 256], strides = [1, 1]} : vector<16x256xf32> to vector<2x256xf32>
    %506 = arith.truncf %500 : vector<2x64xf32> to vector<2x64xbf16>
    %cst_239 = arith.constant dense<0.000000e+00> : vector<2x256xf32>
    %507 = tpu.matmul %506, %316, %cst_239 {dimension_numbers = #tpu.dot_dimension_numbers<[1], [0], [0], [1], [0, 0, 1, 1], [], []>} : vector<2x64xbf16>, vector<64x256xbf16>, vector<2x256xf32> -> vector<2x256xf32>
    %508 = arith.addf %507, %505 : vector<2x256xf32>
    %509 = math.tanh %508 : vector<2x256xf32>
    %510 = vector.extract_strided_slice %509 {offsets = [0, 0], sizes = [2, 64], strides = [1, 1]} : vector<2x256xf32> to vector<2x64xf32>
    %cst_240 = arith.constant 5.000000e-01 : f32
    %511 = vector.broadcast %cst_240 : f32 to vector<2x64xf32>
    %512 = arith.mulf %510, %511 : vector<2x64xf32>
    %cst_241 = arith.constant 5.000000e-01 : f32
    %513 = vector.broadcast %cst_241 : f32 to vector<2x64xf32>
    %514 = arith.addf %512, %513 : vector<2x64xf32>
    %515 = vector.extract_strided_slice %509 {offsets = [0, 64], sizes = [2, 64], strides = [1, 1]} : vector<2x256xf32> to vector<2x64xf32>
    %cst_242 = arith.constant 5.000000e-01 : f32
    %516 = vector.broadcast %cst_242 : f32 to vector<2x64xf32>
    %517 = arith.mulf %515, %516 : vector<2x64xf32>
    %cst_243 = arith.constant 5.000000e-01 : f32
    %518 = vector.broadcast %cst_243 : f32 to vector<2x64xf32>
    %519 = arith.addf %517, %518 : vector<2x64xf32>
    %520 = vector.extract_strided_slice %509 {offsets = [0, 128], sizes = [2, 64], strides = [1, 1]} : vector<2x256xf32> to vector<2x64xf32>
    %521 = vector.extract_strided_slice %509 {offsets = [0, 192], sizes = [2, 64], strides = [1, 1]} : vector<2x256xf32> to vector<2x64xf32>
    %cst_244 = arith.constant 5.000000e-01 : f32
    %522 = vector.broadcast %cst_244 : f32 to vector<2x64xf32>
    %523 = arith.mulf %521, %522 : vector<2x64xf32>
    %cst_245 = arith.constant 5.000000e-01 : f32
    %524 = vector.broadcast %cst_245 : f32 to vector<2x64xf32>
    %525 = arith.addf %523, %524 : vector<2x64xf32>
    %526 = arith.mulf %519, %498 : vector<2x64xf32>
    %527 = arith.mulf %514, %520 : vector<2x64xf32>
    %528 = arith.addf %526, %527 : vector<2x64xf32>
    %529 = math.tanh %528 : vector<2x64xf32>
    %530 = arith.mulf %525, %529 : vector<2x64xf32>
    %531 = vector.extract_strided_slice %530 {offsets = [1, 0], sizes = [1, 32], strides = [1, 1]} : vector<2x64xf32> to vector<1x32xf32>
    %c6_246 = arith.constant 6 : index
    %c0_247 = arith.constant 0 : index
    %532 = vector.load %arg16[%c6_246, %c0_247] : memref<8x64xf32, #tpu.memory_space<vmem>>, vector<1x32xf32>
    tpu.vector_store %arg16[%c6_246, %c0_247], %531 {strides = array<i32>} : memref<8x64xf32, #tpu.memory_space<vmem>>, vector<1x32xf32>,
    %533 = vector.extract_strided_slice %530 {offsets = [0, 0], sizes = [1, 32], strides = [1, 1]} : vector<2x64xf32> to vector<1x32xf32>
    %c6_248 = arith.constant 6 : index
    %c32_249 = arith.constant 32 : index
    %534 = vector.load %arg16[%c6_248, %c32_249] : memref<8x64xf32, #tpu.memory_space<vmem>>, vector<1x32xf32>
    tpu.vector_store %arg16[%c6_248, %c32_249], %533 {strides = array<i32>} : memref<8x64xf32, #tpu.memory_space<vmem>>, vector<1x32xf32>,
    %535 = vector.extract_strided_slice %322 {offsets = [14, 0], sizes = [2, 256], strides = [1, 1]} : vector<16x256xf32> to vector<2x256xf32>
    %536 = arith.truncf %530 : vector<2x64xf32> to vector<2x64xbf16>
    %cst_250 = arith.constant dense<0.000000e+00> : vector<2x256xf32>
    %537 = tpu.matmul %536, %316, %cst_250 {dimension_numbers = #tpu.dot_dimension_numbers<[1], [0], [0], [1], [0, 0, 1, 1], [], []>} : vector<2x64xbf16>, vector<64x256xbf16>, vector<2x256xf32> -> vector<2x256xf32>
    %538 = arith.addf %537, %535 : vector<2x256xf32>
    %539 = math.tanh %538 : vector<2x256xf32>
    %540 = vector.extract_strided_slice %539 {offsets = [0, 0], sizes = [2, 64], strides = [1, 1]} : vector<2x256xf32> to vector<2x64xf32>
    %cst_251 = arith.constant 5.000000e-01 : f32
    %541 = vector.broadcast %cst_251 : f32 to vector<2x64xf32>
    %542 = arith.mulf %540, %541 : vector<2x64xf32>
    %cst_252 = arith.constant 5.000000e-01 : f32
    %543 = vector.broadcast %cst_252 : f32 to vector<2x64xf32>
    %544 = arith.addf %542, %543 : vector<2x64xf32>
    %545 = vector.extract_strided_slice %539 {offsets = [0, 64], sizes = [2, 64], strides = [1, 1]} : vector<2x256xf32> to vector<2x64xf32>
    %cst_253 = arith.constant 5.000000e-01 : f32
    %546 = vector.broadcast %cst_253 : f32 to vector<2x64xf32>
    %547 = arith.mulf %545, %546 : vector<2x64xf32>
    %cst_254 = arith.constant 5.000000e-01 : f32
    %548 = vector.broadcast %cst_254 : f32 to vector<2x64xf32>
    %549 = arith.addf %547, %548 : vector<2x64xf32>
    %550 = vector.extract_strided_slice %539 {offsets = [0, 128], sizes = [2, 64], strides = [1, 1]} : vector<2x256xf32> to vector<2x64xf32>
    %551 = vector.extract_strided_slice %539 {offsets = [0, 192], sizes = [2, 64], strides = [1, 1]} : vector<2x256xf32> to vector<2x64xf32>
    %cst_255 = arith.constant 5.000000e-01 : f32
    %552 = vector.broadcast %cst_255 : f32 to vector<2x64xf32>
    %553 = arith.mulf %551, %552 : vector<2x64xf32>
    %cst_256 = arith.constant 5.000000e-01 : f32
    %554 = vector.broadcast %cst_256 : f32 to vector<2x64xf32>
    %555 = arith.addf %553, %554 : vector<2x64xf32>
    %556 = arith.mulf %549, %528 : vector<2x64xf32>
    %557 = arith.mulf %544, %550 : vector<2x64xf32>
    %558 = arith.addf %556, %557 : vector<2x64xf32>
    %559 = math.tanh %558 : vector<2x64xf32>
    %560 = arith.mulf %555, %559 : vector<2x64xf32>
    %561 = vector.extract_strided_slice %560 {offsets = [1, 0], sizes = [1, 32], strides = [1, 1]} : vector<2x64xf32> to vector<1x32xf32>
    %c7 = arith.constant 7 : index
    %c0_257 = arith.constant 0 : index
    %562 = vector.load %arg16[%c7, %c0_257] : memref<8x64xf32, #tpu.memory_space<vmem>>, vector<1x32xf32>
    tpu.vector_store %arg16[%c7, %c0_257], %561 {strides = array<i32>} : memref<8x64xf32, #tpu.memory_space<vmem>>, vector<1x32xf32>,
    %563 = vector.extract_strided_slice %560 {offsets = [0, 0], sizes = [1, 32], strides = [1, 1]} : vector<2x64xf32> to vector<1x32xf32>
    %c7_258 = arith.constant 7 : index
    %c32_259 = arith.constant 32 : index
    %564 = vector.load %arg16[%c7_258, %c32_259] : memref<8x64xf32, #tpu.memory_space<vmem>>, vector<1x32xf32>
    tpu.vector_store %arg16[%c7_258, %c32_259], %563 {strides = array<i32>} : memref<8x64xf32, #tpu.memory_space<vmem>>, vector<1x32xf32>,
    %565 = vector.extract_strided_slice %560 {offsets = [0, 0], sizes = [2, 32], strides = [1, 1]} : vector<2x64xf32> to vector<2x32xf32>
    %c2_260 = arith.constant 2 : index
    %c0_261 = arith.constant 0 : index
    %c0_262 = arith.constant 0 : index
    %566 = vector.load %arg12[%c2_260, %c0_261, %c0_262] : memref<4x2x32xf32, #tpu.memory_space<vmem>>, vector<1x2x32xf32>
    %567 = vector.shape_cast %566 : vector<1x2x32xf32> to vector<2x32xf32>
    %568 = vector.shape_cast %565 : vector<2x32xf32> to vector<1x2x32xf32>
    tpu.vector_store %arg12[%c2_260, %c0_261, %c0_262], %568 {strides = array<i32>} : memref<4x2x32xf32, #tpu.memory_space<vmem>>, vector<1x2x32xf32>,
    %569 = vector.extract_strided_slice %560 {offsets = [0, 32], sizes = [2, 32], strides = [1, 1]} : vector<2x64xf32> to vector<2x32xf32>
    %c3_263 = arith.constant 3 : index
    %c0_264 = arith.constant 0 : index
    %c0_265 = arith.constant 0 : index
    %570 = vector.load %arg12[%c3_263, %c0_264, %c0_265] : memref<4x2x32xf32, #tpu.memory_space<vmem>>, vector<1x2x32xf32>
    %571 = vector.shape_cast %570 : vector<1x2x32xf32> to vector<2x32xf32>
    %572 = vector.shape_cast %569 : vector<2x32xf32> to vector<1x2x32xf32>
    tpu.vector_store %arg12[%c3_263, %c0_264, %c0_265], %572 {strides = array<i32>} : memref<4x2x32xf32, #tpu.memory_space<vmem>>, vector<1x2x32xf32>,
    %573 = vector.extract_strided_slice %558 {offsets = [0, 0], sizes = [2, 32], strides = [1, 1]} : vector<2x64xf32> to vector<2x32xf32>
    %c2_266 = arith.constant 2 : index
    %c0_267 = arith.constant 0 : index
    %c0_268 = arith.constant 0 : index
    %574 = vector.load %arg13[%c2_266, %c0_267, %c0_268] : memref<4x2x32xf32, #tpu.memory_space<vmem>>, vector<1x2x32xf32>
    %575 = vector.shape_cast %574 : vector<1x2x32xf32> to vector<2x32xf32>
    %576 = vector.shape_cast %573 : vector<2x32xf32> to vector<1x2x32xf32>
    tpu.vector_store %arg13[%c2_266, %c0_267, %c0_268], %576 {strides = array<i32>} : memref<4x2x32xf32, #tpu.memory_space<vmem>>, vector<1x2x32xf32>,
    %577 = vector.extract_strided_slice %558 {offsets = [0, 32], sizes = [2, 32], strides = [1, 1]} : vector<2x64xf32> to vector<2x32xf32>
    %c3_269 = arith.constant 3 : index
    %c0_270 = arith.constant 0 : index
    %c0_271 = arith.constant 0 : index
    %578 = vector.load %arg13[%c3_269, %c0_270, %c0_271] : memref<4x2x32xf32, #tpu.memory_space<vmem>>, vector<1x2x32xf32>
    %579 = vector.shape_cast %578 : vector<1x2x32xf32> to vector<2x32xf32>
    %580 = vector.shape_cast %577 : vector<2x32xf32> to vector<1x2x32xf32>
    tpu.vector_store %arg13[%c3_269, %c0_270, %c0_271], %580 {strides = array<i32>} : memref<4x2x32xf32, #tpu.memory_space<vmem>>, vector<1x2x32xf32>,
    %c0_272 = arith.constant 0 : index
    %c0_273 = arith.constant 0 : index
    %581 = vector.load %arg16[%c0_272, %c0_273] : memref<8x64xf32, #tpu.memory_space<vmem>>, vector<8x64xf32>
    %582 = arith.truncf %581 : vector<8x64xf32> to vector<8x64xbf16>
    %c0_274 = arith.constant 0 : index
    %c0_275 = arith.constant 0 : index
    %583 = vector.load %arg7[%c0_274, %c0_275] : memref<64x32xbf16, #tpu.memory_space<vmem>>, vector<64x32xbf16>
    %cst_276 = arith.constant dense<0.000000e+00> : vector<8x32xf32>
    %584 = tpu.matmul %582, %583, %cst_276 {dimension_numbers = #tpu.dot_dimension_numbers<[1], [0], [0], [1], [0, 0, 1, 1], [], []>} : vector<8x64xbf16>, vector<64x32xbf16>, vector<8x32xf32> -> vector<8x32xf32>
    %c0_277 = arith.constant 0 : index
    %c0_278 = arith.constant 0 : index
    %585 = vector.load %arg8[%c0_277, %c0_278] : memref<1x32xf32, #tpu.memory_space<vmem>>, vector<1x32xf32>
    %586 = vector.broadcast %585 : vector<1x32xf32> to vector<8x32xf32>
    %587 = arith.addf %584, %586 : vector<8x32xf32>
    %cst_279 = arith.constant 0.000000e+00 : f32
    %588 = vector.broadcast %cst_279 : f32 to vector<8x32xf32>
    %589 = arith.maximumf %587, %588 : vector<8x32xf32>
    %590 = arith.truncf %589 : vector<8x32xf32> to vector<8x32xbf16>
    %c0_280 = arith.constant 0 : index
    %c0_281 = arith.constant 0 : index
    %591 = vector.load %arg9[%c0_280, %c0_281] : memref<32x4xbf16, #tpu.memory_space<vmem>>, vector<32x4xbf16>
    %cst_282 = arith.constant dense<0.000000e+00> : vector<8x4xf32>
    %592 = tpu.matmul %590, %591, %cst_282 {dimension_numbers = #tpu.dot_dimension_numbers<[1], [0], [0], [1], [0, 0, 1, 1], [], []>} : vector<8x32xbf16>, vector<32x4xbf16>, vector<8x4xf32> -> vector<8x4xf32>
    %c0_283 = arith.constant 0 : index
    %c0_284 = arith.constant 0 : index
    %593 = vector.load %arg10[%c0_283, %c0_284] : memref<1x4xf32, #tpu.memory_space<vmem>>, vector<1x4xf32>
    %594 = vector.broadcast %593 : vector<1x4xf32> to vector<8x4xf32>
    %595 = arith.addf %592, %594 : vector<8x4xf32>
    %c0_285 = arith.constant 0 : index
    %c0_286 = arith.constant 0 : index
    %596 = vector.load %arg11[%c0_285, %c0_286] : memref<8x4xf32, #tpu.memory_space<vmem>>, vector<8x4xf32>
    tpu.vector_store %arg11[%c0_285, %c0_286], %595 {strides = array<i32>} : memref<8x4xf32, #tpu.memory_space<vmem>>, vector<8x4xf32>,
    return
  }
}

</mosaic_0001>

<bundles_post_ra>
// kernel: student_model_forward.1
= control target key start
LH: loop header
LB: loop body
LE: loop exit
PB: predicated region body
PF: predicated region fallthrough
CT: control target
= control target key end

     0   :  { %19 = vsyncpa [#allocation6], 0  ;;  %s2853_s0 = inlined_call_operand.vmem [shape: f32[2,8,16], index: 0, kind: input, shape index: {}]   ;;  %s2854_s1 = inlined_call_operand.vmem [shape: bf16[32,256], index: 1, kind: input, shape index: {}]   ;;  %s2855_s2 = inlined_call_operand.hbm [shape: bf16[64,256], index: 2, kind: input, shape index: {}]   ;;  %s2856_s3 = inlined_call_operand.vmem [shape: f32[1,256], index: 3, kind: input, shape index: {}]   ;;  %s2857_s4 = inlined_call_operand.hbm [shape: bf16[128,256], index: 4, kind: input, shape index: {}]   ;;  %s2858_s5 = inlined_call_operand.hbm [shape: bf16[64,256], index: 5, kind: input, shape index: {}]   ;;  %s2859_s6 = inlined_call_operand.vmem [shape: f32[1,256], index: 6, kind: input, shape index: {}]   ;;  %s2860_s7 = inlined_call_operand.vmem [shape: bf16[64,32], index: 7, kind: input, shape index: {}]   ;;  %s2861_s8 = inlined_call_operand.hbm [shape: f32[1,32], index: 8, kind: input, shape index: {}]   ;;  %s2862_s9 = inlined_call_operand.vmem [shape: bf16[32,4], index: 9, kind: input, shape index: {}]   ;;  %s2863_s10 = inlined_call_operand.hbm [shape: f32[1,4], index: 10, kind: input, shape index: {}]   ;;  %s2864_s11 = inlined_call_operand.vmem [shape: f32[8,4], index: 11, kind: output, shape index: {0}]   ;;  %s2865_s12 = inlined_call_operand.hbm [shape: f32[4,2,32], index: 12, kind: output, shape index: {1}]   ;;  %s2866_s13 = inlined_call_operand.hbm [shape: f32[4,2,32], index: 13, kind: output, shape index: {2}]  }
   0x1   :  { %20 = vsyncpa [#allocation9], 0 }
   0x2   :  { %21 = vsyncpa [#allocation12], 0 }
   0x3   :  { %22 = vsyncpa [#allocation7], 0 }
   0x4   :  { %23 = vsyncpa [#allocation16], 0  ;;  %s47_s27 = sshll.u32 %s2857_s4, 4  ;;  %s2163_s28 = smov [#allocation8]   ;;  %s48_s27 = int_to_ptr.hbm [resolvable:$true] %s47_s27 }
   0x5   :  { %s49_s29 = sshll.u32 %s2163_s28, 4  ;;  %s78_s15 = sshll.u32 %s2861_s8, 4  ;;  %s50_s29 = int_to_ptr.vmem [resolvable:$true] %s49_s29  ;;  %s79_s15 = int_to_ptr.hbm [resolvable:$true] %s78_s15 }
   0x6   :  { %s2164_s16 = smov 128   ;;  %s2165_s17 = smov 8  }
   0x7   :  { %55 = dma.hbm_to_vmem [thread:$0]  %s48_s27, 2048, %s50_s29, [#allocation9], %s2164_s16, %s2164_s16, %s2165_s17  }
   0x8   :  { %s2166_s18 = smov [#allocation11]   ;;  %s32_s22 = sshll.u32 %s2855_s2, 4  ;;  %s33_s22 = int_to_ptr.hbm [resolvable:$true] %s32_s22 }
   0x9   :  { %s80_s19 = sshll.u32 %s2166_s18, 4  ;;  %s60_s24 = sshll.u32 %s2858_s5, 4  ;;  %s81_s19 = int_to_ptr.vmem [resolvable:$true] %s80_s19  ;;  %s61_s24 = int_to_ptr.hbm [resolvable:$true] %s60_s24 }
   0xa   :  { %83 = dma.hbm_to_vmem [thread:$0]  %s79_s15, 16, %s81_s19, [#allocation12]  }
   0xb   :  { %s2167_s25 = smov [#allocation5]   ;;  %s2168_s8 = smov [#allocation10]  }
   0xc   :  { %s34_s26 = sshll.u32 %s2167_s25, 4  ;;  %s62_s27 = sshll.u32 %s2168_s8, 4  ;;  %s35_s26 = int_to_ptr.vmem [resolvable:$true] %s34_s26  ;;  %s63_s27 = int_to_ptr.vmem [resolvable:$true] %s62_s27 }
   0xd   :  { %40 = dma.hbm_to_vmem [thread:$0]  %s33_s22, 1024, %s35_s26, [#allocation6], %s2164_s16, %s2164_s16, %s2165_s17  }
   0xe   :  { %s91_s30 = sshll.u32 %s2863_s10, 4  ;;  %s2169_s2 = smov [#allocation13]   ;;  %s92_s30 = int_to_ptr.hbm [resolvable:$true] %s91_s30 }
   0xf   :  { %68 = dma.hbm_to_vmem [thread:$0]  %s61_s24, 1024, %s63_s27, [#allocation9], %s2164_s16, %s2164_s16, %s2165_s17  }
  0x10   :  { %s93_s14 = sshll.u32 %s2169_s2, 4  ;;  %s94_s14 = int_to_ptr.vmem [resolvable:$true] %s93_s14 }
  0x11   :  { %96 = dma.hbm_to_vmem [thread:$0]  %s92_s30, 16, %s94_s14, [#allocation12]  }
  0x12   :  { %2153 = dma.done.wait [#allocation6], 1024  }
  0x13   :  { %2154 = vsyncadd [#allocation6], 4294966272 }
  0x14   :  { %2155 = dma.done.wait [#allocation9], 3072  }
  0x15   :  { %2156 = vsyncadd [#allocation9], 4294964224 }
  0x16   :  { %2157 = dma.done.wait [#allocation12], 32  }
  0x17   :  { %2158 = vsyncadd [#allocation12], 4294967264  ;;  %vm143_vm0 = vcmask 1043459   ;;  %v2266_v0 = vld [vmem:[%s2853_s0] sm:$0xff]  ;;  %v119_v1 = vld [vmem:[%s2853_s0 + $0x8] sm:$0xff]  ;;  %vm146_vm1 = vcmask 125954  }
  0x18   :  { %vm123_vm2 = vcmask 1041409   ;;  %v1674_v2 = vld [vmem:[#allocation5 + $0x30] sm:$0xf]  ;;  %v2271_v3 = vrot.slane %v119_v1, 7  ;;  %vm163_vm3 = vcmask 1045509   ;;  %vm126_vm4 = vcmask 123904  }
  0x19   :  { %v1841_v4 = vld [vmem:[#allocation5 + $0x34] sm:$0xf0]  ;;  %vm153_vm5 = vcmask 1044484   ;;  %vm156_vm6 = vcmask 126979   ;;  %vm133_vm7 = vcmask 1042434   ;;  %s2170_s0 = smov 16  }
  0x1a   :  { %v2273_v5 = vor.u32 %v1841_v4, %v1674_v2  ;;  %v144_v6 = vsel %vm143_vm0, %v2271_v3, %v2266_v0  ;;  %v124_v7 = vsel %vm123_vm2, %v2271_v3, %v2266_v0  ;;  %vm136_vm8 = vcmask 124929   ;;  %v1666_v13 = vld [vmem:[#allocation5 + $0x20] sm:$0xf]  ;;  %v1839_v14 = vld [vmem:[#allocation5 + $0x24] sm:$0xf0]  ;;  %s2174_s15 = smov 32  }
  0x1b   :  { %148 = vrot.lane.b32.xlu1 %v144_v6, %s2170_s0  ;;  %147 = vst.msk [vmem:[#allocation2 + $0x2] sm:$0xc] %vm146_vm1, %v144_v6  ;;  %128 = vrot.lane.b32.xlu0 %v124_v7, %s2170_s0  ;;  %v2281_v8 = vsel %vm163_vm3, %v2271_v3, %v2266_v0  ;;  %v154_v9 = vsel %vm153_vm5, %v2271_v3, %v2266_v0  ;;  %vm173_vm9 = vcmask 1046534   ;;  %vm183_vm10 = vcmask 1047559   ;;  %v1840_v15 = vld [vmem:[#allocation5 + $0x34] sm:$0xf] }
  0x1c   :  { %127 = vst.msk [vmem:[#allocation2] sm:$0x3] %vm126_vm4, %v124_v7  ;;  %168 = vrot.lane.b32.xlu2 %v2281_v8, %s2170_s0  ;;  %330 = vmatpush.bf16.msra.mxu2 %v2273_v5  ;;  %v134_v10 = vsel %vm133_vm7, %v2271_v3, %v2266_v0  ;;  %v2291_v11 = vsel %vm173_vm9, %v2271_v3, %v2266_v0  ;;  %v1676_v17 = vld [vmem:[#allocation5 + $0x38] sm:$0xf0]  ;;  %v1658_v19 = vld [vmem:[#allocation5 + $0x10] sm:$0xf] }
  0x1d   :  { %157 = vst.msk [vmem:[#allocation2 + $0x3] sm:$0x18] %vm156_vm6, %v154_v9  ;;  %v2296_v12 = vsel %vm183_vm10, %v2271_v3, %v2266_v0  ;;  %v2301_v16 = vor.u32 %v1839_v14, %v1666_v13  ;;  %v2303_v18 = vor.u32 %v1840_v15, %v1676_v17  ;;  %v1837_v20 = vld [vmem:[#allocation5 + $0x14] sm:$0xf0]  ;;  %v1838_v21 = vld [vmem:[#allocation5 + $0x24] sm:$0xf] }
  0x1e   :  { %137 = vst.msk [vmem:[#allocation2 + $0x1] sm:$0x6] %vm136_vm8, %v134_v10  ;;  %v2306_v22 = vor.u32 %v1837_v20, %v1658_v19  ;;  %v1668_v23 = vld [vmem:[#allocation5 + $0x28] sm:$0xf0]  ;;  %vm171_vm11 = vcmask 259204   ;;  %vm181_vm12 = vcmask 260229  }
  0x1f   :  { %343 = vmatpush.bf16.msra.mxu3 %v2303_v18  ;;  %v2309_v24 = vor.u32 %v1838_v21, %v1668_v23  ;;  %v1650_v26 = vld [vmem:[#allocation5] sm:$0xf]  ;;  %v1835_v27 = vld [vmem:[#allocation5 + $0x4] sm:$0xf0]  ;;  %v1836_v28 = vld [vmem:[#allocation5 + $0x14] sm:$0xf] }
  0x20   :  { %331 = vmatpush.bf16.msra.mxu2 %v2301_v16  ;;  %v2313_v29 = vor.u32 %v1835_v27, %v1650_v26  ;;  %v1660_v30 = vld [vmem:[#allocation5 + $0x18] sm:$0xf0]  ;;  %v1834_v31 = vld [vmem:[#allocation5 + $0x4] sm:$0xf]  ;;  %v1652_v33 = vld [vmem:[#allocation5 + $0x8] sm:$0xf0] }
  0x21   :  { %v2315_v32 = vor.u32 %v1836_v28, %v1660_v30  ;;  %v2319_v34 = vor.u32 %v1834_v31, %v1652_v33  ;;  %v2171_v36 = vmov 0   ;;  %v1640_v37 = vld [vmem:[%s2854_s1 + $0x10] sm:$0xf]  ;;  %v1833_v38 = vld [vmem:[%s2854_s1 + $0x14] sm:$0xf0]  ;;  %vm207_vm13 = vcmask 254080  }
  0x22   :  { %v1641_v39 = vor.u32 %v1833_v38, %v1640_v37  ;;  %v1832_v40 = vld [vmem:[%s2854_s1 + $0x14] sm:$0xf]  ;;  %v1642_v41 = vld [vmem:[%s2854_s1 + $0x18] sm:$0xf0]  ;;  %v1632_v42 = vld [vmem:[%s2854_s1] sm:$0xf] }
  0x23   :  { %158 = vrot.lane.b32.xlu1 %v154_v9, %s2170_s0  ;;  %138 = vrot.lane.b32.xlu0 %v134_v10, %s2170_s0  ;;  %v1645_v43 = vor.u32 %v1832_v40, %v1642_v41  ;;  %v1831_v44 = vld [vmem:[%s2854_s1 + $0x4] sm:$0xf0]  ;;  %v1830_v45 = vld [vmem:[%s2854_s1 + $0x4] sm:$0xf]  ;;  %vm151_vm14 = vcmask 257154   ;;  %vm176_vm15 = vcmask 129029  }
  0x24   :  { %178 = vrot.lane.b32.xlu2 %v2291_v11, %s2170_s0  ;;  %332 = vmatpush.bf16.msra.mxu2 %v2306_v22  ;;  %v1634_v46 = vld [vmem:[%s2854_s1 + $0x8] sm:$0xf0]  ;;  %v1633_v47 = vor.u32 %v1831_v44, %v1632_v42  ;;  %vm131_vm0 = vcmask 255104   ;;  %vm195_vm1 = vcmask 130055   ;;  %vm197_vm2 = vcmask 122880   ;;  %s1595_s8 = sshll.u32 %s2865_s12, 4  ;;  %s1596_s8 = int_to_ptr.hbm [resolvable:$true] %s1595_s8 }
  0x25   :  { %344 = vmatpush.bf16.msra.mxu3 %v2309_v24  ;;  %260 = vmatpush.bf16.msra.mxu0 %v1641_v39  ;;  %v1637_v48 = vor.u32 %v1830_v45, %v1634_v46  ;;  %vm161_vm3 = vcmask 258179   ;;  %vm166_vm4 = vcmask 128004   ;;  %vm141_vm5 = vcmask 256129   ;;  %v2390_v63 = vld [vmem:[%s2856_s3] sm:$0x3]  ;;  %s2172_s3 = smov 64  }
  0x26   :  { %274 = vmatpush.bf16.msra.mxu1 %v1645_v43  ;;  %vm186_vm6 = vcmask 130054   ;;  %vm205_vm7 = vcmask 261255   ;;  %vm191_vm8 = vcmask 261254   ;;  %vm250_vm9 = vcmask 261120   ;;  %s2176_s27 = smov [#allocation15]   ;;  %s2177_s29 = smov 2  }
  0x27   :  { %v227_v1 = vperm.slane %v2390_v63, 1  ;;  %vm373_vm10 = vcmask 779776   ;;  %s1606_s28 = sshll.u32 %s2176_s27, 4  ;;  %s1608_s2 = sshll.u32 %s2866_s13, 4  ;;  %s1607_s28 = int_to_ptr.vmem [resolvable:$true] %s1606_s28  ;;  %s1609_s2 = int_to_ptr.hbm [resolvable:$true] %s1608_s2 }
  0x28   :  { %333 = vmatpush.bf16.msra.mxu2 %v2313_v29 }
  0x29   :  { %345 = vmatpush.bf16.msra.mxu3 %v2315_v32  ;;  %261 = vmatpush.bf16.msra.mxu0 %v1633_v47 }
  0x2a   :  { %275 = vmatpush.bf16.msra.mxu1 %v1637_v48 }
  0x2b   :  { %199 = vrot.lane.b32.xlu1 %v2266_v0, %s2170_s0  ;;  %188 = vrot.lane.b32.xlu0 %v2296_v12, %s2170_s0 }
  0x2c   :  { %201 = vrot.lane.b32.xlu2 %v2271_v3, %s2170_s0  ;;  %456 = vmatpush.bf16.msrb.mxu2 %v2273_v5 }
  0x2d   :  { %334 = vmatmul.bf16.vlgmr.msra.gmra.mxu2 %v2171_v36  ;;  %346 = vmatpush.bf16.msra.mxu3 %v2319_v34 }
  0x2e   :  { %396 = vmatpush.bf16.msrb.mxu0 %v2273_v5  ;;  %409 = vmatpush.bf16.msrb.mxu1 %v2303_v18 }
  0x30   :  { %457 = vmatpush.bf16.msrb.mxu2 %v2301_v16  ;;  %347 = vmatmul.bf16.vlgmr.msra.gmra.mxu3 %v2171_v36 }
  0x31   :  { %469 = vmatpush.bf16.msrb.mxu3 %v2303_v18 }
  0x32   :  { %397 = vmatpush.bf16.msrb.mxu0 %v2301_v16  ;;  %410 = vmatpush.bf16.msrb.mxu1 %v2309_v24 }
  0x34   :  { %458 = vmatpush.bf16.msrb.mxu2 %v2306_v22 }
  0x35   :  { %470 = vmatpush.bf16.msrb.mxu3 %v2309_v24 }
  0x36   :  { %398 = vmatpush.bf16.msrb.mxu0 %v2306_v22  ;;  %411 = vmatpush.bf16.msrb.mxu1 %v2315_v32 }
  0x38   :  { %459 = vmatpush.bf16.msrb.mxu2 %v2313_v29 }
  0x39   :  { %471 = vmatpush.bf16.msrb.mxu3 %v2315_v32 }
  0x3a   :  { %399 = vmatpush.bf16.msrb.mxu0 %v2313_v29  ;;  %412 = vmatpush.bf16.msrb.mxu1 %v2319_v34 }
  0x3c   :  { %572 = vmatpush.bf16.msra.mxu2 %v2273_v5 }
  0x3d   :  { %472 = vmatpush.bf16.msrb.mxu3 %v2319_v34 }
  0x40   :  { %573 = vmatpush.bf16.msra.mxu2 %v2301_v16 }
  0x41   :  { %585 = vmatpush.bf16.msra.mxu3 %v2303_v18 }
  0x44   :  { %574 = vmatpush.bf16.msra.mxu2 %v2306_v22 }
  0x45   :  { %586 = vmatpush.bf16.msra.mxu3 %v2309_v24 }
  0x48   :  { %575 = vmatpush.bf16.msra.mxu2 %v2313_v29 }
  0x49   :  { %587 = vmatpush.bf16.msra.mxu3 %v2315_v32 }
  0x4d   :  { %588 = vmatpush.bf16.msra.mxu3 %v2319_v34 }
  0x76   :  { %v169_v25 = vpop.permute.xlu2 %168 }
  0x77   :  { %172 = vst.msk [vmem:[#allocation2 + $0x2] sm:$0x30] %vm171_vm11, %v169_v25  ;;  %vm322_vm11 = vcmask 523264  }
  0x7e   :  { %v179_v35 = vpop.permute.xlu2 %178 }
  0x7f   :  { %182 = vst.msk [vmem:[#allocation2 - $0x1] sm:$0x60] %vm181_vm12, %v179_v35  ;;  %vm371_vm12 = vcmask 254976  }
  0x86   :  { %v202_v49 = vpop.permute.xlu2 %201 }
  0x87   :  { %208 = vst.msk [vmem:[#allocation2 + $0x1] sm:$0x1] %vm207_vm13, %v202_v49  ;;  %vm375_vm13 = vcmask 517376  }
  0x8d   :  { %v149_v50 = vpop.permute.xlu1 %148  ;;  %v129_v51 = vpop.permute.xlu0 %128 }
  0x8e   :  { %152 = vst.msk [vmem:[#allocation2 + $0x8] sm:$0xc] %vm151_vm14, %v149_v50  ;;  %vm377_vm14 = vcmask 1042176  }
  0x8f   :  { %177 = vst.msk [vmem:[#allocation2 + $0x5] sm:$0x60] %vm176_vm15, %v2291_v11  ;;  %vm1041_vm15 = vcmask 254977  }
  0x90   :  { %132 = vst.msk [vmem:[#allocation2 + $0xe] sm:$0x3] %vm131_vm0, %v129_v51  ;;  %vm1046_vm0 = vcmask 516352  }
  0x91   :  { %196 = vst.msk [vmem:[#allocation2 + $0x7] sm:$0x80] %vm195_vm1, %v2266_v0  ;;  %v226_v0 = vperm.slane %v2390_v63, 0  ;;  %vm1585_vm1 = vcmask 31744  }
  0x92   :  { %198 = vst.msk [vmem:[#allocation2 + $0xf] sm:$0x1] %vm197_vm2, %v2271_v3 }
  0x95   :  { %v159_v52 = vpop.permute.xlu1 %158  ;;  %v139_v53 = vpop.permute.xlu0 %138 }
  0x96   :  { %162 = vst.msk [vmem:[#allocation2 + $0x5] sm:$0x18] %vm161_vm3, %v159_v52 }
  0x97   :  { %167 = vst.msk [vmem:[#allocation2 + $0x4] sm:$0x30] %vm166_vm4, %v2281_v8 }
  0x98   :  { %142 = vst.msk [vmem:[#allocation2 + $0xb] sm:$0x6] %vm141_vm5, %v139_v53 }
  0x99   :  { %187 = vst.msk [vmem:[#allocation2 + $0x6] sm:$0xc0] %vm186_vm6, %v2296_v12 }
  0x9d   :  { %v200_v54 = vpop.permute.xlu1 %199  ;;  %v189_v55 = vpop.permute.xlu0 %188 }
  0x9e   :  { %206 = vst.msk [vmem:[#allocation2 - $0x7] sm:$0x80] %vm205_vm7, %v200_v54 }
  0x9f   :  { %192 = vst.msk [vmem:[#allocation2 - $0x4] sm:$0xc0] %vm191_vm8, %v189_v55 }
  0xa0   :  { %v223_v56 = vld [vmem:[#allocation2 + $0x8] sm:$0xff] }
  0xa6   :  { %v222_v57 = vld [vmem:[#allocation2] sm:$0xff] }
  0xa7   :  { %v224_v58 = vpack.c.bf16 %v223_v56, %v222_v57 }
  0xa9   :  { %1646 = vmatmul.msk.bf16.vlgmr.msra.gmra.mxu0 %vm250_vm9, %v224_v58  ;;  %1647 = vmatmul.msk.bf16.vlgmr.msra.gmra.mxu1 %vm250_vm9, %v224_v58 }
  0xaa   :  { %516 = vmatpush.bf16.msra.mxu0 %v2273_v5  ;;  %529 = vmatpush.bf16.msra.mxu1 %v2303_v18 }
  0xae   :  { %517 = vmatpush.bf16.msra.mxu0 %v2301_v16  ;;  %530 = vmatpush.bf16.msra.mxu1 %v2309_v24 }
  0xb0   :  { %v335_v59 = vpop.f32.mrf.mxu2 }
  0xb2   :  { %518 = vmatpush.bf16.msra.mxu0 %v2306_v22  ;;  %531 = vmatpush.bf16.msra.mxu1 %v2315_v32 }
  0xb3   :  { %v348_v60 = vpop.f32.mrf.mxu3 }
  0xb6   :  { %519 = vmatpush.bf16.msra.mxu0 %v2313_v29  ;;  %532 = vmatpush.bf16.msra.mxu1 %v2319_v34 }
  0xb8   :  { %v337_v61 = vpop.f32.mrf.mxu2 }
  0xbb   :  { %v350_v62 = vpop.f32.mrf.mxu3 }
 0x126   :  { %v263_v2 = vpop.f32.mrf.mxu0  ;;  %v277_v3 = vpop.f32.mrf.mxu1 }
 0x127   :  { %v2396_v4 = vadd.f32 %v263_v2, %v226_v0  ;;  %v2400_v6 = vadd.f32 %v277_v3, %v227_v1 }
 0x129   :  { %v336_v7 = vadd.f32 %v335_v59, %v2396_v4  ;;  %v349_v8 = vadd.f32 %v348_v60, %v2400_v6  ;;  %v385_v30 = vrot.slane %v2396_v4, 2  ;;  %v386_v37 = vrot.slane %v2400_v6, 2 }
 0x12a   :  { %v445_v55 = vrot.slane %v2396_v4, 4  ;;  %v446_v59 = vrot.slane %v2400_v6, 4 }
 0x12b   :  { %1889 = vtanh.f32 %v336_v7 }
 0x12c   :  { %1891 = vtanh.f32 %v349_v8 }
 0x12e   :  { %v2422_v27 = vpop.f32.mrf.mxu0  ;;  %v2424_v28 = vpop.f32.mrf.mxu1 }
 0x131   :  { %v1890_v9 = vpop.eup %1889 }
 0x132   :  { %v354_v10 = vmul.f32 0.5, %v1890_v9  ;;  %v1892_v12 = vpop.eup %1891 }
 0x133   :  { %v356_v19 = vmul.f32 0.5, %v1892_v12 }
 0x134   :  { %v355_v11 = vadd.f32 0.5, %v354_v10 }
 0x135   :  { %v357_v20 = vadd.f32 0.5, %v356_v19 }
 0x136   :  { %v359_v13 = vmul.f32 %v1892_v12, %v355_v11  ;;  %v358_v14 = vmul.f32 0.0, %v355_v11 }
 0x138   :  { %361 = vrot.lane.b32.xlu0 %v359_v13, %s2172_s3 }
 0x1aa   :  { %v362_v15 = vpop.permute.xlu0 %361 }
 0x1ab   :  { %v364_v17 = vadd.f32 %v362_v15, %v358_v14 }
 0x1ad   :  { %1893 = vtanh.f32 %v364_v17 }
 0x1b3   :  { %v1894_v21 = vpop.eup %1893 }
 0x1b4   :  { %v2405_v23 = vmul.f32 %v1894_v21, %v357_v20  ;;  %v505_v21 = vrot.slane %v2396_v4, 6 }
 0x1b6   :  { %v379_v25 = vpack.c.bf16 %v2405_v23, %v2405_v23  ;;  %374 = vst.msk [vmem:[#allocation3 + $0xe] sm:$0x3] %vm373_vm10, %v2405_v23 }
 0x1b8   :  { %381 = vrot.lane.b32.xlu1 %v379_v25, %s2172_s3 }
 0x22a   :  { %v382_v26 = vpop.permute.xlu1 %381 }
 0x22b   :  { %1680 = vmatmul.msk.bf16.vlgmr.msrb.gmra.mxu0 %vm322_vm11, %v382_v26  ;;  %1681 = vmatmul.msk.bf16.vlgmr.msrb.gmra.mxu1 %vm322_vm11, %v382_v26 }
 0x22c   :  { %634 = vmatpush.bf16.msrb.mxu0 %v2273_v5  ;;  %647 = vmatpush.bf16.msrb.mxu1 %v2303_v18 }
 0x230   :  { %635 = vmatpush.bf16.msrb.mxu0 %v2301_v16  ;;  %648 = vmatpush.bf16.msrb.mxu1 %v2309_v24 }
 0x234   :  { %636 = vmatpush.bf16.msrb.mxu0 %v2306_v22  ;;  %649 = vmatpush.bf16.msrb.mxu1 %v2315_v32 }
 0x238   :  { %637 = vmatpush.bf16.msrb.mxu0 %v2313_v29  ;;  %650 = vmatpush.bf16.msrb.mxu1 %v2319_v34 }
 0x2a8   :  { %v401_v31 = vpop.f32.mrf.mxu0  ;;  %v414_v33 = vpop.f32.mrf.mxu1 }
 0x2a9   :  { %v402_v35 = vadd.f32 %v401_v31, %v385_v30  ;;  %v415_v38 = vadd.f32 %v414_v33, %v386_v37 }
 0x2ab   :  { %1895 = vtanh.f32 %v402_v35 }
 0x2ac   :  { %1897 = vtanh.f32 %v415_v38 }
 0x2b0   :  { %v403_v39 = vpop.f32.mrf.mxu0  ;;  %v416_v40 = vpop.f32.mrf.mxu1 }
 0x2b1   :  { %v1896_v41 = vpop.eup %1895 }
 0x2b2   :  { %v420_v42 = vmul.f32 0.5, %v1896_v41  ;;  %v1898_v44 = vpop.eup %1897 }
 0x2b3   :  { %v422_v49 = vmul.f32 0.5, %v1898_v44 }
 0x2b4   :  { %v421_v43 = vadd.f32 0.5, %v420_v42  ;;  %v2481_v42 = vadd.f32 %v2422_v27, %v226_v0 }
 0x2b5   :  { %v423_v50 = vadd.f32 0.5, %v422_v49 }
 0x2b6   :  { %v425_v45 = vmul.f32 %v1898_v44, %v421_v43  ;;  %v424_v46 = vmul.f32 %v421_v43, %v364_v17 }
 0x2b8   :  { %427 = vrot.lane.b32.xlu2 %v425_v45, %s2172_s3  ;;  %v2486_v45 = vadd.f32 %v2424_v28, %v227_v1 }
 0x312   :  { %v428_v47 = vpop.permute.xlu2 %427 }
 0x313   :  { %v430_v48 = vadd.f32 %v428_v47, %v424_v46 }
 0x315   :  { %1899 = vtanh.f32 %v430_v48 }
 0x31b   :  { %v1900_v51 = vpop.eup %1899 }
 0x31c   :  { %v2429_v52 = vmul.f32 %v1900_v51, %v423_v50 }
 0x31e   :  { %v441_v53 = vpack.c.bf16 %v2429_v52, %v2429_v52  ;;  %438 = vst.msk [vmem:[#allocation3 + $0xc] sm:$0x3] %vm373_vm10, %v2429_v52 }
 0x320   :  { %443 = vrot.lane.b32.xlu0 %v441_v53, %s2172_s3 }
 0x392   :  { %v444_v54 = vpop.permute.xlu0 %443 }
 0x393   :  { %1682 = vmatmul.msk.bf16.vlgmr.msrb.gmra.mxu2 %vm322_vm11, %v444_v54  ;;  %1683 = vmatmul.msk.bf16.vlgmr.msrb.gmra.mxu3 %vm322_vm11, %v444_v54 }
 0x394   :  { %694 = vmatpush.bf16.msrb.mxu2 %v2273_v5  ;;  %707 = vmatpush.bf16.msrb.mxu3 %v2303_v18 }
 0x398   :  { %695 = vmatpush.bf16.msrb.mxu2 %v2301_v16  ;;  %708 = vmatpush.bf16.msrb.mxu3 %v2309_v24 }
 0x39c   :  { %696 = vmatpush.bf16.msrb.mxu2 %v2306_v22  ;;  %709 = vmatpush.bf16.msrb.mxu3 %v2315_v32 }
 0x3a0   :  { %697 = vmatpush.bf16.msrb.mxu2 %v2313_v29  ;;  %710 = vmatpush.bf16.msrb.mxu3 %v2319_v34 }
 0x416   :  { %v461_v56 = vpop.f32.mrf.mxu2  ;;  %v474_v57 = vpop.f32.mrf.mxu3 }
 0x417   :  { %v462_v58 = vadd.f32 %v461_v56, %v445_v55  ;;  %v475_v60 = vadd.f32 %v474_v57, %v446_v59 }
 0x419   :  { %1901 = vtanh.f32 %v462_v58 }
 0x41a   :  { %1903 = vtanh.f32 %v475_v60  ;;  %v623_v60 = vrot.slane %v2481_v42, 2 }
 0x41e   :  { %v463_v61 = vpop.f32.mrf.mxu2  ;;  %v476_v62 = vpop.f32.mrf.mxu3 }
 0x41f   :  { %v1902_v2 = vpop.eup %1901 }
 0x420   :  { %v480_v3 = vmul.f32 0.5, %v1902_v2  ;;  %v1904_v8 = vpop.eup %1903 }
 0x421   :  { %v482_v13 = vmul.f32 0.5, %v1904_v8 }
 0x422   :  { %v481_v7 = vadd.f32 0.5, %v480_v3  ;;  %v624_v3 = vrot.slane %v2486_v45, 2 }
 0x423   :  { %v483_v14 = vadd.f32 0.5, %v482_v13 }
 0x424   :  { %v485_v9 = vmul.f32 %v1904_v8, %v481_v7  ;;  %v484_v10 = vmul.f32 %v481_v7, %v430_v48 }
 0x426   :  { %487 = vrot.lane.b32.xlu1 %v485_v9, %s2172_s3 }
 0x498   :  { %v488_v11 = vpop.permute.xlu1 %487 }
 0x499   :  { %v490_v12 = vadd.f32 %v488_v11, %v484_v10 }
 0x49b   :  { %1905 = vtanh.f32 %v490_v12 }
 0x4a1   :  { %v1906_v15 = vpop.eup %1905 }
 0x4a2   :  { %v2449_v17 = vmul.f32 %v1906_v15, %v483_v14 }
 0x4a4   :  { %v501_v19 = vpack.c.bf16 %v2449_v17, %v2449_v17  ;;  %498 = vst.msk [vmem:[#allocation3 + $0xa] sm:$0x3] %vm373_vm10, %v2449_v17 }
 0x4a6   :  { %503 = vrot.lane.b32.xlu2 %v501_v19, %s2172_s3 }
 0x500   :  { %v504_v20 = vpop.permute.xlu2 %503 }
 0x501   :  { %1684 = vmatmul.msk.bf16.vlgmr.msra.gmra.mxu0 %vm322_vm11, %v504_v20  ;;  %1685 = vmatmul.msk.bf16.vlgmr.msra.gmra.mxu1 %vm322_vm11, %v504_v20 }
 0x502   :  { %754 = vmatpush.bf16.msra.mxu0 %v2273_v5  ;;  %767 = vmatpush.bf16.msra.mxu1 %v2303_v18  ;;  %v506_v5 = vrot.slane %v2400_v6, 6 }
 0x506   :  { %755 = vmatpush.bf16.msra.mxu0 %v2301_v16  ;;  %768 = vmatpush.bf16.msra.mxu1 %v2309_v24 }
 0x50a   :  { %756 = vmatpush.bf16.msra.mxu0 %v2306_v22  ;;  %769 = vmatpush.bf16.msra.mxu1 %v2315_v32 }
 0x50e   :  { %757 = vmatpush.bf16.msra.mxu0 %v2313_v29  ;;  %770 = vmatpush.bf16.msra.mxu1 %v2319_v34 }
 0x57e   :  { %v521_v25 = vpop.f32.mrf.mxu0  ;;  %v534_v26 = vpop.f32.mrf.mxu1 }
 0x57f   :  { %v522_v30 = vadd.f32 %v521_v25, %v505_v21  ;;  %v535_v18 = vadd.f32 %v534_v26, %v506_v5 }
 0x581   :  { %1907 = vtanh.f32 %v522_v30 }
 0x582   :  { %1909 = vtanh.f32 %v535_v18 }
 0x586   :  { %v523_v16 = vpop.f32.mrf.mxu0  ;;  %v536_v24 = vpop.f32.mrf.mxu1 }
 0x587   :  { %v1908_v31 = vpop.eup %1907  ;;  %v683_v16 = vrot.slane %v2481_v42, 4 }
 0x588   :  { %v540_v22 = vmul.f32 0.5, %v1908_v31  ;;  %v1910_v32 = vpop.eup %1909 }
 0x589   :  { %v542_v37 = vmul.f32 0.5, %v1910_v32 }
 0x58a   :  { %v541_v33 = vadd.f32 0.5, %v540_v22 }
 0x58b   :  { %v543_v38 = vadd.f32 0.5, %v542_v37 }
 0x58c   :  { %v545_v35 = vmul.f32 %v1910_v32, %v541_v33  ;;  %v544_v29 = vmul.f32 %v541_v33, %v490_v12  ;;  %v684_v33 = vrot.slane %v2486_v45, 4 }
 0x58e   :  { %547 = vrot.lane.b32.xlu0 %v545_v35, %s2172_s3 }
 0x600   :  { %v548_v34 = vpop.permute.xlu0 %547 }
 0x601   :  { %v550_v4 = vadd.f32 %v548_v34, %v544_v29 }
 0x603   :  { %1911 = vtanh.f32 %v550_v4 }
 0x609   :  { %v1912_v39 = vpop.eup %1911 }
 0x60a   :  { %v2469_v6 = vmul.f32 %v1912_v39, %v543_v38 }
 0x60c   :  { %v561_v40 = vpack.c.bf16 %v2469_v6, %v2469_v6  ;;  %558 = vst.msk [vmem:[#allocation3 + $0x8] sm:$0x3] %vm373_vm10, %v2469_v6 }
 0x60e   :  { %563 = vrot.lane.b32.xlu1 %v561_v40, %s2172_s3 }
 0x680   :  { %v564_v41 = vpop.permute.xlu1 %563 }
 0x681   :  { %1686 = vmatmul.msk.bf16.vlgmr.msra.gmra.mxu2 %vm322_vm11, %v564_v41  ;;  %1687 = vmatmul.msk.bf16.vlgmr.msra.gmra.mxu3 %vm322_vm11, %v564_v41 }
 0x704   :  { %v577_v43 = vpop.f32.mrf.mxu2  ;;  %v590_v44 = vpop.f32.mrf.mxu3 }
 0x705   :  { %v578_v46 = vadd.f32 %v577_v43, %v2481_v42  ;;  %v591_v47 = vadd.f32 %v590_v44, %v2486_v45 }
 0x707   :  { %1913 = vtanh.f32 %v578_v46 }
 0x708   :  { %1915 = vtanh.f32 %v591_v47 }
 0x70c   :  { %v579_v48 = vpop.f32.mrf.mxu2  ;;  %v592_v49 = vpop.f32.mrf.mxu3 }
 0x70d   :  { %v1914_v50 = vpop.eup %1913 }
 0x70e   :  { %v596_v51 = vmul.f32 0.5, %v1914_v50  ;;  %v1916_v0 = vpop.eup %1915 }
 0x70f   :  { %v598_v1 = vmul.f32 0.5, %v1916_v0 }
 0x710   :  { %v597_v53 = vadd.f32 0.5, %v596_v51 }
 0x711   :  { %v599_v28 = vadd.f32 0.5, %v598_v1 }
 0x712   :  { %v601_v27 = vmul.f32 %v1916_v0, %v597_v53  ;;  %v600_v54 = vmul.f32 %v597_v53, %v550_v4 }
 0x714   :  { %603 = vrot.lane.b32.xlu2 %v601_v27, %s2172_s3  ;;  %v743_v27 = vrot.slane %v2481_v42, 6  ;;  %v1752_v42 = vld [vmem:[#allocation8 + $0x70] sm:$0xf] }
 0x76e   :  { %v604_v63 = vpop.permute.xlu2 %603 }
 0x76f   :  { %v606_v55 = vadd.f32 %v604_v63, %v600_v54 }
 0x771   :  { %1917 = vtanh.f32 %v606_v55 }
 0x777   :  { %v1918_v56 = vpop.eup %1917 }
 0x778   :  { %v2491_v57 = vmul.f32 %v1918_v56, %v599_v28 }
 0x77a   :  { %v617_v58 = vpack.c.bf16 %v2491_v57, %v2491_v57 }
 0x77c   :  { %619 = vrot.lane.b32.xlu0 %v617_v58, %s2172_s3 }
 0x7ee   :  { %v620_v59 = vpop.permute.xlu0 %619 }
 0x7ef   :  { %1688 = vmatmul.msk.bf16.vlgmr.msrb.gmra.mxu0 %vm322_vm11, %v620_v59  ;;  %1689 = vmatmul.msk.bf16.vlgmr.msrb.gmra.mxu1 %vm322_vm11, %v620_v59 }
 0x86c   :  { %v639_v61 = vpop.f32.mrf.mxu0  ;;  %v652_v62 = vpop.f32.mrf.mxu1 }
 0x86d   :  { %v640_v2 = vadd.f32 %v639_v61, %v623_v60  ;;  %v653_v7 = vadd.f32 %v652_v62, %v624_v3  ;;  %v1754_v3 = vld [vmem:[#allocation8 + $0x78] sm:$0xf0] }
 0x86f   :  { %1919 = vtanh.f32 %v640_v2 }
 0x870   :  { %1921 = vtanh.f32 %v653_v7  ;;  %v1744_v7 = vld [vmem:[#allocation8 + $0x60] sm:$0xf] }
 0x874   :  { %v641_v8 = vpop.f32.mrf.mxu0  ;;  %v654_v9 = vpop.f32.mrf.mxu1 }
 0x875   :  { %v1920_v10 = vpop.eup %1919  ;;  %v1855_v8 = vld [vmem:[#allocation8 + $0x64] sm:$0xf0] }
 0x876   :  { %v658_v11 = vmul.f32 0.5, %v1920_v10  ;;  %v1922_v13 = vpop.eup %1921  ;;  %v1854_v10 = vld [vmem:[#allocation8 + $0x64] sm:$0xf] }
 0x877   :  { %v660_v21 = vmul.f32 0.5, %v1922_v13 }
 0x878   :  { %v659_v12 = vadd.f32 0.5, %v658_v11  ;;  %v1746_v11 = vld [vmem:[#allocation8 + $0x68] sm:$0xf0] }
 0x879   :  { %v661_v25 = vadd.f32 0.5, %v660_v21  ;;  %v1784_v21 = vld [vmem:[#allocation10 + $0x30] sm:$0xf] }
 0x87a   :  { %v663_v14 = vmul.f32 %v1922_v13, %v659_v12  ;;  %v662_v15 = vmul.f32 %v659_v12, %v606_v55  ;;  %v744_v55 = vrot.slane %v2486_v45, 6  ;;  %v1857_v45 = vld [vmem:[#allocation8 + $0x74] sm:$0xf0]  ;;  %v1745_v12 = vor.u32 %v1855_v8, %v1744_v7  ;;  %v1842_v7 = vld [vmem:[#allocation8 + $0x4] sm:$0xf] }
 0x87b   :  { %v1753_v2 = vor.u32 %v1857_v45, %v1752_v42  ;;  %v1749_v13 = vor.u32 %v1854_v10, %v1746_v11  ;;  %v1778_v45 = vld [vmem:[#allocation10 + $0x28] sm:$0xf0]  ;;  %v1859_v11 = vld [vmem:[#allocation10 + $0x4] sm:$0xf0] }
 0x87c   :  { %665 = vrot.lane.b32.xlu1 %v663_v14, %s2172_s3  ;;  %v1736_v14 = vld [vmem:[#allocation8 + $0x50] sm:$0xf]  ;;  %v1698_v8 = vld [vmem:[#allocation8 + $0x8] sm:$0xf0] }
 0x87d   :  { %928 = vmatpush.bf16.msra.mxu2 %v1753_v2  ;;  %v1843_v2 = vld [vmem:[#allocation8 + $0x4] sm:$0xf0] }
 0x881   :  { %929 = vmatpush.bf16.msra.mxu2 %v1745_v12  ;;  %v1860_v12 = vld [vmem:[#allocation10 + $0x14] sm:$0xf] }
 0x8ee   :  { %v666_v19 = vpop.permute.xlu1 %665 }
 0x8ef   :  { %v668_v20 = vadd.f32 %v666_v19, %v662_v15  ;;  %v1853_v15 = vld [vmem:[#allocation8 + $0x54] sm:$0xf0]  ;;  %v1852_v19 = vld [vmem:[#allocation8 + $0x54] sm:$0xf] }
 0x8f1   :  { %1923 = vtanh.f32 %v668_v20 }
 0x8f7   :  { %v1924_v26 = vpop.eup %1923 }
 0x8f8   :  { %v2501_v30 = vmul.f32 %v1924_v26, %v661_v25  ;;  %v1737_v25 = vor.u32 %v1853_v15, %v1736_v14  ;;  %v1865_v26 = vld [vmem:[#allocation10 + $0x34] sm:$0xf0]  ;;  %v1701_v14 = vor.u32 %v1842_v7, %v1698_v8 }
 0x8fa   :  { %v679_v5 = vpack.c.bf16 %v2501_v30, %v2501_v30  ;;  %930 = vmatpush.bf16.msra.mxu2 %v1737_v25 }
 0x8fc   :  { %681 = vrot.lane.b32.xlu2 %v679_v5, %s2172_s3 }
 0x956   :  { %v682_v18 = vpop.permute.xlu2 %681 }
 0x957   :  { %1690 = vmatmul.msk.bf16.vlgmr.msrb.gmra.mxu2 %vm322_vm11, %v682_v18  ;;  %1691 = vmatmul.msk.bf16.vlgmr.msrb.gmra.mxu3 %vm322_vm11, %v682_v18  ;;  %v1728_v18 = vld [vmem:[#allocation8 + $0x40] sm:$0xf] }
 0x9da   :  { %v699_v24 = vpop.f32.mrf.mxu2  ;;  %v712_v31 = vpop.f32.mrf.mxu3 }
 0x9db   :  { %v700_v22 = vadd.f32 %v699_v24, %v683_v16  ;;  %v713_v32 = vadd.f32 %v712_v31, %v684_v33  ;;  %v1851_v16 = vld [vmem:[#allocation8 + $0x44] sm:$0xf0]  ;;  %v2555_v24 = vor.u32 %v1865_v26, %v1784_v21  ;;  %v1850_v31 = vld [vmem:[#allocation8 + $0x44] sm:$0xf]  ;;  %v1762_v21 = vld [vmem:[#allocation10 + $0x8] sm:$0xf0] }
 0x9dc   :  { %v1729_v33 = vor.u32 %v1851_v16, %v1728_v18 }
 0x9dd   :  { %1925 = vtanh.f32 %v700_v22  ;;  %v1730_v22 = vld [vmem:[#allocation8 + $0x48] sm:$0xf0]  ;;  %1000 = vmatpush.bf16.msrb.mxu0 %v2555_v24 }
 0x9de   :  { %1927 = vtanh.f32 %v713_v32  ;;  %931 = vmatpush.bf16.msra.mxu2 %v1729_v33 }
 0x9e2   :  { %v701_v35 = vpop.f32.mrf.mxu2  ;;  %v714_v29 = vpop.f32.mrf.mxu3 }
 0x9e3   :  { %v1926_v34 = vpop.eup %1925  ;;  %v1733_v35 = vor.u32 %v1850_v31, %v1730_v22  ;;  %v1720_v29 = vld [vmem:[#allocation8 + $0x30] sm:$0xf] }
 0x9e4   :  { %v718_v4 = vmul.f32 0.5, %v1926_v34  ;;  %v1928_v38 = vpop.eup %1927  ;;  %v1849_v34 = vld [vmem:[#allocation8 + $0x34] sm:$0xf0] }
 0x9e5   :  { %v720_v44 = vmul.f32 0.5, %v1928_v38 }
 0x9e6   :  { %v719_v37 = vadd.f32 0.5, %v718_v4 }
 0x9e7   :  { %v721_v46 = vadd.f32 0.5, %v720_v44 }
 0x9e8   :  { %v723_v39 = vmul.f32 %v1928_v38, %v719_v37  ;;  %v722_v40 = vmul.f32 %v719_v37, %v668_v20  ;;  %v1738_v20 = vld [vmem:[#allocation8 + $0x58] sm:$0xf0]  ;;  %v1848_v37 = vld [vmem:[#allocation8 + $0x34] sm:$0xf] }
 0x9e9   :  { %v1741_v5 = vor.u32 %v1852_v19, %v1738_v20  ;;  %v1722_v38 = vld [vmem:[#allocation8 + $0x38] sm:$0xf0]  ;;  %v1858_v20 = vld [vmem:[#allocation10 + $0x4] sm:$0xf] }
 0x9ea   :  { %725 = vrot.lane.b32.xlu0 %v723_v39, %s2172_s3  ;;  %v2596_v25 = vor.u32 %v1858_v20, %v1762_v21 }
 0x9f2   :  { %368 = vrot.lane.b32.xlu0 %v2405_v23, %s2172_s3 }
 0x9fa   :  { %554 = vrot.lane.b32.xlu0 %v2469_v6, %s2172_s3 }
 0xa5c   :  { %v726_v41 = vpop.permute.xlu0 %725 }
 0xa5d   :  { %v2515_v43 = vadd.f32 %v726_v41, %v722_v40  ;;  %v1721_v40 = vor.u32 %v1849_v34, %v1720_v29  ;;  %v1725_v41 = vor.u32 %v1848_v37, %v1722_v38 }
 0xa5f   :  { %1929 = vtanh.f32 %v2515_v43  ;;  %932 = vmatpush.bf16.msra.mxu2 %v1721_v40 }
 0xa64   :  { %v369_v47 = vpop.permute.xlu0 %368 }
 0xa65   :  { %v1930_v48 = vpop.eup %1929  ;;  %372 = vst.msk [vmem:[#allocation3] sm:$0x3] %vm371_vm12, %v369_v47 }
 0xa66   :  { %376 = vst.msk [vmem:[#allocation3 + $0xe] sm:$0x3] %vm375_vm13, %v369_v47  ;;  %v730_v49 = vmul.f32 %v1930_v48, %v721_v46 }
 0xa67   :  { %378 = vst.msk [vmem:[#allocation3] sm:$0x3] %vm377_vm14, %v2405_v23 }
 0xa68   :  { %732 = vrot.lane.b32.xlu0 %v730_v49, %s2172_s3  ;;  %v739_v50 = vpack.c.bf16 %v730_v49, %v730_v49 }
 0xa6a   :  { %741 = vrot.lane.b32.xlu1 %v739_v50, %s2172_s3  ;;  %v1712_v50 = vld [vmem:[#allocation8 + $0x20] sm:$0xf] }
 0xa6c   :  { %v555_v51 = vpop.permute.xlu0 %554 }
 0xa6d   :  { %557 = vst.msk [vmem:[#allocation3 + $0x6] sm:$0x3] %vm371_vm12, %v555_v51 }
 0xa6e   :  { %559 = vst.msk [vmem:[#allocation3 + $0x8] sm:$0x3] %vm375_vm13, %v555_v51  ;;  %v1847_v51 = vld [vmem:[#allocation8 + $0x24] sm:$0xf0] }
 0xa6f   :  { %560 = vst.msk [vmem:[#allocation3 + $0x6] sm:$0x3] %vm377_vm14, %v2469_v6 }
 0xa70   :  { %614 = vst.msk [vmem:[#allocation3 + $0x6] sm:$0x3] %vm373_vm10, %v2491_v57 }
 0xa72   :  { %434 = vrot.lane.b32.xlu1 %v2429_v52, %s2172_s3 }
 0xa7a   :  { %610 = vrot.lane.b32.xlu1 %v2491_v57, %s2172_s3 }
 0xada   :  { %v733_v6 = vpop.permute.xlu0 %732 }
 0xadc   :  { %v742_v23 = vpop.permute.xlu1 %741 }
 0xadd   :  { %1692 = vmatmul.msk.bf16.vlgmr.msra.gmra.mxu0 %vm322_vm11, %v742_v23  ;;  %1693 = vmatmul.msk.bf16.vlgmr.msra.gmra.mxu1 %vm322_vm11, %v742_v23  ;;  %v1713_v23 = vor.u32 %v1847_v51, %v1712_v50 }
 0xadf   :  { %933 = vmatpush.bf16.msra.mxu2 %v1713_v23 }
 0xae4   :  { %v435_v53 = vpop.permute.xlu1 %434 }
 0xae5   :  { %437 = vst.msk [vmem:[#allocation3 + $0x2] sm:$0x3] %vm371_vm12, %v435_v53 }
 0xae6   :  { %439 = vst.msk [vmem:[#allocation3 + $0xc] sm:$0x3] %vm375_vm13, %v435_v53  ;;  %v1714_v53 = vld [vmem:[#allocation8 + $0x28] sm:$0xf0] }
 0xae7   :  { %440 = vst.msk [vmem:[#allocation3 + $0x2] sm:$0x3] %vm377_vm14, %v2429_v52 }
 0xae8   :  { %735 = vst.msk [vmem:[#allocation3 + $0xc] sm:$0x3] %vm371_vm12, %v733_v6 }
 0xae9   :  { %736 = vst.msk [vmem:[#allocation3 + $0x2] sm:$0x3] %vm373_vm10, %v730_v49 }
 0xaea   :  { %737 = vst.msk [vmem:[#allocation3 + $0x2] sm:$0x3] %vm375_vm13, %v733_v6  ;;  %v1776_v6 = vld [vmem:[#allocation10 + $0x20] sm:$0xf] }
 0xaeb   :  { %738 = vst.msk [vmem:[#allocation3 + $0xc] sm:$0x3] %vm377_vm14, %v730_v49 }
 0xaec   :  { %v611_v0 = vpop.permute.xlu1 %610 }
 0xaed   :  { %613 = vst.msk [vmem:[#allocation3 + $0x8] sm:$0x3] %vm371_vm12, %v611_v0 }
 0xaee   :  { %615 = vst.msk [vmem:[#allocation3 + $0x6] sm:$0x3] %vm375_vm13, %v611_v0  ;;  %v1863_v0 = vld [vmem:[#allocation10 + $0x24] sm:$0xf0] }
 0xaef   :  { %616 = vst.msk [vmem:[#allocation3 + $0x8] sm:$0x3] %vm377_vm14, %v2491_v57  ;;  %v1856_v57 = vld [vmem:[#allocation8 + $0x74] sm:$0xf] }
 0xaf0   :  { %v1757_v9 = vor.u32 %v1856_v57, %v1754_v3  ;;  %v1696_v57 = vld [vmem:[#allocation8] sm:$0xf] }
 0xaf1   :  { %v1697_v10 = vor.u32 %v1843_v2, %v1696_v57 }
 0xaf2   :  { %942 = vmatpush.bf16.msra.mxu3 %v1757_v9  ;;  %v1760_v9 = vld [vmem:[#allocation10] sm:$0xf] }
 0xaf3   :  { %v2589_v15 = vor.u32 %v1859_v11, %v1760_v9 }
 0xaf6   :  { %943 = vmatpush.bf16.msra.mxu3 %v1749_v13  ;;  %v1770_v13 = vld [vmem:[#allocation10 + $0x18] sm:$0xf0] }
 0xaf7   :  { %v2592_v19 = vor.u32 %v1860_v12, %v1770_v13 }
 0xafa   :  { %944 = vmatpush.bf16.msra.mxu3 %v1741_v5 }
 0xafe   :  { %945 = vmatpush.bf16.msra.mxu3 %v1733_v35 }
 0xb02   :  { %946 = vmatpush.bf16.msra.mxu3 %v1725_v41 }
 0xb5a   :  { %v759_v54 = vpop.f32.mrf.mxu0  ;;  %v772_v52 = vpop.f32.mrf.mxu1 }
 0xb5b   :  { %v760_v63 = vadd.f32 %v759_v54, %v743_v27  ;;  %v773_v1 = vadd.f32 %v772_v52, %v744_v55  ;;  %v2578_v54 = vor.u32 %v1863_v0, %v1776_v6  ;;  %v1864_v52 = vld [vmem:[#allocation10 + $0x34] sm:$0xf]  ;;  %v1704_v55 = vld [vmem:[#allocation8 + $0x10] sm:$0xf] }
 0xb5d   :  { %1931 = vtanh.f32 %v760_v63  ;;  %v1786_v63 = vld [vmem:[#allocation10 + $0x38] sm:$0xf0]  ;;  %1001 = vmatpush.bf16.msrb.mxu0 %v2578_v54 }
 0xb5e   :  { %1933 = vtanh.f32 %v773_v1  ;;  %v2580_v1 = vor.u32 %v1864_v52, %v1786_v63 }
 0xb60   :  { %1013 = vmatpush.bf16.msrb.mxu1 %v2580_v1 }
 0xb62   :  { %v761_v28 = vpop.f32.mrf.mxu0  ;;  %v774_v56 = vpop.f32.mrf.mxu1 }
 0xb63   :  { %v1932_v58 = vpop.eup %1931  ;;  %v1845_v28 = vld [vmem:[#allocation8 + $0x14] sm:$0xf0]  ;;  %v1844_v56 = vld [vmem:[#allocation8 + $0x14] sm:$0xf] }
 0xb64   :  { %v778_v59 = vmul.f32 0.5, %v1932_v58  ;;  %v1934_v61 = vpop.eup %1933  ;;  %v1706_v58 = vld [vmem:[#allocation8 + $0x18] sm:$0xf0] }
 0xb65   :  { %v780_v44 = vmul.f32 0.5, %v1934_v61 }
 0xb66   :  { %v779_v60 = vadd.f32 0.5, %v778_v59  ;;  %v1709_v59 = vor.u32 %v1844_v56, %v1706_v58 }
 0xb67   :  { %v781_v46 = vadd.f32 0.5, %v780_v44 }
 0xb68   :  { %v783_v62 = vmul.f32 %v1934_v61, %v779_v60  ;;  %v782_v32 = vmul.f32 %v779_v60, %v2515_v43  ;;  %v1768_v60 = vld [vmem:[#allocation10 + $0x10] sm:$0xf]  ;;  %v1861_v61 = vld [vmem:[#allocation10 + $0x14] sm:$0xf0] }
 0xb69   :  { %v2584_v42 = vor.u32 %v1861_v61, %v1768_v60 }
 0xb6a   :  { %785 = vrot.lane.b32.xlu2 %v783_v62, %s2172_s3  ;;  %v1862_v62 = vld [vmem:[#allocation10 + $0x24] sm:$0xf] }
 0xb6b   :  { %v2586_v3 = vor.u32 %v1862_v62, %v1778_v45  ;;  %1002 = vmatpush.bf16.msrb.mxu0 %v2584_v42 }
 0xb6d   :  { %1014 = vmatpush.bf16.msrb.mxu1 %v2586_v3 }
 0xb6f   :  { %1003 = vmatpush.bf16.msrb.mxu0 %v2589_v15 }
 0xb71   :  { %1015 = vmatpush.bf16.msrb.mxu1 %v2592_v19 }
 0xb72   :  { %494 = vrot.lane.b32.xlu2 %v2449_v17, %s2172_s3  ;;  %1004 = vmatmul.bf16.vlgmr.msrb.gmra.mxu0 %v2171_v36 }
 0xb73   :  { %1065 = vmatpush.bf16.msra.mxu0 %v2555_v24 }
 0xb75   :  { %1016 = vmatpush.bf16.msrb.mxu1 %v2596_v25 }
 0xb77   :  { %1066 = vmatpush.bf16.msra.mxu0 %v2578_v54 }
 0xb78   :  { %1017 = vmatmul.bf16.vlgmr.msrb.gmra.mxu1 %v2171_v36 }
 0xb79   :  { %1078 = vmatpush.bf16.msra.mxu1 %v2580_v1 }
 0xb7a   :  { %672 = vrot.lane.b32.xlu2 %v2501_v30, %s2172_s3 }
 0xb7b   :  { %1067 = vmatpush.bf16.msra.mxu0 %v2584_v42 }
 0xb7d   :  { %1079 = vmatpush.bf16.msra.mxu1 %v2586_v3 }
 0xb7f   :  { %1068 = vmatpush.bf16.msra.mxu0 %v2589_v15 }
 0xb81   :  { %1080 = vmatpush.bf16.msra.mxu1 %v2592_v19 }
 0xb83   :  { %1187 = vmatpush.bf16.msrb.mxu0 %v2555_v24 }
 0xb85   :  { %1081 = vmatpush.bf16.msra.mxu1 %v2596_v25 }
 0xb87   :  { %1188 = vmatpush.bf16.msrb.mxu0 %v2578_v54 }
 0xb89   :  { %1200 = vmatpush.bf16.msrb.mxu1 %v2580_v1 }
 0xb8b   :  { %1189 = vmatpush.bf16.msrb.mxu0 %v2584_v42 }
 0xb8d   :  { %1201 = vmatpush.bf16.msrb.mxu1 %v2586_v3 }
 0xb8f   :  { %1190 = vmatpush.bf16.msrb.mxu0 %v2589_v15 }
 0xb91   :  { %1202 = vmatpush.bf16.msrb.mxu1 %v2592_v19 }
 0xb95   :  { %1203 = vmatpush.bf16.msrb.mxu1 %v2596_v25 }
 0xbc4   :  { %v786_v4 = vpop.permute.xlu2 %785 }
 0xbc5   :  { %v2559_v39 = vadd.f32 %v786_v4, %v782_v32  ;;  %v2641_v32 = vld [vmem:[%s2859_s6] sm:$0x3]  ;;  %s2173_s6 = smov 96  }
 0xbc6   :  { %v844_v35 = vperm.slane %v2641_v32, 0  ;;  %v845_v29 = vperm.slane %v2641_v32, 1 }
 0xbc7   :  { %1935 = vtanh.f32 %v2559_v39 }
 0xbcc   :  { %v495_v43 = vpop.permute.xlu2 %494 }
 0xbcd   :  { %v1936_v47 = vpop.eup %1935  ;;  %497 = vst.msk [vmem:[#allocation3 + $0x4] sm:$0x3] %vm371_vm12, %v495_v43 }
 0xbce   :  { %499 = vst.msk [vmem:[#allocation3 + $0xa] sm:$0x3] %vm375_vm13, %v495_v43  ;;  %v2564_v48 = vmul.f32 %v1936_v47, %v781_v46 }
 0xbcf   :  { %500 = vst.msk [vmem:[#allocation3 + $0x4] sm:$0x3] %vm377_vm14, %v2449_v17  ;;  %v1846_v17 = vld [vmem:[#allocation8 + $0x24] sm:$0xf] }
 0xbd0   :  { %676 = vst.msk [vmem:[#allocation3 + $0x4] sm:$0x3] %vm373_vm10, %v2501_v30  ;;  %792 = vrot.lane.b32.xlu1 %v2564_v48, %s2172_s3  ;;  %v1717_v27 = vor.u32 %v1846_v17, %v1714_v53 }
 0xbd1   :  { %796 = vst.msk [vmem:[#allocation3] sm:$0x3] %vm373_vm10, %v2564_v48 }
 0xbd2   :  { %947 = vmatpush.bf16.msra.mxu3 %v1717_v27 }
 0xbd4   :  { %v673_v49 = vpop.permute.xlu2 %672 }
 0xbd5   :  { %675 = vst.msk [vmem:[#allocation3 + $0xa] sm:$0x3] %vm371_vm12, %v673_v49 }
 0xbd6   :  { %677 = vst.msk [vmem:[#allocation3 + $0x4] sm:$0x3] %vm375_vm13, %v673_v49  ;;  %948 = vmatpush.bf16.msra.mxu3 %v1709_v59 }
 0xbd7   :  { %678 = vst.msk [vmem:[#allocation3 + $0xa] sm:$0x3] %vm377_vm14, %v2501_v30  ;;  %v1705_v30 = vor.u32 %v1845_v28, %v1704_v55 }
 0xbd9   :  { %934 = vmatpush.bf16.msra.mxu2 %v1705_v30 }
 0xbda   :  { %949 = vmatpush.bf16.msra.mxu3 %v1701_v14 }
 0xbdd   :  { %935 = vmatpush.bf16.msra.mxu2 %v1697_v10 }
 0xbde   :  { %1139 = vmatpush.bf16.msrb.mxu3 %v2580_v1 }
 0xbe1   :  { %1126 = vmatpush.bf16.msrb.mxu2 %v2555_v24 }
 0xbe2   :  { %1140 = vmatpush.bf16.msrb.mxu3 %v2586_v3 }
 0xbe5   :  { %1127 = vmatpush.bf16.msrb.mxu2 %v2578_v54 }
 0xbe6   :  { %1141 = vmatpush.bf16.msrb.mxu3 %v2592_v19 }
 0xbe9   :  { %1128 = vmatpush.bf16.msrb.mxu2 %v2584_v42 }
 0xbea   :  { %1142 = vmatpush.bf16.msrb.mxu3 %v2596_v25 }
 0xbed   :  { %1129 = vmatpush.bf16.msrb.mxu2 %v2589_v15 }
 0xbef   :  { %v1005_v16 = vpop.f32.mrf.mxu0 }
 0xbf5   :  { %v1018_v31 = vpop.f32.mrf.mxu1 }
 0xbf7   :  { %v1007_v22 = vpop.f32.mrf.mxu0 }
 0xbfd   :  { %v1020_v33 = vpop.f32.mrf.mxu1 }
 0xc42   :  { %v793_v26 = vpop.permute.xlu1 %792 }
 0xc43   :  { %795 = vst.msk [vmem:[#allocation3 + $0xe] sm:$0x3] %vm371_vm12, %v793_v26 }
 0xc44   :  { %797 = vst.msk [vmem:[#allocation3] sm:$0x3] %vm375_vm13, %v793_v26 }
 0xc45   :  { %798 = vst.msk [vmem:[#allocation3 + $0xe] sm:$0x3] %vm377_vm14, %v2564_v48 }
 0xc46   :  { %799 = vst.msk [vmem:[#allocation14] sm:$0x3] %vm371_vm12, %v793_v26 }
 0xc4b   :  { %v840_v36 = vld [vmem:[#allocation3] sm:$0xff] }
 0xc4c   :  { %v841_v5 = vld [vmem:[#allocation3 + $0x8] sm:$0xff] }
 0xc4d   :  { %v842_v18 = vpack.c.bf16 %v841_v5, %v840_v36 }
 0xc4f   :  { %936 = vmatmul.bf16.vlgmr.msra.gmra.mxu2 %v842_v18  ;;  %950 = vmatmul.bf16.vlgmr.msra.gmra.mxu3 %v842_v18 }
 0xc50   :  { %1244 = vmatpush.bf16.msra.mxu2 %v2555_v24  ;;  %1257 = vmatpush.bf16.msra.mxu3 %v2580_v1 }
 0xc54   :  { %1245 = vmatpush.bf16.msra.mxu2 %v2578_v54  ;;  %1258 = vmatpush.bf16.msra.mxu3 %v2586_v3 }
 0xc58   :  { %1246 = vmatpush.bf16.msra.mxu2 %v2584_v42  ;;  %1259 = vmatpush.bf16.msra.mxu3 %v2592_v19 }
 0xc5c   :  { %1247 = vmatpush.bf16.msra.mxu2 %v2589_v15  ;;  %1260 = vmatpush.bf16.msra.mxu3 %v2596_v25 }
 0xcd2   :  { %v937_v34 = vpop.f32.mrf.mxu2  ;;  %v951_v4 = vpop.f32.mrf.mxu3 }
 0xcd3   :  { %v2647_v37 = vadd.f32 %v937_v34, %v844_v35  ;;  %v2651_v38 = vadd.f32 %v951_v4, %v845_v29 }
 0xcd5   :  { %v1006_v40 = vadd.f32 %v1005_v16, %v2647_v37  ;;  %v1019_v41 = vadd.f32 %v1018_v31, %v2651_v38  ;;  %v1054_v63 = vrot.slane %v2647_v37, 2  ;;  %v1055_v58 = vrot.slane %v2651_v38, 2 }
 0xcd6   :  { %v1115_v36 = vrot.slane %v2647_v37, 4  ;;  %v1116_v31 = vrot.slane %v2651_v38, 4 }
 0xcd7   :  { %1937 = vtanh.f32 %v1006_v40 }
 0xcd8   :  { %1939 = vtanh.f32 %v1019_v41 }
 0xcda   :  { %v2689_v21 = vpop.f32.mrf.mxu2  ;;  %v2691_v26 = vpop.f32.mrf.mxu3 }
 0xcdd   :  { %v1938_v44 = vpop.eup %1937 }
 0xcde   :  { %v1024_v46 = vmul.f32 0.5, %v1938_v44  ;;  %v1940_v47 = vpop.eup %1939 }
 0xcdf   :  { %v1026_v23 = vmul.f32 0.5, %v1940_v47 }
 0xce0   :  { %v1025_v43 = vadd.f32 0.5, %v1024_v46 }
 0xce1   :  { %v1027_v53 = vadd.f32 0.5, %v1026_v23 }
 0xce2   :  { %v1029_v49 = vmul.f32 %v1940_v47, %v1025_v43  ;;  %v1028_v50 = vmul.f32 0.0, %v1025_v43 }
 0xce4   :  { %1031 = vrot.lane.b32.xlu2 %v1029_v49, %s2172_s3 }
 0xd3e   :  { %v1032_v51 = vpop.permute.xlu2 %1031 }
 0xd3f   :  { %v1034_v17 = vadd.f32 %v1032_v51, %v1028_v50 }
 0xd41   :  { %1941 = vtanh.f32 %v1034_v17 }
 0xd47   :  { %v1942_v6 = vpop.eup %1941 }
 0xd48   :  { %v2656_v0 = vmul.f32 %v1942_v6, %v1027_v53 }
 0xd4a   :  { %v1048_v27 = vpack.c.bf16 %v2656_v0, %v2656_v0 }
 0xd4c   :  { %1050 = vrot.lane.b32.xlu0 %v1048_v27, %s2172_s3  ;;  %v1176_v27 = vrot.slane %v2647_v37, 6 }
 0xdbe   :  { %v1051_v52 = vpop.permute.xlu0 %1050 }
 0xdbf   :  { %1790 = vmatmul.msk.bf16.vlgmr.msra.gmra.mxu0 %vm322_vm11, %v1051_v52  ;;  %1791 = vmatmul.msk.bf16.vlgmr.msra.gmra.mxu1 %vm322_vm11, %v1051_v52 }
 0xdc0   :  { %1307 = vmatpush.bf16.msra.mxu0 %v2555_v24  ;;  %1320 = vmatpush.bf16.msra.mxu1 %v2580_v1 }
 0xdc4   :  { %1308 = vmatpush.bf16.msra.mxu0 %v2578_v54  ;;  %1321 = vmatpush.bf16.msra.mxu1 %v2586_v3 }
 0xdc8   :  { %1309 = vmatpush.bf16.msra.mxu0 %v2584_v42  ;;  %1322 = vmatpush.bf16.msra.mxu1 %v2592_v19 }
 0xdcc   :  { %1310 = vmatpush.bf16.msra.mxu0 %v2589_v15  ;;  %1323 = vmatpush.bf16.msra.mxu1 %v2596_v25 }
 0xe3c   :  { %v1070_v55 = vpop.f32.mrf.mxu0  ;;  %v1083_v28 = vpop.f32.mrf.mxu1 }
 0xe3d   :  { %v1071_v56 = vadd.f32 %v1070_v55, %v1054_v63  ;;  %v1084_v30 = vadd.f32 %v1083_v28, %v1055_v58 }
 0xe3f   :  { %1943 = vtanh.f32 %v1071_v56 }
 0xe40   :  { %1945 = vtanh.f32 %v1084_v30 }
 0xe44   :  { %v1072_v59 = vpop.f32.mrf.mxu0  ;;  %v1085_v60 = vpop.f32.mrf.mxu1 }
 0xe45   :  { %v1944_v61 = vpop.eup %1943 }
 0xe46   :  { %v1089_v62 = vmul.f32 0.5, %v1944_v61  ;;  %v1946_v57 = vpop.eup %1945 }
 0xe47   :  { %v1091_v10 = vmul.f32 0.5, %v1946_v57 }
 0xe48   :  { %v1090_v45 = vadd.f32 0.5, %v1089_v62 }
 0xe49   :  { %v1092_v11 = vadd.f32 0.5, %v1091_v10 }
 0xe4a   :  { %v1094_v2 = vmul.f32 %v1946_v57, %v1090_v45  ;;  %v1093_v7 = vmul.f32 %v1090_v45, %v1034_v17  ;;  %v2724_v45 = vadd.f32 %v2689_v21, %v844_v35 }
 0xe4c   :  { %1096 = vrot.lane.b32.xlu1 %v1094_v2, %s2172_s3 }
 0xebe   :  { %v1097_v8 = vpop.permute.xlu1 %1096 }
 0xebf   :  { %v1099_v9 = vadd.f32 %v1097_v8, %v1093_v7  ;;  %v2729_v7 = vadd.f32 %v2691_v26, %v845_v29 }
 0xec1   :  { %1947 = vtanh.f32 %v1099_v9 }
 0xec7   :  { %v1948_v12 = vpop.eup %1947 }
 0xec8   :  { %v2674_v13 = vmul.f32 %v1948_v12, %v1092_v11 }
 0xeca   :  { %v1111_v14 = vpack.c.bf16 %v2674_v13, %v2674_v13 }
 0xecc   :  { %1113 = vrot.lane.b32.xlu2 %v1111_v14, %s2172_s3 }
 0xf26   :  { %v1114_v20 = vpop.permute.xlu2 %1113 }
 0xf27   :  { %1792 = vmatmul.msk.bf16.vlgmr.msrb.gmra.mxu2 %vm322_vm11, %v1114_v20  ;;  %1793 = vmatmul.msk.bf16.vlgmr.msrb.gmra.mxu3 %vm322_vm11, %v1114_v20 }
 0xf28   :  { %1368 = vmatpush.bf16.msrb.mxu2 %v2555_v24  ;;  %1381 = vmatpush.bf16.msrb.mxu3 %v2580_v1 }
 0xf2c   :  { %1369 = vmatpush.bf16.msrb.mxu2 %v2578_v54  ;;  %1382 = vmatpush.bf16.msrb.mxu3 %v2586_v3 }
 0xf30   :  { %1370 = vmatpush.bf16.msrb.mxu2 %v2584_v42  ;;  %1383 = vmatpush.bf16.msrb.mxu3 %v2592_v19 }
 0xf34   :  { %1371 = vmatpush.bf16.msrb.mxu2 %v2589_v15  ;;  %1384 = vmatpush.bf16.msrb.mxu3 %v2596_v25 }
 0xfaa   :  { %v1131_v5 = vpop.f32.mrf.mxu2  ;;  %v1144_v18 = vpop.f32.mrf.mxu3 }
 0xfab   :  { %v1132_v16 = vadd.f32 %v1131_v5, %v1115_v36  ;;  %v1145_v22 = vadd.f32 %v1144_v18, %v1116_v31 }
 0xfad   :  { %1949 = vtanh.f32 %v1132_v16 }
 0xfae   :  { %1951 = vtanh.f32 %v1145_v22 }
 0xfb2   :  { %v1133_v33 = vpop.f32.mrf.mxu2  ;;  %v1146_v34 = vpop.f32.mrf.mxu3 }
 0xfb3   :  { %v1950_v4 = vpop.eup %1949  ;;  %v1296_v33 = vrot.slane %v2724_v45, 2 }
 0xfb4   :  { %v1150_v40 = vmul.f32 0.5, %v1950_v4  ;;  %v1952_v44 = vpop.eup %1951 }
 0xfb5   :  { %v1152_v50 = vmul.f32 0.5, %v1952_v44 }
 0xfb6   :  { %v1151_v41 = vadd.f32 0.5, %v1150_v40 }
 0xfb7   :  { %v1153_v51 = vadd.f32 0.5, %v1152_v50 }
 0xfb8   :  { %v1155_v46 = vmul.f32 %v1952_v44, %v1151_v41  ;;  %v1154_v43 = vmul.f32 %v1151_v41, %v1099_v9  ;;  %v1297_v41 = vrot.slane %v2729_v7, 2 }
 0xfba   :  { %1157 = vrot.lane.b32.xlu0 %v1155_v46, %s2172_s3 }
0x102c   :  { %v1158_v47 = vpop.permute.xlu0 %1157 }
0x102d   :  { %v1160_v49 = vadd.f32 %v1158_v47, %v1154_v43 }
0x102f   :  { %1953 = vtanh.f32 %v1160_v49 }
0x1035   :  { %v1954_v17 = vpop.eup %1953 }
0x1036   :  { %v2696_v23 = vmul.f32 %v1954_v17, %v1153_v51 }
0x1038   :  { %v1172_v53 = vpack.c.bf16 %v2696_v23, %v2696_v23 }
0x103a   :  { %1174 = vrot.lane.b32.xlu1 %v1172_v53, %s2172_s3 }
0x10ac   :  { %v1175_v6 = vpop.permute.xlu1 %1174 }
0x10ad   :  { %1794 = vmatmul.msk.bf16.vlgmr.msrb.gmra.mxu0 %vm322_vm11, %v1175_v6  ;;  %1795 = vmatmul.msk.bf16.vlgmr.msrb.gmra.mxu1 %vm322_vm11, %v1175_v6 }
0x10ae   :  { %1429 = vmatpush.bf16.msrb.mxu0 %v2555_v24  ;;  %1442 = vmatpush.bf16.msrb.mxu1 %v2580_v1  ;;  %v1177_v24 = vrot.slane %v2651_v38, 6 }
0x10b2   :  { %1430 = vmatpush.bf16.msrb.mxu0 %v2578_v54  ;;  %1443 = vmatpush.bf16.msrb.mxu1 %v2586_v3 }
0x10b6   :  { %1431 = vmatpush.bf16.msrb.mxu0 %v2584_v42  ;;  %1444 = vmatpush.bf16.msrb.mxu1 %v2592_v19 }
0x10ba   :  { %1432 = vmatpush.bf16.msrb.mxu0 %v2589_v15  ;;  %1445 = vmatpush.bf16.msrb.mxu1 %v2596_v25 }
0x112a   :  { %v1192_v52 = vpop.f32.mrf.mxu0  ;;  %v1205_v63 = vpop.f32.mrf.mxu1 }
0x112b   :  { %v1193_v55 = vadd.f32 %v1192_v52, %v1176_v27  ;;  %v1206_v1 = vadd.f32 %v1205_v63, %v1177_v24 }
0x112d   :  { %1955 = vtanh.f32 %v1193_v55 }
0x112e   :  { %1957 = vtanh.f32 %v1206_v1 }
0x1132   :  { %v1194_v54 = vpop.f32.mrf.mxu0  ;;  %v1207_v3 = vpop.f32.mrf.mxu1 }
0x1133   :  { %v1956_v28 = vpop.eup %1955  ;;  %v1357_v3 = vrot.slane %v2724_v45, 4 }
0x1134   :  { %v1211_v42 = vmul.f32 0.5, %v1956_v28  ;;  %v1958_v19 = vpop.eup %1957 }
0x1135   :  { %v1213_v30 = vmul.f32 0.5, %v1958_v19 }
0x1136   :  { %v1212_v56 = vadd.f32 0.5, %v1211_v42 }
0x1137   :  { %v1214_v59 = vadd.f32 0.5, %v1213_v30 }
0x1138   :  { %v1216_v58 = vmul.f32 %v1958_v19, %v1212_v56  ;;  %v1215_v15 = vmul.f32 %v1212_v56, %v1160_v49  ;;  %v1358_v19 = vrot.slane %v2729_v7, 4 }
0x113a   :  { %1218 = vrot.lane.b32.xlu2 %v1216_v58, %s2172_s3 }
0x1194   :  { %v1219_v25 = vpop.permute.xlu2 %1218 }
0x1195   :  { %v1221_v37 = vadd.f32 %v1219_v25, %v1215_v15 }
0x1197   :  { %1959 = vtanh.f32 %v1221_v37 }
0x119d   :  { %v1960_v60 = vpop.eup %1959 }
0x119e   :  { %v2714_v38 = vmul.f32 %v1960_v60, %v1214_v59 }
0x11a0   :  { %v1233_v61 = vpack.c.bf16 %v2714_v38, %v2714_v38 }
0x11a2   :  { %1235 = vrot.lane.b32.xlu0 %v1233_v61, %s2172_s3 }
0x1214   :  { %v1236_v62 = vpop.permute.xlu0 %1235 }
0x1215   :  { %1796 = vmatmul.msk.bf16.vlgmr.msra.gmra.mxu2 %vm322_vm11, %v1236_v62  ;;  %1797 = vmatmul.msk.bf16.vlgmr.msra.gmra.mxu3 %vm322_vm11, %v1236_v62 }
0x1298   :  { %v1249_v57 = vpop.f32.mrf.mxu2  ;;  %v1262_v2 = vpop.f32.mrf.mxu3 }
0x1299   :  { %v1250_v8 = vadd.f32 %v1249_v57, %v2724_v45  ;;  %v1263_v9 = vadd.f32 %v1262_v2, %v2729_v7 }
0x129b   :  { %1961 = vtanh.f32 %v1250_v8 }
0x129c   :  { %1963 = vtanh.f32 %v1263_v9 }
0x12a0   :  { %v1251_v10 = vpop.f32.mrf.mxu2  ;;  %v1264_v11 = vpop.f32.mrf.mxu3 }
0x12a1   :  { %v1962_v12 = vpop.eup %1961 }
0x12a2   :  { %v1268_v14 = vmul.f32 0.5, %v1962_v12  ;;  %v1964_v35 = vpop.eup %1963 }
0x12a3   :  { %v1270_v29 = vmul.f32 0.5, %v1964_v35 }
0x12a4   :  { %v1269_v20 = vadd.f32 0.5, %v1268_v14 }
0x12a5   :  { %v1271_v26 = vadd.f32 0.5, %v1270_v29  ;;  %v1418_v29 = vrot.slane %v2724_v45, 6 }
0x12a6   :  { %v1273_v21 = vmul.f32 %v1964_v35, %v1269_v20  ;;  %v1272_v36 = vmul.f32 %v1269_v20, %v1221_v37 }
0x12a8   :  { %1275 = vrot.lane.b32.xlu1 %v1273_v21, %s2172_s3 }
0x131a   :  { %v1276_v32 = vpop.permute.xlu1 %1275 }
0x131b   :  { %v1278_v5 = vadd.f32 %v1276_v32, %v1272_v36 }
0x131d   :  { %1965 = vtanh.f32 %v1278_v5 }
0x1323   :  { %v1966_v18 = vpop.eup %1965 }
0x1324   :  { %v2734_v16 = vmul.f32 %v1966_v18, %v1271_v26 }
0x1326   :  { %v1290_v31 = vpack.c.bf16 %v2734_v16, %v2734_v16 }
0x1328   :  { %1292 = vrot.lane.b32.xlu2 %v1290_v31, %s2172_s3  ;;  %v1419_v31 = vrot.slane %v2729_v7, 6 }
0x1382   :  { %v1293_v22 = vpop.permute.xlu2 %1292 }
0x1383   :  { %1798 = vmatmul.msk.bf16.vlgmr.msra.gmra.mxu0 %vm322_vm11, %v1293_v22  ;;  %1799 = vmatmul.msk.bf16.vlgmr.msra.gmra.mxu1 %vm322_vm11, %v1293_v22 }
0x1400   :  { %v1312_v34 = vpop.f32.mrf.mxu0  ;;  %v1325_v4 = vpop.f32.mrf.mxu1 }
0x1401   :  { %v1313_v40 = vadd.f32 %v1312_v34, %v1296_v33  ;;  %v1326_v44 = vadd.f32 %v1325_v4, %v1297_v41 }
0x1403   :  { %1967 = vtanh.f32 %v1313_v40 }
0x1404   :  { %1969 = vtanh.f32 %v1326_v44 }
0x1408   :  { %v1314_v46 = vpop.f32.mrf.mxu0  ;;  %v1327_v43 = vpop.f32.mrf.mxu1 }
0x1409   :  { %v1968_v47 = vpop.eup %1967 }
0x140a   :  { %v1331_v49 = vmul.f32 0.5, %v1968_v47  ;;  %v1970_v51 = vpop.eup %1969 }
0x140b   :  { %v1333_v52 = vmul.f32 0.5, %v1970_v51 }
0x140c   :  { %v1332_v50 = vadd.f32 0.5, %v1331_v49 }
0x140d   :  { %v1334_v63 = vadd.f32 0.5, %v1333_v52 }
0x140e   :  { %v1336_v17 = vmul.f32 %v1970_v51, %v1332_v50  ;;  %v1335_v53 = vmul.f32 %v1332_v50, %v1278_v5 }
0x1410   :  { %1338 = vrot.lane.b32.xlu0 %v1336_v17, %s2172_s3 }
0x1482   :  { %v1339_v6 = vpop.permute.xlu0 %1338 }
0x1483   :  { %v1341_v27 = vadd.f32 %v1339_v6, %v1335_v53 }
0x1485   :  { %1971 = vtanh.f32 %v1341_v27 }
0x148b   :  { %v1972_v55 = vpop.eup %1971 }
0x148c   :  { %v2744_v24 = vmul.f32 %v1972_v55, %v1334_v63  ;;  %v1867_v63 = vld [vmem:[%s2860_s7 + $0x8] sm:$0xff]  ;;  %v1866_v55 = vld [vmem:[%s2860_s7] sm:$0xff] }
0x148e   :  { %v1353_v1 = vpack.c.bf16 %v2744_v24, %v2744_v24 }
0x1490   :  { %1355 = vrot.lane.b32.xlu1 %v1353_v1, %s2172_s3 }
0x1502   :  { %v1356_v54 = vpop.permute.xlu1 %1355 }
0x1503   :  { %1800 = vmatmul.msk.bf16.vlgmr.msrb.gmra.mxu2 %vm322_vm11, %v1356_v54  ;;  %1801 = vmatmul.msk.bf16.vlgmr.msrb.gmra.mxu3 %vm322_vm11, %v1356_v54 }
0x1586   :  { %v1373_v28 = vpop.f32.mrf.mxu2  ;;  %v1386_v42 = vpop.f32.mrf.mxu3 }
0x1587   :  { %v1374_v56 = vadd.f32 %v1373_v28, %v1357_v3  ;;  %v1387_v58 = vadd.f32 %v1386_v42, %v1358_v19  ;;  %v1871_v3 = vld [vmem:[%s2862_s9 + $0x8] sm:$0xff]  ;;  %v1870_v28 = vld [vmem:[%s2862_s9] sm:$0xff] }
0x1588   :  { %1578 = vmatpush.bf16.msra.mxu3 %v1871_v3 }
0x1589   :  { %1973 = vtanh.f32 %v1374_v56 }
0x158a   :  { %1975 = vtanh.f32 %v1387_v58 }
0x158c   :  { %1579 = vmatpush.bf16.msra.mxu3 %v1870_v28 }
0x158e   :  { %v1375_v15 = vpop.f32.mrf.mxu2  ;;  %v1388_v25 = vpop.f32.mrf.mxu3 }
0x158f   :  { %v1974_v37 = vpop.eup %1973 }
0x1590   :  { %v1392_v30 = vmul.f32 0.5, %v1974_v37  ;;  %v1976_v60 = vpop.eup %1975  ;;  %v1887_v37 = vld [vmem:[#allocation11] ss:$0 sm:$0xff] }
0x1591   :  { %v1394_v8 = vmul.f32 0.5, %v1976_v60 }
0x1592   :  { %v1393_v59 = vadd.f32 0.5, %v1392_v30 }
0x1593   :  { %v1395_v10 = vadd.f32 0.5, %v1394_v8 }
0x1594   :  { %v1397_v61 = vmul.f32 %v1976_v60, %v1393_v59  ;;  %v1396_v62 = vmul.f32 %v1393_v59, %v1341_v27  ;;  %v1869_v27 = vld [vmem:[%s2860_s7 + $0x18] sm:$0xff] }
0x1595   :  { %1538 = vmatpush.bf16.msra.mxu2 %v1869_v27 }
0x1596   :  { %1399 = vrot.lane.b32.xlu2 %v1397_v61, %s2172_s3 }
0x159e   :  { %1038 = vrot.lane.b32.xlu2 %v2656_v0, %s2172_s3 }
0x15a6   :  { %1225 = vrot.lane.b32.xlu2 %v2714_v38, %s2172_s3 }
0x15f0   :  { %v1400_v57 = vpop.permute.xlu2 %1399 }
0x15f1   :  { %v1402_v2 = vadd.f32 %v1400_v57, %v1396_v62  ;;  %v1888_v57 = vld [vmem:[#allocation13] ss:$0 sm:$0xff] }
0x15f3   :  { %1977 = vtanh.f32 %v1402_v2 }
0x15f8   :  { %v1039_v9 = vpop.permute.xlu2 %1038 }
0x15f9   :  { %v1978_v11 = vpop.eup %1977  ;;  %1042 = vst.msk [vmem:[#allocation4 - $0x1] sm:$0x2] %vm1041_vm15, %v1039_v9 }
0x15fa   :  { %v1404_v12 = vmul.f32 %v1978_v11, %v1395_v10 }
0x15fc   :  { %1406 = vrot.lane.b32.xlu2 %v1404_v12, %s2172_s3  ;;  %v1414_v14 = vpack.c.bf16 %v1404_v12, %v1404_v12 }
0x15fe   :  { %1416 = vrot.lane.b32.xlu0 %v1414_v14, %s2172_s3 }
0x1600   :  { %v1226_v20 = vpop.permute.xlu2 %1225 }
0x1601   :  { %1228 = vst.msk [vmem:[#allocation4 + $0x2] sm:$0x2] %vm1041_vm15, %v1226_v20 }
0x1604   :  { %1107 = vrot.lane.b32.xlu2 %v2674_v13, %s2173_s6 }
0x1606   :  { %1103 = vrot.lane.b32.xlu0 %v2674_v13, %s2172_s3 }
0x160c   :  { %1286 = vrot.lane.b32.xlu2 %v2734_v16, %s2173_s6 }
0x160e   :  { %1282 = vrot.lane.b32.xlu0 %v2734_v16, %s2172_s3 }
0x1616   :  { %1168 = vrot.lane.b32.xlu0 %v2696_v23, %s2173_s6 }
0x1656   :  { %v1407_v35 = vpop.permute.xlu2 %1406 }
0x1657   :  { %1409 = vst.msk [vmem:[#allocation4 + $0x5] sm:$0x2] %vm1041_vm15, %v1407_v35 }
0x165e   :  { %v1108_v36 = vpop.permute.xlu2 %1107 }
0x1666   :  { %v1287_v5 = vpop.permute.xlu2 %1286 }
0x1670   :  { %v1417_v21 = vpop.permute.xlu0 %1416 }
0x1671   :  { %1802 = vmatmul.msk.bf16.vlgmr.msrb.gmra.mxu0 %vm322_vm11, %v1417_v21  ;;  %1803 = vmatmul.msk.bf16.vlgmr.msrb.gmra.mxu1 %vm322_vm11, %v1417_v21 }
0x1678   :  { %v1104_v13 = vpop.permute.xlu0 %1103 }
0x1679   :  { %1106 = vst.msk [vmem:[#allocation4] sm:$0x2] %vm1041_vm15, %v1104_v13 }
0x167a   :  { %1110 = vst.msk [vmem:[#allocation4 + $0x1] sm:$0x1] %vm1046_vm0, %v1108_v36 }
0x1680   :  { %v1283_v32 = vpop.permute.xlu0 %1282 }
0x1681   :  { %1285 = vst.msk [vmem:[#allocation4 + $0x3] sm:$0x2] %vm1041_vm15, %v1283_v32 }
0x1682   :  { %1289 = vst.msk [vmem:[#allocation4 + $0x4] sm:$0x1] %vm1046_vm0, %v1287_v5 }
0x1688   :  { %v1169_v51 = vpop.permute.xlu0 %1168 }
0x16ee   :  { %v1434_v26 = vpop.f32.mrf.mxu0  ;;  %v1447_v18 = vpop.f32.mrf.mxu1 }
0x16ef   :  { %v1435_v16 = vadd.f32 %v1434_v26, %v1418_v29  ;;  %v1448_v22 = vadd.f32 %v1447_v18, %v1419_v31 }
0x16f1   :  { %1979 = vtanh.f32 %v1435_v16 }
0x16f2   :  { %1981 = vtanh.f32 %v1448_v22 }
0x16f6   :  { %v1436_v33 = vpop.f32.mrf.mxu0  ;;  %v1449_v34 = vpop.f32.mrf.mxu1 }
0x16f7   :  { %v1980_v4 = vpop.eup %1979 }
0x16f8   :  { %v1453_v40 = vmul.f32 0.5, %v1980_v4  ;;  %v1982_v44 = vpop.eup %1981 }
0x16fa   :  { %v1454_v41 = vadd.f32 0.5, %v1453_v40 }
0x16fc   :  { %v1458_v46 = vmul.f32 %v1982_v44, %v1454_v41  ;;  %v1457_v45 = vmul.f32 %v1454_v41, %v1402_v2 }
0x16fe   :  { %1460 = vrot.lane.b32.xlu1 %v1458_v46, %s2172_s3 }
0x1706   :  { %1164 = vrot.lane.b32.xlu1 %v2696_v23, %s2172_s3  ;;  %v1455_v23 = vmul.f32 0.5, %v1982_v44 }
0x1708   :  { %v1456_v49 = vadd.f32 0.5, %v1455_v23 }
0x170e   :  { %1345 = vrot.lane.b32.xlu1 %v2744_v24, %s2172_s3 }
0x1716   :  { %1043 = vrot.lane.b32.xlu1 %v2656_v0, %s2173_s6 }
0x171e   :  { %1229 = vrot.lane.b32.xlu1 %v2714_v38, %s2173_s6 }
0x1726   :  { %1410 = vrot.lane.b32.xlu1 %v1404_v12, %s2173_s6 }
0x172e   :  { %806 = vrot.lane.b32.xlu1 %v2559_v39, %s2172_s3 }
0x1770   :  { %v1461_v7 = vpop.permute.xlu1 %1460 }
0x1771   :  { %v1463_v43 = vadd.f32 %v1461_v7, %v1457_v45 }
0x1773   :  { %1983 = vtanh.f32 %v1463_v43  ;;  %1483 = vrot.lane.b32.xlu1 %v1463_v43, %s2172_s3 }
0x1778   :  { %v1165_v47 = vpop.permute.xlu1 %1164 }
0x1779   :  { %v1984_v50 = vpop.eup %1983  ;;  %1167 = vst.msk [vmem:[#allocation4 + $0x1] sm:$0x2] %vm1041_vm15, %v1165_v47 }
0x177a   :  { %1171 = vst.msk [vmem:[#allocation4 + $0x2] sm:$0x1] %vm1046_vm0, %v1169_v51  ;;  %v1465_v0 = vmul.f32 %v1984_v50, %v1456_v49 }
0x177c   :  { %1471 = vrot.lane.b32.xlu2 %v1465_v0, %s2173_s6  ;;  %1467 = vrot.lane.b32.xlu0 %v1465_v0, %s2172_s3 }
0x1780   :  { %v1346_v38 = vpop.permute.xlu1 %1345 }
0x1781   :  { %1348 = vst.msk [vmem:[#allocation4 + $0x4] sm:$0x2] %vm1041_vm15, %v1346_v38 }
0x1784   :  { %810 = vrot.lane.b32.xlu2 %v2559_v39, %s2174_s15  ;;  %1349 = vrot.lane.b32.xlu0 %v2744_v24, %s2173_s6 }
0x1788   :  { %v1044_v17 = vpop.permute.xlu1 %1043 }
0x1789   :  { %1047 = vst.msk [vmem:[#allocation4] sm:$0x1] %vm1046_vm0, %v1044_v17 }
0x178c   :  { %1488 = vrot.lane.b32.xlu2 %v1463_v43, %s2174_s15  ;;  %800 = vrot.lane.b32.xlu0 %v2564_v48, %s2174_s15  ;;  %v1868_v48 = vld [vmem:[%s2860_s7 + $0x10] sm:$0xff]  ;;  %s2175_s7 = smov [#allocation14]  }
0x178d   :  { %1539 = vmatpush.bf16.msra.mxu2 %v1868_v48  ;;  %s1593_s9 = sshll.u32 %s2175_s7, 4  ;;  %s1594_s9 = int_to_ptr.vmem [resolvable:$true] %s1593_s9 }
0x1790   :  { %v1230_v53 = vpop.permute.xlu1 %1229 }
0x1791   :  { %1232 = vst.msk [vmem:[#allocation4 + $0x3] sm:$0x1] %vm1046_vm0, %v1230_v53  ;;  %1540 = vmatpush.bf16.msra.mxu2 %v1867_v63 }
0x1794   :  { %1477 = vrot.lane.b32.xlu0 %v1465_v0, %s2174_s15 }
0x1795   :  { %1541 = vmatpush.bf16.msra.mxu2 %v1866_v55 }
0x1798   :  { %v1411_v6 = vpop.permute.xlu1 %1410 }
0x1799   :  { %1413 = vst.msk [vmem:[#allocation4 + $0x6] sm:$0x1] %vm1046_vm0, %v1411_v6 }
0x17a0   :  { %v807_v39 = vpop.permute.xlu1 %806 }
0x17a1   :  { %809 = vst.msk [vmem:[#allocation15] sm:$0x3] %vm371_vm12, %v807_v39 }
0x17d6   :  { %v1472_v52 = vpop.permute.xlu2 %1471 }
0x17de   :  { %v811_v24 = vpop.permute.xlu2 %810 }
0x17df   :  { %814 = vst.msk [vmem:[#allocation15 + $0x2] sm:$0x3] %vm371_vm12, %v811_v24 }
0x17e5   :  { %v1484_v1 = vpop.permute.xlu1 %1483 }
0x17e6   :  { %1487 = vst.msk [vmem:[#allocation15 + $0x4] sm:$0x3] %vm371_vm12, %v1484_v1  ;;  %v1489_v54 = vpop.permute.xlu2 %1488 }
0x17e7   :  { %1492 = vst.msk [vmem:[#allocation15 + $0x6] sm:$0x3] %vm371_vm12, %v1489_v54 }
0x17e8   :  { %1614 = dma.vmem_to_hbm [thread:$0]  %s1607_s28, 128, %s1609_s2, [#allocation16], %s2174_s15, %s2174_s15, %s2177_s29  }
0x17ee   :  { %v1468_v42 = vpop.permute.xlu0 %1467 }
0x17ef   :  { %1470 = vst.msk [vmem:[#allocation4 + $0x6] sm:$0x2] %vm1041_vm15, %v1468_v42 }
0x17f0   :  { %1474 = vst.msk [vmem:[#allocation4 + $0x7] sm:$0x1] %vm1046_vm0, %v1472_v52 }
0x17f1   :  { %1476 = vst.msk [vmem:[#allocation14 + $0x4] sm:$0x3] %vm371_vm12, %v1468_v42 }
0x17f6   :  { %v1350_v56 = vpop.permute.xlu0 %1349 }
0x17f7   :  { %1352 = vst.msk [vmem:[#allocation4 + $0x5] sm:$0x1] %vm1046_vm0, %v1350_v56 }
0x17fe   :  { %v801_v19 = vpop.permute.xlu0 %800  ;;  %v1493_v58 = vld [vmem:[#allocation4] sm:$0xff] }
0x17ff   :  { %804 = vst.msk [vmem:[#allocation14 + $0x2] sm:$0x3] %vm371_vm12, %v801_v19  ;;  %v1494_v15 = vpack.c.bf16 %v1493_v58, %v1493_v58 }
0x1801   :  { %1820 = vmatmul.msk.bf16.vlgmr.msra.gmra.mxu2 %vm322_vm11, %v1494_v15 }
0x1806   :  { %v1478_v25 = vpop.permute.xlu0 %1477 }
0x1807   :  { %1481 = vst.msk [vmem:[#allocation14 + $0x6] sm:$0x3] %vm371_vm12, %v1478_v25 }
0x1808   :  { %1601 = dma.vmem_to_hbm [thread:$0]  %s1594_s9, 128, %s1596_s8, [#allocation7], %s2174_s15, %s2174_s15, %s2177_s29  }
0x1884   :  { %v1543_v30 = vpop.f32.mrf.mxu2 }
0x1885   :  { %v1544_v59 = vadd.f32 %v1887_v37, %v1543_v30 }
0x1887   :  { %v1547_v60 = vmax.f32 %v1544_v59, 0.0 }
0x1889   :  { %v1548_v61 = vpack.c.bf16 %v1547_v60, %v1547_v60 }
0x188b   :  { %1829 = vmatmul.msk.bf16.vlgmr.msra.gmra.mxu3 %vm250_vm9, %v1548_v61 }
0x188c   :  { %v1545_v62 = vpop.f32.mrf.mxu2 }
0x190e   :  { %v1581_v2 = vpop.f32.mrf.mxu3 }
0x190f   :  { %v1582_v8 = vadd.f32 %v1888_v57, %v1581_v2 }
0x1911   :  { %1586 = vst.msk [vmem:[%s2864_s11] sm:$0xff] %vm1585_vm1, %v1582_v8 }
0x1916   :  { %v1583_v9 = vpop.f32.mrf.mxu3 }
0x1917   :  { %2159 = dma.done.wait [#allocation7], 128  }
0x1918   :  { %2160 = vsyncadd [#allocation7], 4294967168 }
0x1919   :  { %2161 = dma.done.wait [#allocation16], 128  }
0x191a   :  { %2162 = vsyncadd [#allocation16], 4294967168 }
0x191b   :  { %1625 = vsyncpa [#allocation6], 1 }
0x191c   :  { %1626 = vsyncpa [#allocation9], 1 }
0x191d   :  { %1627 = vsyncpa [#allocation12], 1 }
0x191e   :  { %1628 = vsyncpa [#allocation7], 1 }
0x191f   :  { %1629 = vsyncpa [#allocation16], 1 }

</bundles_post_ra>
